<compile_context>
chip_gen: v7x
topology: tpu7x:2x2x1
jax: 0.10.0
libtpu: 0.0.40
codegen_flags: <defaults>
</compile_context>

<pallas_src>
import functools
import math

import jax
import jax.numpy as jnp
from jax.experimental import pallas as pl
from jax.experimental.pallas import tpu as pltpu


def _lstm_mlp_kernel(x_ref, wih_ref, whh_ref, b_ref, w_ref, bias_ref, out_ref, gx_ref):
    """One batch tile: LSTM recurrence in (4H, B) layout + folded (Linear->Linear) head."""
    H = whh_ref.shape[1]           # whh block is (4H, H)
    Bt = out_ref.shape[2]          # out block is (1, Out_pad, B_TILE)
    T = x_ref.shape[2] // Bt       # x block is (1, In_pad, T*B_TILE)

    # Hoisted input projection for all timesteps / batch columns in one MXU matmul:
    #   (4H, In_pad) @ (In_pad, T*Bt) -> (4H, T*Bt); bias added once (lane broadcast).
    gx_ref[...] = (jnp.dot(wih_ref[...], x_ref[0],
                           preferred_element_type=jnp.float32)
                   + b_ref[...])

    whh = whh_ref[...]             # (4H, H), resident in vregs across the unrolled loop

    h = jnp.zeros((H, Bt), jnp.float32)
    c = jnp.zeros((H, Bt), jnp.float32)

    # T is static -> fully unrolled serial recurrence; all slices below are static and
    # lane/sublane aligned.
    for t in range(T):
        gx_t = gx_ref[:, t * Bt:(t + 1) * Bt]             # (4H, Bt), lane-aligned slice
        if t == 0:
            gates = gx_t                                  # h == 0: skip the dead matmul
        else:
            gates = jnp.dot(whh, h, preferred_element_type=jnp.float32) + gx_t
        sg = jax.nn.sigmoid(gates)                        # ONE full-width EUP pass
        i_g = sg[0:H, :]                                  # sublane slices (multiples of 8)
        f_g = sg[H:2 * H, :]
        o_g = sg[2 * H:3 * H, :]
        g_g = 2.0 * sg[3 * H:4 * H, :] - 1.0              # tanh via pre-scaled sigmoid (VPU)
        c = f_g * c + i_g * g_g
        h = o_g * jnp.tanh(c)                             # the only remaining per-step tanh

    # Dropout(p=0.2) is identity at inference time.
    # TODO(synk): training-mode dropout (random mask + 1/(1-p) scale) not implemented.
    y = jnp.dot(w_ref[...], h, preferred_element_type=jnp.float32) + bias_ref[...]
    out_ref[0] = y                                        # (Out_pad, B_TILE) lane-dense store


@functools.partial(jax.jit, static_argnames=("output_size", "b_tile"))
def lstm_model_forward(xs, params, *, output_size, b_tile=128):
    """xs: (B, T, In) float32 batch of independent sequences.

    Returns (B, output_size) == predictions[-1] for each sequence (module forward applied per
    sequence, each starting from the module's fresh zero hidden state)."""
    wih, whh, b, w_head, bias_head = params
    B, T, In = xs.shape
    H = whh.shape[1]
    in_pad = wih.shape[1]
    out_pad = w_head.shape[0]

    G = pl.cdiv(B, b_tile)
    b_pad = G * b_tile

    # Pad batch -> G*b_tile and features -> in_pad, then flip to the kernel layout
    # (tile, In_pad, T*b_tile) with column index = t*b_tile + batch_in_tile.
    x = jnp.zeros((b_pad, T, in_pad), jnp.float32).at[:B, :, :In].set(xs)
    x = x.reshape(G, b_tile, T, in_pad).transpose(0, 3, 2, 1).reshape(G, in_pad, T * b_tile)

    # VMEM footprint per tile (f32): x block + hoisted gates + weights + out slab -- well
    # under the scoped default on v5e/v6e/v7x at these sizes, no vmem_limit_bytes needed.
    out = pl.pallas_call(
        _lstm_mlp_kernel,
        out_shape=jax.ShapeDtypeStruct((G, out_pad, b_tile), jnp.float32),
        grid=(G,),
        in_specs=[
            pl.BlockSpec((1, in_pad, T * b_tile), lambda g: (g, 0, 0)),  # per-tile input
            pl.BlockSpec((4 * H, in_pad), lambda g: (0, 0)),             # weights stay resident
            pl.BlockSpec((4 * H, H), lambda g: (0, 0)),
            pl.BlockSpec((4 * H, 1), lambda g: (0, 0)),
            pl.BlockSpec((out_pad, H), lambda g: (0, 0)),
            pl.BlockSpec((out_pad, 1), lambda g: (0, 0)),
        ],
        out_specs=pl.BlockSpec((1, out_pad, b_tile), lambda g: (g, 0, 0)),
        scratch_shapes=[pltpu.VMEM((4 * H, T * b_tile), jnp.float32)],   # hoisted gate pre-acts
        compiler_params=pltpu.CompilerParams(
            dimension_semantics=("parallel",)),
    )(x, wih, whh, b, w_head, bias_head)

    # (G, Out_pad, b_tile) -> (B, output_size)
    y = out.transpose(0, 2, 1).reshape(b_pad, out_pad)
    return y[:B, :output_size]


def init_params(key, input_size, hidden_size, output_size):
    """Deterministic synthetic parameters with PyTorch-equivalent shapes, plus the reordered /
    pre-scaled / folded / padded tensors the kernel consumes."""
    mid = math.ceil(1.25 * hidden_size)
    H = hidden_size
    ks = jax.random.split(key, 8)
    s_lstm = 1.0 / math.sqrt(hidden_size)

    w_ih = jax.random.uniform(ks[0], (4 * H, input_size), jnp.float32, -s_lstm, s_lstm)
    w_hh = jax.random.uniform(ks[1], (4 * H, H), jnp.float32, -s_lstm, s_lstm)
    b_ih = jax.random.uniform(ks[2], (4 * H,), jnp.float32, -s_lstm, s_lstm)
    b_hh = jax.random.uniform(ks[3], (4 * H,), jnp.float32, -s_lstm, s_lstm)

    s1 = 1.0 / math.sqrt(hidden_size)
    w1 = jax.random.uniform(ks[4], (mid, hidden_size), jnp.float32, -s1, s1)
    b1 = jax.random.uniform(ks[5], (mid,), jnp.float32, -s1, s1)
    s2 = 1.0 / math.sqrt(mid)
    w2 = jax.random.uniform(ks[6], (output_size, mid), jnp.float32, -s2, s2)
    b2 = jax.random.uniform(ks[7], (output_size,), jnp.float32, -s2, s2)

    def prep_gates(m):
        # PyTorch gate order (i, f, g, o) -> kernel order (i, f, o, g); g rows pre-scaled by 2
        # so tanh(z) == 2*sigmoid(2z) - 1 falls out of the kernel's single full-width sigmoid.
        i, f, g, o = m[0:H], m[H:2 * H], m[2 * H:3 * H], m[3 * H:4 * H]
        return jnp.concatenate([i, f, o, 2.0 * g], axis=0)

    in_pad = -(-input_size // 8) * 8                      # pad the contraction dim (sublanes)
    wih_k = jnp.zeros((4 * H, in_pad), jnp.float32).at[:, :input_size].set(prep_gates(w_ih))
    whh_k = prep_gates(w_hh)                              # (4H, H)
    b_k = prep_gates((b_ih + b_hh).reshape(4 * H, 1))     # (4H, 1)

    # Fold Linear1 -> Linear2 (no nonlinearity between; eval-mode dropout is identity),
    # already in the flipped layout: y_col = (W2 @ W1) @ h_col + (W2 @ b1 + b2).
    w_fold = w2 @ w1                                      # (Out, H)
    bias_fold = w2 @ b1 + b2                              # (Out,)
    out_pad = -(-output_size // 8) * 8
    w_head = jnp.zeros((out_pad, H), jnp.float32).at[:output_size, :].set(w_fold)
    bias_head = jnp.zeros((out_pad, 1), jnp.float32).at[:output_size, 0].set(bias_fold)

    params = (wih_k, whh_k, b_k, w_head, bias_head)
    raw = dict(w_ih=w_ih, w_hh=w_hh, b_ih=b_ih, b_hh=b_hh, w1=w1, b1=b1, w2=w2, b2=b2)
    return params, raw


def reference_forward(x, raw, hidden_size):
    """Pure-JAX reference mirroring the PyTorch forward (eval-mode dropout), one sequence."""
    H = hidden_size
    h = jnp.zeros((1, H), jnp.float32)
    c = jnp.zeros((1, H), jnp.float32)
    for t in range(x.shape[0]):
        gates = x[t:t + 1] @ raw["w_ih"].T + h @ raw["w_hh"].T + raw["b_ih"] + raw["b_hh"]
        i_g = jax.nn.sigmoid(gates[:, 0:H])
        f_g = jax.nn.sigmoid(gates[:, H:2 * H])
        g_g = jnp.tanh(gates[:, 2 * H:3 * H])
        o_g = jax.nn.sigmoid(gates[:, 3 * H:4 * H])
        c = f_g * c + i_g * g_g
        h = o_g * jnp.tanh(c)
    y1 = h @ raw["w1"].T + raw["b1"]
    y2 = y1 @ raw["w2"].T + raw["b2"]
    return y2[0]


if __name__ == "__main__":
    # Small shapes consistent with the module: input=20, hidden=32 (-> mid=40), output=20,
    # seq=8; batch=2 independent sequences (the module's forward applied per sequence).
    input_size, hidden_size, output_size, seq_len, batch = 20, 32, 20, 8, 2

    key = jax.random.PRNGKey(0)
    k_param, k_x = jax.random.split(key)
    params, raw = init_params(k_param, input_size, hidden_size, output_size)

    xs = jax.random.normal(k_x, (batch, seq_len, input_size), jnp.float32)

    out = lstm_model_forward(xs, params, output_size=output_size)
    out = jax.block_until_ready(out)
    assert out.shape == (batch, output_size)

    for b_i in range(batch):
        ref = reference_forward(xs[b_i], raw, hidden_size)
        # 1e-4 tolerance: folded Linears + tanh-via-sigmoid change fp32 rounding slightly.
        assert jnp.allclose(out[b_i], ref, atol=1e-4, rtol=1e-4), (b_i, out[b_i], ref)

    print("KERNEL_OK")
</pallas_src>

<mosaic_0001>
module attributes {stable_mosaic.version = 11 : i64} {
  func.func @_lstm_mlp_kernel(%arg0: i32, %arg1: memref<1x24x1024xf32, #tpu.memory_space<vmem>>, %arg2: memref<128x24xf32, #tpu.memory_space<vmem>>, %arg3: memref<128x32xf32, #tpu.memory_space<vmem>>, %arg4: memref<128x1xf32, #tpu.memory_space<vmem>>, %arg5: memref<24x32xf32, #tpu.memory_space<vmem>>, %arg6: memref<24x1xf32, #tpu.memory_space<vmem>>, %arg7: memref<1x24x128xf32, #tpu.memory_space<vmem>>, %arg8: memref<128x1024xf32, #tpu.memory_space<vmem>>) attributes {dimension_semantics = [#tpu.dimension_semantics<parallel>], iteration_bounds = array<i64: 1>, scalar_prefetch = 0 : i64, scratch_operands = 1 : i64, tpu.core_type = #tpu.core_type<tc>, window_params = [{transform_indices = @transform_0, window_bounds = array<i64: 1, 24, 1024>}, {pipeline_mode = #tpu.pipeline_mode<synchronous>, transform_indices = @transform_1, window_bounds = array<i64: 128, 24>}, {pipeline_mode = #tpu.pipeline_mode<synchronous>, transform_indices = @transform_2, window_bounds = array<i64: 128, 32>}, {pipeline_mode = #tpu.pipeline_mode<synchronous>, transform_indices = @transform_3, window_bounds = array<i64: 128, 1>}, {pipeline_mode = #tpu.pipeline_mode<synchronous>, transform_indices = @transform_4, window_bounds = array<i64: 24, 32>}, {pipeline_mode = #tpu.pipeline_mode<synchronous>, transform_indices = @transform_5, window_bounds = array<i64: 24, 1>}, {transform_indices = @transform_6, window_bounds = array<i64: 1, 24, 128>}]} {
    %c0 = arith.constant 0 : index
    %c0_0 = arith.constant 0 : index
    %0 = vector.load %arg2[%c0, %c0_0] : memref<128x24xf32, #tpu.memory_space<vmem>>, vector<128x24xf32>
    %c0_1 = arith.constant 0 : index
    %c0_2 = arith.constant 0 : index
    %c0_3 = arith.constant 0 : index
    %1 = vector.load %arg1[%c0_1, %c0_2, %c0_3] : memref<1x24x1024xf32, #tpu.memory_space<vmem>>, vector<1x24x1024xf32>
    %2 = vector.shape_cast %1 : vector<1x24x1024xf32> to vector<24x1024xf32>
    %cst = arith.constant dense<0.000000e+00> : vector<128x1024xf32>
    %3 = tpu.matmul %0, %2, %cst {dimension_numbers = #tpu.dot_dimension_numbers<[1], [0], [0], [1], [0, 0, 1, 1], [], []>} : vector<128x24xf32>, vector<24x1024xf32>, vector<128x1024xf32> -> vector<128x1024xf32>
    %c0_4 = arith.constant 0 : index
    %c0_5 = arith.constant 0 : index
    %4 = vector.load %arg4[%c0_4, %c0_5] : memref<128x1xf32, #tpu.memory_space<vmem>>, vector<128x1xf32>
    %5 = vector.broadcast %4 : vector<128x1xf32> to vector<128x1024xf32>
    %6 = arith.addf %3, %5 : vector<128x1024xf32>
    %c0_6 = arith.constant 0 : index
    %c0_7 = arith.constant 0 : index
    %7 = vector.load %arg8[%c0_6, %c0_7] : memref<128x1024xf32, #tpu.memory_space<vmem>>, vector<128x1024xf32>
    tpu.vector_store %arg8[%c0_6, %c0_7], %6 {strides = array<i32>} : memref<128x1024xf32, #tpu.memory_space<vmem>>, vector<128x1024xf32>,
    %c0_8 = arith.constant 0 : index
    %c0_9 = arith.constant 0 : index
    %8 = vector.load %arg3[%c0_8, %c0_9] : memref<128x32xf32, #tpu.memory_space<vmem>>, vector<128x32xf32>
    %cst_10 = arith.constant 0.000000e+00 : f32
    %9 = vector.broadcast %cst_10 : f32 to vector<32x128xf32>
    %c0_11 = arith.constant 0 : index
    %c0_12 = arith.constant 0 : index
    %10 = vector.load %arg8[%c0_11, %c0_12] : memref<128x1024xf32, #tpu.memory_space<vmem>>, vector<128x128xf32>
    %11 = arith.negf %10 : vector<128x128xf32>
    %12 = math.exp %11 : vector<128x128xf32>
    %cst_13 = arith.constant 1.000000e+00 : f32
    %13 = vector.broadcast %cst_13 : f32 to vector<128x128xf32>
    %14 = arith.addf %13, %12 : vector<128x128xf32>
    %15 = arith.divf %13, %14 : vector<128x128xf32>
    %16 = vector.extract_strided_slice %15 {offsets = [0, 0], sizes = [32, 128], strides = [1, 1]} : vector<128x128xf32> to vector<32x128xf32>
    %17 = vector.extract_strided_slice %15 {offsets = [32, 0], sizes = [32, 128], strides = [1, 1]} : vector<128x128xf32> to vector<32x128xf32>
    %18 = vector.extract_strided_slice %15 {offsets = [64, 0], sizes = [32, 128], strides = [1, 1]} : vector<128x128xf32> to vector<32x128xf32>
    %19 = vector.extract_strided_slice %15 {offsets = [96, 0], sizes = [32, 128], strides = [1, 1]} : vector<128x128xf32> to vector<32x128xf32>
    %cst_14 = arith.constant 2.000000e+00 : f32
    %20 = vector.broadcast %cst_14 : f32 to vector<32x128xf32>
    %21 = arith.mulf %20, %19 : vector<32x128xf32>
    %cst_15 = arith.constant 1.000000e+00 : f32
    %22 = vector.broadcast %cst_15 : f32 to vector<32x128xf32>
    %23 = arith.subf %21, %22 : vector<32x128xf32>
    %24 = arith.mulf %17, %9 : vector<32x128xf32>
    %25 = arith.mulf %16, %23 : vector<32x128xf32>
    %26 = arith.addf %24, %25 : vector<32x128xf32>
    %27 = math.tanh %26 : vector<32x128xf32>
    %28 = arith.mulf %18, %27 : vector<32x128xf32>
    %c0_16 = arith.constant 0 : index
    %c128 = arith.constant 128 : index
    %29 = vector.load %arg8[%c0_16, %c128] : memref<128x1024xf32, #tpu.memory_space<vmem>>, vector<128x128xf32>
    %cst_17 = arith.constant dense<0.000000e+00> : vector<128x128xf32>
    %30 = tpu.matmul %8, %28, %cst_17 {dimension_numbers = #tpu.dot_dimension_numbers<[1], [0], [0], [1], [0, 0, 1, 1], [], []>} : vector<128x32xf32>, vector<32x128xf32>, vector<128x128xf32> -> vector<128x128xf32>
    %31 = arith.addf %30, %29 : vector<128x128xf32>
    %32 = arith.negf %31 : vector<128x128xf32>
    %33 = math.exp %32 : vector<128x128xf32>
    %cst_18 = arith.constant 1.000000e+00 : f32
    %34 = vector.broadcast %cst_18 : f32 to vector<128x128xf32>
    %35 = arith.addf %34, %33 : vector<128x128xf32>
    %36 = arith.divf %34, %35 : vector<128x128xf32>
    %37 = vector.extract_strided_slice %36 {offsets = [0, 0], sizes = [32, 128], strides = [1, 1]} : vector<128x128xf32> to vector<32x128xf32>
    %38 = vector.extract_strided_slice %36 {offsets = [32, 0], sizes = [32, 128], strides = [1, 1]} : vector<128x128xf32> to vector<32x128xf32>
    %39 = vector.extract_strided_slice %36 {offsets = [64, 0], sizes = [32, 128], strides = [1, 1]} : vector<128x128xf32> to vector<32x128xf32>
    %40 = vector.extract_strided_slice %36 {offsets = [96, 0], sizes = [32, 128], strides = [1, 1]} : vector<128x128xf32> to vector<32x128xf32>
    %cst_19 = arith.constant 2.000000e+00 : f32
    %41 = vector.broadcast %cst_19 : f32 to vector<32x128xf32>
    %42 = arith.mulf %41, %40 : vector<32x128xf32>
    %cst_20 = arith.constant 1.000000e+00 : f32
    %43 = vector.broadcast %cst_20 : f32 to vector<32x128xf32>
    %44 = arith.subf %42, %43 : vector<32x128xf32>
    %45 = arith.mulf %38, %26 : vector<32x128xf32>
    %46 = arith.mulf %37, %44 : vector<32x128xf32>
    %47 = arith.addf %45, %46 : vector<32x128xf32>
    %48 = math.tanh %47 : vector<32x128xf32>
    %49 = arith.mulf %39, %48 : vector<32x128xf32>
    %c0_21 = arith.constant 0 : index
    %c256 = arith.constant 256 : index
    %50 = vector.load %arg8[%c0_21, %c256] : memref<128x1024xf32, #tpu.memory_space<vmem>>, vector<128x128xf32>
    %cst_22 = arith.constant dense<0.000000e+00> : vector<128x128xf32>
    %51 = tpu.matmul %8, %49, %cst_22 {dimension_numbers = #tpu.dot_dimension_numbers<[1], [0], [0], [1], [0, 0, 1, 1], [], []>} : vector<128x32xf32>, vector<32x128xf32>, vector<128x128xf32> -> vector<128x128xf32>
    %52 = arith.addf %51, %50 : vector<128x128xf32>
    %53 = arith.negf %52 : vector<128x128xf32>
    %54 = math.exp %53 : vector<128x128xf32>
    %cst_23 = arith.constant 1.000000e+00 : f32
    %55 = vector.broadcast %cst_23 : f32 to vector<128x128xf32>
    %56 = arith.addf %55, %54 : vector<128x128xf32>
    %57 = arith.divf %55, %56 : vector<128x128xf32>
    %58 = vector.extract_strided_slice %57 {offsets = [0, 0], sizes = [32, 128], strides = [1, 1]} : vector<128x128xf32> to vector<32x128xf32>
    %59 = vector.extract_strided_slice %57 {offsets = [32, 0], sizes = [32, 128], strides = [1, 1]} : vector<128x128xf32> to vector<32x128xf32>
    %60 = vector.extract_strided_slice %57 {offsets = [64, 0], sizes = [32, 128], strides = [1, 1]} : vector<128x128xf32> to vector<32x128xf32>
    %61 = vector.extract_strided_slice %57 {offsets = [96, 0], sizes = [32, 128], strides = [1, 1]} : vector<128x128xf32> to vector<32x128xf32>
    %cst_24 = arith.constant 2.000000e+00 : f32
    %62 = vector.broadcast %cst_24 : f32 to vector<32x128xf32>
    %63 = arith.mulf %62, %61 : vector<32x128xf32>
    %cst_25 = arith.constant 1.000000e+00 : f32
    %64 = vector.broadcast %cst_25 : f32 to vector<32x128xf32>
    %65 = arith.subf %63, %64 : vector<32x128xf32>
    %66 = arith.mulf %59, %47 : vector<32x128xf32>
    %67 = arith.mulf %58, %65 : vector<32x128xf32>
    %68 = arith.addf %66, %67 : vector<32x128xf32>
    %69 = math.tanh %68 : vector<32x128xf32>
    %70 = arith.mulf %60, %69 : vector<32x128xf32>
    %c0_26 = arith.constant 0 : index
    %c384 = arith.constant 384 : index
    %71 = vector.load %arg8[%c0_26, %c384] : memref<128x1024xf32, #tpu.memory_space<vmem>>, vector<128x128xf32>
    %cst_27 = arith.constant dense<0.000000e+00> : vector<128x128xf32>
    %72 = tpu.matmul %8, %70, %cst_27 {dimension_numbers = #tpu.dot_dimension_numbers<[1], [0], [0], [1], [0, 0, 1, 1], [], []>} : vector<128x32xf32>, vector<32x128xf32>, vector<128x128xf32> -> vector<128x128xf32>
    %73 = arith.addf %72, %71 : vector<128x128xf32>
    %74 = arith.negf %73 : vector<128x128xf32>
    %75 = math.exp %74 : vector<128x128xf32>
    %cst_28 = arith.constant 1.000000e+00 : f32
    %76 = vector.broadcast %cst_28 : f32 to vector<128x128xf32>
    %77 = arith.addf %76, %75 : vector<128x128xf32>
    %78 = arith.divf %76, %77 : vector<128x128xf32>
    %79 = vector.extract_strided_slice %78 {offsets = [0, 0], sizes = [32, 128], strides = [1, 1]} : vector<128x128xf32> to vector<32x128xf32>
    %80 = vector.extract_strided_slice %78 {offsets = [32, 0], sizes = [32, 128], strides = [1, 1]} : vector<128x128xf32> to vector<32x128xf32>
    %81 = vector.extract_strided_slice %78 {offsets = [64, 0], sizes = [32, 128], strides = [1, 1]} : vector<128x128xf32> to vector<32x128xf32>
    %82 = vector.extract_strided_slice %78 {offsets = [96, 0], sizes = [32, 128], strides = [1, 1]} : vector<128x128xf32> to vector<32x128xf32>
    %cst_29 = arith.constant 2.000000e+00 : f32
    %83 = vector.broadcast %cst_29 : f32 to vector<32x128xf32>
    %84 = arith.mulf %83, %82 : vector<32x128xf32>
    %cst_30 = arith.constant 1.000000e+00 : f32
    %85 = vector.broadcast %cst_30 : f32 to vector<32x128xf32>
    %86 = arith.subf %84, %85 : vector<32x128xf32>
    %87 = arith.mulf %80, %68 : vector<32x128xf32>
    %88 = arith.mulf %79, %86 : vector<32x128xf32>
    %89 = arith.addf %87, %88 : vector<32x128xf32>
    %90 = math.tanh %89 : vector<32x128xf32>
    %91 = arith.mulf %81, %90 : vector<32x128xf32>
    %c0_31 = arith.constant 0 : index
    %c512 = arith.constant 512 : index
    %92 = vector.load %arg8[%c0_31, %c512] : memref<128x1024xf32, #tpu.memory_space<vmem>>, vector<128x128xf32>
    %cst_32 = arith.constant dense<0.000000e+00> : vector<128x128xf32>
    %93 = tpu.matmul %8, %91, %cst_32 {dimension_numbers = #tpu.dot_dimension_numbers<[1], [0], [0], [1], [0, 0, 1, 1], [], []>} : vector<128x32xf32>, vector<32x128xf32>, vector<128x128xf32> -> vector<128x128xf32>
    %94 = arith.addf %93, %92 : vector<128x128xf32>
    %95 = arith.negf %94 : vector<128x128xf32>
    %96 = math.exp %95 : vector<128x128xf32>
    %cst_33 = arith.constant 1.000000e+00 : f32
    %97 = vector.broadcast %cst_33 : f32 to vector<128x128xf32>
    %98 = arith.addf %97, %96 : vector<128x128xf32>
    %99 = arith.divf %97, %98 : vector<128x128xf32>
    %100 = vector.extract_strided_slice %99 {offsets = [0, 0], sizes = [32, 128], strides = [1, 1]} : vector<128x128xf32> to vector<32x128xf32>
    %101 = vector.extract_strided_slice %99 {offsets = [32, 0], sizes = [32, 128], strides = [1, 1]} : vector<128x128xf32> to vector<32x128xf32>
    %102 = vector.extract_strided_slice %99 {offsets = [64, 0], sizes = [32, 128], strides = [1, 1]} : vector<128x128xf32> to vector<32x128xf32>
    %103 = vector.extract_strided_slice %99 {offsets = [96, 0], sizes = [32, 128], strides = [1, 1]} : vector<128x128xf32> to vector<32x128xf32>
    %cst_34 = arith.constant 2.000000e+00 : f32
    %104 = vector.broadcast %cst_34 : f32 to vector<32x128xf32>
    %105 = arith.mulf %104, %103 : vector<32x128xf32>
    %cst_35 = arith.constant 1.000000e+00 : f32
    %106 = vector.broadcast %cst_35 : f32 to vector<32x128xf32>
    %107 = arith.subf %105, %106 : vector<32x128xf32>
    %108 = arith.mulf %101, %89 : vector<32x128xf32>
    %109 = arith.mulf %100, %107 : vector<32x128xf32>
    %110 = arith.addf %108, %109 : vector<32x128xf32>
    %111 = math.tanh %110 : vector<32x128xf32>
    %112 = arith.mulf %102, %111 : vector<32x128xf32>
    %c0_36 = arith.constant 0 : index
    %c640 = arith.constant 640 : index
    %113 = vector.load %arg8[%c0_36, %c640] : memref<128x1024xf32, #tpu.memory_space<vmem>>, vector<128x128xf32>
    %cst_37 = arith.constant dense<0.000000e+00> : vector<128x128xf32>
    %114 = tpu.matmul %8, %112, %cst_37 {dimension_numbers = #tpu.dot_dimension_numbers<[1], [0], [0], [1], [0, 0, 1, 1], [], []>} : vector<128x32xf32>, vector<32x128xf32>, vector<128x128xf32> -> vector<128x128xf32>
    %115 = arith.addf %114, %113 : vector<128x128xf32>
    %116 = arith.negf %115 : vector<128x128xf32>
    %117 = math.exp %116 : vector<128x128xf32>
    %cst_38 = arith.constant 1.000000e+00 : f32
    %118 = vector.broadcast %cst_38 : f32 to vector<128x128xf32>
    %119 = arith.addf %118, %117 : vector<128x128xf32>
    %120 = arith.divf %118, %119 : vector<128x128xf32>
    %121 = vector.extract_strided_slice %120 {offsets = [0, 0], sizes = [32, 128], strides = [1, 1]} : vector<128x128xf32> to vector<32x128xf32>
    %122 = vector.extract_strided_slice %120 {offsets = [32, 0], sizes = [32, 128], strides = [1, 1]} : vector<128x128xf32> to vector<32x128xf32>
    %123 = vector.extract_strided_slice %120 {offsets = [64, 0], sizes = [32, 128], strides = [1, 1]} : vector<128x128xf32> to vector<32x128xf32>
    %124 = vector.extract_strided_slice %120 {offsets = [96, 0], sizes = [32, 128], strides = [1, 1]} : vector<128x128xf32> to vector<32x128xf32>
    %cst_39 = arith.constant 2.000000e+00 : f32
    %125 = vector.broadcast %cst_39 : f32 to vector<32x128xf32>
    %126 = arith.mulf %125, %124 : vector<32x128xf32>
    %cst_40 = arith.constant 1.000000e+00 : f32
    %127 = vector.broadcast %cst_40 : f32 to vector<32x128xf32>
    %128 = arith.subf %126, %127 : vector<32x128xf32>
    %129 = arith.mulf %122, %110 : vector<32x128xf32>
    %130 = arith.mulf %121, %128 : vector<32x128xf32>
    %131 = arith.addf %129, %130 : vector<32x128xf32>
    %132 = math.tanh %131 : vector<32x128xf32>
    %133 = arith.mulf %123, %132 : vector<32x128xf32>
    %c0_41 = arith.constant 0 : index
    %c768 = arith.constant 768 : index
    %134 = vector.load %arg8[%c0_41, %c768] : memref<128x1024xf32, #tpu.memory_space<vmem>>, vector<128x128xf32>
    %cst_42 = arith.constant dense<0.000000e+00> : vector<128x128xf32>
    %135 = tpu.matmul %8, %133, %cst_42 {dimension_numbers = #tpu.dot_dimension_numbers<[1], [0], [0], [1], [0, 0, 1, 1], [], []>} : vector<128x32xf32>, vector<32x128xf32>, vector<128x128xf32> -> vector<128x128xf32>
    %136 = arith.addf %135, %134 : vector<128x128xf32>
    %137 = arith.negf %136 : vector<128x128xf32>
    %138 = math.exp %137 : vector<128x128xf32>
    %cst_43 = arith.constant 1.000000e+00 : f32
    %139 = vector.broadcast %cst_43 : f32 to vector<128x128xf32>
    %140 = arith.addf %139, %138 : vector<128x128xf32>
    %141 = arith.divf %139, %140 : vector<128x128xf32>
    %142 = vector.extract_strided_slice %141 {offsets = [0, 0], sizes = [32, 128], strides = [1, 1]} : vector<128x128xf32> to vector<32x128xf32>
    %143 = vector.extract_strided_slice %141 {offsets = [32, 0], sizes = [32, 128], strides = [1, 1]} : vector<128x128xf32> to vector<32x128xf32>
    %144 = vector.extract_strided_slice %141 {offsets = [64, 0], sizes = [32, 128], strides = [1, 1]} : vector<128x128xf32> to vector<32x128xf32>
    %145 = vector.extract_strided_slice %141 {offsets = [96, 0], sizes = [32, 128], strides = [1, 1]} : vector<128x128xf32> to vector<32x128xf32>
    %cst_44 = arith.constant 2.000000e+00 : f32
    %146 = vector.broadcast %cst_44 : f32 to vector<32x128xf32>
    %147 = arith.mulf %146, %145 : vector<32x128xf32>
    %cst_45 = arith.constant 1.000000e+00 : f32
    %148 = vector.broadcast %cst_45 : f32 to vector<32x128xf32>
    %149 = arith.subf %147, %148 : vector<32x128xf32>
    %150 = arith.mulf %143, %131 : vector<32x128xf32>
    %151 = arith.mulf %142, %149 : vector<32x128xf32>
    %152 = arith.addf %150, %151 : vector<32x128xf32>
    %153 = math.tanh %152 : vector<32x128xf32>
    %154 = arith.mulf %144, %153 : vector<32x128xf32>
    %c0_46 = arith.constant 0 : index
    %c896 = arith.constant 896 : index
    %155 = vector.load %arg8[%c0_46, %c896] : memref<128x1024xf32, #tpu.memory_space<vmem>>, vector<128x128xf32>
    %cst_47 = arith.constant dense<0.000000e+00> : vector<128x128xf32>
    %156 = tpu.matmul %8, %154, %cst_47 {dimension_numbers = #tpu.dot_dimension_numbers<[1], [0], [0], [1], [0, 0, 1, 1], [], []>} : vector<128x32xf32>, vector<32x128xf32>, vector<128x128xf32> -> vector<128x128xf32>
    %157 = arith.addf %156, %155 : vector<128x128xf32>
    %158 = arith.negf %157 : vector<128x128xf32>
    %159 = math.exp %158 : vector<128x128xf32>
    %cst_48 = arith.constant 1.000000e+00 : f32
    %160 = vector.broadcast %cst_48 : f32 to vector<128x128xf32>
    %161 = arith.addf %160, %159 : vector<128x128xf32>
    %162 = arith.divf %160, %161 : vector<128x128xf32>
    %163 = vector.extract_strided_slice %162 {offsets = [0, 0], sizes = [32, 128], strides = [1, 1]} : vector<128x128xf32> to vector<32x128xf32>
    %164 = vector.extract_strided_slice %162 {offsets = [32, 0], sizes = [32, 128], strides = [1, 1]} : vector<128x128xf32> to vector<32x128xf32>
    %165 = vector.extract_strided_slice %162 {offsets = [64, 0], sizes = [32, 128], strides = [1, 1]} : vector<128x128xf32> to vector<32x128xf32>
    %166 = vector.extract_strided_slice %162 {offsets = [96, 0], sizes = [32, 128], strides = [1, 1]} : vector<128x128xf32> to vector<32x128xf32>
    %cst_49 = arith.constant 2.000000e+00 : f32
    %167 = vector.broadcast %cst_49 : f32 to vector<32x128xf32>
    %168 = arith.mulf %167, %166 : vector<32x128xf32>
    %cst_50 = arith.constant 1.000000e+00 : f32
    %169 = vector.broadcast %cst_50 : f32 to vector<32x128xf32>
    %170 = arith.subf %168, %169 : vector<32x128xf32>
    %171 = arith.mulf %164, %152 : vector<32x128xf32>
    %172 = arith.mulf %163, %170 : vector<32x128xf32>
    %173 = arith.addf %171, %172 : vector<32x128xf32>
    %174 = math.tanh %173 : vector<32x128xf32>
    %175 = arith.mulf %165, %174 : vector<32x128xf32>
    %c0_51 = arith.constant 0 : index
    %c0_52 = arith.constant 0 : index
    %176 = vector.load %arg5[%c0_51, %c0_52] : memref<24x32xf32, #tpu.memory_space<vmem>>, vector<24x32xf32>
    %cst_53 = arith.constant dense<0.000000e+00> : vector<24x128xf32>
    %177 = tpu.matmul %176, %175, %cst_53 {dimension_numbers = #tpu.dot_dimension_numbers<[1], [0], [0], [1], [0, 0, 1, 1], [], []>} : vector<24x32xf32>, vector<32x128xf32>, vector<24x128xf32> -> vector<24x128xf32>
    %c0_54 = arith.constant 0 : index
    %c0_55 = arith.constant 0 : index
    %178 = vector.load %arg6[%c0_54, %c0_55] : memref<24x1xf32, #tpu.memory_space<vmem>>, vector<24x1xf32>
    %179 = vector.broadcast %178 : vector<24x1xf32> to vector<24x128xf32>
    %180 = arith.addf %177, %179 : vector<24x128xf32>
    %c0_56 = arith.constant 0 : index
    %c0_57 = arith.constant 0 : index
    %c0_58 = arith.constant 0 : index
    %181 = vector.load %arg7[%c0_56, %c0_57, %c0_58] : memref<1x24x128xf32, #tpu.memory_space<vmem>>, vector<1x24x128xf32>
    %182 = vector.shape_cast %181 : vector<1x24x128xf32> to vector<24x128xf32>
    %183 = vector.shape_cast %180 : vector<24x128xf32> to vector<1x24x128xf32>
    tpu.vector_store %arg7[%c0_56, %c0_57, %c0_58], %183 {strides = array<i32>} : memref<1x24x128xf32, #tpu.memory_space<vmem>>, vector<1x24x128xf32>,
    return
  }
  func.func @transform_0(%arg0: i32) -> (i32, i32, i32) {
    %c0_i32 = arith.constant 0 : i32
    %c0_i32_0 = arith.constant 0 : i32
    %c0_i32_1 = arith.constant 0 : i32
    return %arg0, %c0_i32, %c0_i32_0 : i32, i32, i32
  }
  func.func @transform_1(%arg0: i32) -> (i32, i32) {
    %c0_i32 = arith.constant 0 : i32
    %c0_i32_0 = arith.constant 0 : i32
    %c0_i32_1 = arith.constant 0 : i32
    return %c0_i32, %c0_i32_0 : i32, i32
  }
  func.func @transform_2(%arg0: i32) -> (i32, i32) {
    %c0_i32 = arith.constant 0 : i32
    %c0_i32_0 = arith.constant 0 : i32
    %c0_i32_1 = arith.constant 0 : i32
    return %c0_i32, %c0_i32_0 : i32, i32
  }
  func.func @transform_3(%arg0: i32) -> (i32, i32) {
    %c0_i32 = arith.constant 0 : i32
    %c0_i32_0 = arith.constant 0 : i32
    %c0_i32_1 = arith.constant 0 : i32
    return %c0_i32, %c0_i32_0 : i32, i32
  }
  func.func @transform_4(%arg0: i32) -> (i32, i32) {
    %c0_i32 = arith.constant 0 : i32
    %c0_i32_0 = arith.constant 0 : i32
    %c0_i32_1 = arith.constant 0 : i32
    return %c0_i32, %c0_i32_0 : i32, i32
  }
  func.func @transform_5(%arg0: i32) -> (i32, i32) {
    %c0_i32 = arith.constant 0 : i32
    %c0_i32_0 = arith.constant 0 : i32
    %c0_i32_1 = arith.constant 0 : i32
    return %c0_i32, %c0_i32_0 : i32, i32
  }
  func.func @transform_6(%arg0: i32) -> (i32, i32, i32) {
    %c0_i32 = arith.constant 0 : i32
    %c0_i32_0 = arith.constant 0 : i32
    %c0_i32_1 = arith.constant 0 : i32
    return %arg0, %c0_i32, %c0_i32_0 : i32, i32, i32
  }
}

</mosaic_0001>

<bundles_post_ra>
// kernel: lstm_model_forward.1
= control target key start
LH: loop header
LB: loop body
LE: loop exit
PB: predicated region body
PF: predicated region fallthrough
CT: control target
= control target key end

     0   :  { %v6242_v3 = vmov 0.0   ;;  %v4721_v6 = vmov 0   ;;  %vm159_vm0 = vcmask 195584   ;;  %vm1152_vm1 = vcmask 261120   ;;  %s6235_s0 = inlined_call_operand.vmem [shape: f32[1,24,1024], index: 0, kind: input, shape index: {}]   ;;  %s6236_s1 = inlined_call_operand.vmem [shape: f32[128,24], index: 1, kind: input, shape index: {}]   ;;  %s6237_s3 = inlined_call_operand.vmem [shape: f32[128,1], index: 3, kind: input, shape index: {}]   ;;  %s6238_s5 = inlined_call_operand.vmem [shape: f32[24,1], index: 5, kind: input, shape index: {}]   ;;  %s6239_s2 = inlined_call_operand.vmem [shape: f32[128,32], index: 2, kind: input, shape index: {}]   ;;  %s6240_s4 = inlined_call_operand.vmem [shape: f32[24,32], index: 4, kind: input, shape index: {}]   ;;  %s6241_s6 = inlined_call_operand.vmem [shape: f32[1,24,128], index: 6, kind: output, shape index: {}]  }
   0x1   :  { %v40_v0 = vld [vmem:[%s6235_s0 + $0x8] sm:$0xff]  ;;  %v39_v2 = vld [vmem:[%s6235_s0] sm:$0xff]  ;;  %272 = vmatprep.mubr.f32.mxu0 %v6242_v3  ;;  %356 = vmatprep.mubr.f32.mxu1 %v6242_v3  ;;  %v42_v9 = vld [vmem:[%s6235_s0 + $0x18] sm:$0xff]  ;;  %vm4723_vm2 = vmmov 0  }
   0x2   :  { %v48_v1 = vld [vmem:[%s6235_s0 + $0x48] sm:$0xff]  ;;  %v47_v5 = vld [vmem:[%s6235_s0 + $0x40] sm:$0xff]  ;;  %4110 = vset.pattern.permute.xlu0 %v4721_v6  ;;  %4111 = vset.pattern.permute.xlu1 %v4721_v6  ;;  %v50_v10 = vld [vmem:[%s6235_s0 + $0x58] sm:$0xff] }
   0x3   :  { %v4024_v4 = vpack.c.bf16 %v48_v1, %v40_v0  ;;  %v4026_v7 = vpack.c.bf16 %v47_v5, %v39_v2  ;;  %v56_v8 = vld [vmem:[%s6235_s0 + $0x88] sm:$0xff]  ;;  %v41_v11 = vld [vmem:[%s6235_s0 + $0x10] sm:$0xff]  ;;  %v55_v13 = vld [vmem:[%s6235_s0 + $0x80] sm:$0xff]  ;;  %v4028_v16 = vpack.c.bf16 %v50_v10, %v42_v9 }
   0x4   :  { %v49_v12 = vld [vmem:[%s6235_s0 + $0x50] sm:$0xff]  ;;  %v4794_v14 = vld [vmem:[%s6236_s1] sm:$0xff]  ;;  %v58_v18 = vld [vmem:[%s6235_s0 + $0x98] sm:$0xff] }
   0x5   :  { %4025 = vmatprep.subr.bf16.mxu0 %v4024_v4  ;;  %4102 = vmatprep.subr.bf16.mxu1 %v4024_v4  ;;  %v4799_v15 = vld [vmem:[%s6236_s1 + $0x70] sm:$0xff]  ;;  %v4030_v17 = vpack.c.bf16 %v49_v12, %v41_v11  ;;  %v44_v19 = vld [vmem:[%s6235_s0 + $0x28] sm:$0xff]  ;;  %v43_v21 = vld [vmem:[%s6235_s0 + $0x20] sm:$0xff] }
   0x6   :  { %4027 = vmatpush1.bf16.msra.mxu0 %v4026_v7  ;;  %4104 = vmatpush1.bf16.msra.mxu1 %v4026_v7  ;;  %v52_v20 = vld [vmem:[%s6235_s0 + $0x68] sm:$0xff]  ;;  %v4826_v23 = vld [vmem:[%s6236_s1 + $0x78] sm:$0xff]  ;;  %v51_v25 = vld [vmem:[%s6235_s0 + $0x60] sm:$0xff] }
   0x7   :  { %212 = vmatprep.subr.mxu0 %v56_v8  ;;  %4103 = vmatprep.subr.mxu1 %v56_v8  ;;  %v4821_v22 = vld [vmem:[%s6236_s1 + $0x8] sm:$0xff]  ;;  %v4032_v24 = vpack.c.bf16 %v52_v20, %v44_v19  ;;  %v4034_v26 = vpack.c.bf16 %v51_v25, %v43_v21  ;;  %v46_v27 = vld [vmem:[%s6235_s0 + $0x38] sm:$0xff]  ;;  %v57_v29 = vld [vmem:[%s6235_s0 + $0x90] sm:$0xff] }
   0x8   :  { %v54_v28 = vld [vmem:[%s6235_s0 + $0x78] sm:$0xff]  ;;  %v45_v31 = vld [vmem:[%s6235_s0 + $0x30] sm:$0xff]  ;;  %v60_v33 = vld [vmem:[%s6235_s0 + $0xa8] sm:$0xff] }
   0x9   :  { %v4036_v30 = vpack.c.bf16 %v54_v28, %v46_v27  ;;  %v53_v32 = vld [vmem:[%s6235_s0 + $0x70] sm:$0xff]  ;;  %v59_v36 = vld [vmem:[%s6235_s0 + $0xa0] sm:$0xff]  ;;  %v62_v37 = vld [vmem:[%s6235_s0 + $0xb8] sm:$0xff] }
   0xa   :  { %213 = vmatpush1.msra.mxu0 %v55_v13  ;;  %4105 = vmatpush1.msra.mxu1 %v55_v13  ;;  %v4859_v34 = vld [vmem:[%s6236_s1 + $0x10] sm:$0xff]  ;;  %v4038_v35 = vpack.c.bf16 %v53_v32, %v45_v31  ;;  %v75_v38 = vld [vmem:[%s6237_s3 + $0x60] sm:$0xff]  ;;  %v4879_v39 = vld [vmem:[%s6236_s1 + $0x18] sm:$0xff] }
   0xb   :  { %3297 = vmatmul.mubr.msk.f32.vlgmr.msra.gmra.mrb[0].mxu0 %vm159_vm0, %v4794_v14  ;;  %3311 = vmatmul.mubr.msk.f32.vlgmr.msra.gmra.mrb[0].mxu1 %vm159_vm0, %v4799_v15  ;;  %v61_v40 = vld [vmem:[%s6235_s0 + $0xb0] sm:$0xff]  ;;  %v63_v41 = vld [vmem:[%s6237_s3] sm:$0xff]  ;;  %v76_v42 = vld [vmem:[%s6237_s3 + $0x68] sm:$0xff] }
   0xc   :  { %4029 = vmatprep.subr.bf16.mxu1 %v4028_v16  ;;  %278 = vmatprep.mubr.f32.mxu0 %v6242_v3  ;;  %v4899_v43 = vld [vmem:[%s6236_s1 + $0x20] sm:$0xff]  ;;  %v64_v44 = vld [vmem:[%s6237_s3 + $0x8] sm:$0xff]  ;;  %v77_v48 = vld [vmem:[%s6237_s3 + $0x70] sm:$0xff] }
   0xd   :  { %362 = vmatprep.mubr.f32.mxu1 %v6242_v3  ;;  %4031 = vmatpush1.bf16.msra.mxu1 %v4030_v17  ;;  %v67_v45 = vld [vmem:[%s6237_s3 + $0x20] sm:$0xff]  ;;  %v4916_v46 = vld [vmem:[%s6236_s1 + $0x28] sm:$0xff]  ;;  %v4933_v49 = vld [vmem:[%s6236_s1 + $0x30] sm:$0xff] }
   0xe   :  { %373 = vmatprep.subr.mxu1 %v58_v18  ;;  %4033 = vmatprep.subr.bf16.mxu0 %v4032_v24  ;;  %v68_v47 = vld [vmem:[%s6237_s3 + $0x28] sm:$0xff]  ;;  %v78_v50 = vld [vmem:[%s6237_s3 + $0x78] sm:$0xff]  ;;  %v65_v51 = vld [vmem:[%s6237_s3 + $0x10] sm:$0xff] }
   0xf   :  { %3298 = vmatmul.mubr.msk.f32.gmra.mrb[2].mxu0 %vm159_vm0, %v4821_v22  ;;  %3312 = vmatmul.mubr.msk.f32.gmra.mrb[2].mxu1 %vm159_vm0, %v4826_v23  ;;  %v4950_v52 = vld [vmem:[%s6236_s1 + $0x38] sm:$0xff]  ;;  %v69_v54 = vld [vmem:[%s6237_s3 + $0x30] sm:$0xff]  ;;  %v4967_v55 = vld [vmem:[%s6236_s1 + $0x40] sm:$0xff] }
  0x10   :  { %284 = vmatprep.mubr.f32.mxu0 %v6242_v3  ;;  %433 = vmatprep.mubr.f32.mxu1 %v6242_v3  ;;  %v66_v53 = vld [vmem:[%s6237_s3 + $0x18] sm:$0xff]  ;;  %v71_v57 = vld [vmem:[%s6237_s3 + $0x40] sm:$0xff]  ;;  %v4984_v58 = vld [vmem:[%s6236_s1 + $0x48] sm:$0xff] }
  0x11   :  { %374 = vmatpush1.msra.mxu1 %v57_v29  ;;  %4035 = vmatpush1.bf16.msra.mxu0 %v4034_v26  ;;  %v70_v56 = vld [vmem:[%s6237_s3 + $0x38] sm:$0xff]  ;;  %v72_v59 = vld [vmem:[%s6237_s3 + $0x48] sm:$0xff]  ;;  %v73_v60 = vld [vmem:[%s6237_s3 + $0x50] sm:$0xff] }
  0x12   :  { %534 = vmatprep.subr.mxu0 %v60_v33  ;;  %4037 = vmatprep.subr.bf16.mxu1 %v4036_v30  ;;  %v5001_v61 = vld [vmem:[%s6236_s1 + $0x50] sm:$0xff]  ;;  %v74_v62 = vld [vmem:[%s6237_s3 + $0x58] sm:$0xff]  ;;  %v3183_v63 = vld [vmem:[%s6238_s5] sm:$0xff] }
  0x13   :  { %3299 = vmatmul.mubr.msk.f32.gmra.mrb[4].mxu0 %vm159_vm0, %v4859_v34  ;;  %3313 = vmatmul.mubr.msk.f32.vlgmr.msra.gmra.mrb[4].mxu1 %vm159_vm0, %v4794_v14  ;;  %v5018_v0 = vld [vmem:[%s6236_s1 + $0x58] sm:$0xff]  ;;  %v3184_v1 = vld [vmem:[%s6238_s5 + $0x8] sm:$0xff]  ;;  %v3185_v2 = vld [vmem:[%s6238_s5 + $0x10] sm:$0xff] }
  0x14   :  { %290 = vmatprep.mubr.f32.mxu0 %v6242_v3  ;;  %439 = vmatprep.mubr.f32.mxu1 %v6242_v3  ;;  %v5035_v4 = vld [vmem:[%s6236_s1 + $0x60] sm:$0xff]  ;;  %v5046_v5 = vld [vmem:[%s6236_s1 + $0x68] sm:$0xff] }
  0x15   :  { %535 = vmatpush1.msra.mxu0 %v59_v36  ;;  %4039 = vmatpush1.bf16.msra.mxu1 %v4038_v35  ;;  %v5167_v8 = vld [vmem:[%s6239_s2] sm:$0xff] }
  0x16   :  { %695 = vmatprep.subr.mxu1 %v62_v37  ;;  %141 = vperm.xlu0 %4110, %v75_v38  }
  0x17   :  { %3300 = vmatmul.mubr.msk.f32.gmra.mrb[6].mxu0 %vm159_vm0, %v4879_v39  ;;  %3314 = vmatmul.mubr.msk.f32.gmra.mrb[6].mxu1 %vm159_vm0, %v4821_v22 }
  0x18   :  { %296 = vmatprep.mubr.f32.mxu0 %v6242_v3  ;;  %445 = vmatprep.mubr.f32.mxu1 %v6242_v3 }
  0x19   :  { %696 = vmatpush1.msra.mxu1 %v61_v40  ;;  %81 = vperm.xlu1 %4111, %v63_v41  }
  0x1a   :  { %146 = vperm.xlu0 %4110, %v76_v42  }
  0x1b   :  { %3301 = vmatmul.mubr.msk.f32.gmra.mrb[8].mxu0 %vm159_vm0, %v4899_v43  ;;  %3315 = vmatmul.mubr.msk.f32.gmra.mrb[8].mxu1 %vm159_vm0, %v4859_v34 }
  0x1c   :  { %302 = vmatprep.mubr.f32.mxu0 %v6242_v3  ;;  %451 = vmatprep.mubr.f32.mxu1 %v6242_v3 }
  0x1d   :  { %86 = vperm.xlu1 %4111, %v64_v44  }
  0x1e   :  { %101 = vperm.xlu0 %4110, %v67_v45  }
  0x1f   :  { %3302 = vmatmul.mubr.msk.f32.gmra.mrb[10].mxu0 %vm159_vm0, %v4916_v46  ;;  %3316 = vmatmul.mubr.msk.f32.gmra.mrb[10].mxu1 %vm159_vm0, %v4879_v39 }
  0x20   :  { %308 = vmatprep.mubr.f32.mxu0 %v6242_v3  ;;  %457 = vmatprep.mubr.f32.mxu1 %v6242_v3 }
  0x21   :  { %106 = vperm.xlu1 %4111, %v68_v47  }
  0x22   :  { %151 = vperm.xlu0 %4110, %v77_v48  }
  0x23   :  { %3303 = vmatmul.mubr.msk.f32.gmra.mrb[12].mxu0 %vm159_vm0, %v4933_v49  ;;  %3317 = vmatmul.mubr.msk.f32.gmra.mrb[12].mxu1 %vm159_vm0, %v4899_v43 }
  0x24   :  { %314 = vmatprep.mubr.f32.mxu0 %v6242_v3  ;;  %463 = vmatprep.mubr.f32.mxu1 %v6242_v3 }
  0x25   :  { %156 = vperm.xlu1 %4111, %v78_v50  }
  0x26   :  { %91 = vperm.xlu0 %4110, %v65_v51  }
  0x27   :  { %3304 = vmatmul.mubr.msk.f32.gmra.mrb[14].mxu0 %vm159_vm0, %v4950_v52  ;;  %3318 = vmatmul.mubr.msk.f32.gmra.mrb[14].mxu1 %vm159_vm0, %v4916_v46 }
  0x28   :  { %320 = vmatprep.mubr.f32.mxu0 %v6242_v3  ;;  %469 = vmatprep.mubr.f32.mxu1 %v6242_v3 }
  0x29   :  { %96 = vperm.xlu1 %4111, %v66_v53  }
  0x2a   :  { %111 = vperm.xlu0 %4110, %v69_v54  }
  0x2b   :  { %3305 = vmatmul.mubr.msk.f32.gmra.mrb[16].mxu0 %vm159_vm0, %v4967_v55  ;;  %3319 = vmatmul.mubr.msk.f32.gmra.mrb[16].mxu1 %vm159_vm0, %v4933_v49 }
  0x2c   :  { %326 = vmatprep.mubr.f32.mxu0 %v6242_v3  ;;  %475 = vmatprep.mubr.f32.mxu1 %v6242_v3 }
  0x2d   :  { %116 = vperm.xlu1 %4111, %v70_v56  }
  0x2e   :  { %121 = vperm.xlu0 %4110, %v71_v57  }
  0x2f   :  { %3306 = vmatmul.mubr.msk.f32.gmra.mrb[18].mxu0 %vm159_vm0, %v4984_v58  ;;  %3320 = vmatmul.mubr.msk.f32.gmra.mrb[18].mxu1 %vm159_vm0, %v4950_v52 }
  0x30   :  { %332 = vmatprep.mubr.f32.mxu0 %v6242_v3  ;;  %481 = vmatprep.mubr.f32.mxu1 %v6242_v3 }
  0x31   :  { %126 = vperm.xlu1 %4111, %v72_v59  }
  0x32   :  { %131 = vperm.xlu0 %4110, %v73_v60  }
  0x33   :  { %3307 = vmatmul.mubr.msk.f32.gmra.mrb[20].mxu0 %vm159_vm0, %v5001_v61  ;;  %3321 = vmatmul.mubr.msk.f32.gmra.mrb[20].mxu1 %vm159_vm0, %v4967_v55 }
  0x34   :  { %338 = vmatprep.mubr.f32.mxu0 %v6242_v3  ;;  %487 = vmatprep.mubr.f32.mxu1 %v6242_v3 }
  0x35   :  { %136 = vperm.xlu1 %4111, %v74_v62  }
  0x36   :  { %3188 = vperm.xlu0 %4110, %v3183_v63  }
  0x37   :  { %3308 = vmatmul.mubr.msk.f32.gmra.mrb[22].mxu0 %vm159_vm0, %v5018_v0  ;;  %3322 = vmatmul.mubr.msk.f32.gmra.mrb[22].mxu1 %vm159_vm0, %v4984_v58 }
  0x38   :  { %344 = vmatprep.mubr.f32.mxu0 %v6242_v3  ;;  %493 = vmatprep.mubr.f32.mxu1 %v6242_v3 }
  0x39   :  { %3193 = vperm.xlu1 %4111, %v3184_v1  }
  0x3a   :  { %3198 = vperm.xlu0 %4110, %v3185_v2  }
  0x3b   :  { %3309 = vmatmul.mubr.msk.f32.gmra.mrb[24].mxu0 %vm159_vm0, %v5035_v4  ;;  %3323 = vmatmul.mubr.msk.f32.gmra.mrb[24].mxu1 %vm159_vm0, %v5001_v61 }
  0x3c   :  { %350 = vmatprep.mubr.f32.mxu0 %v6242_v3  ;;  %499 = vmatprep.mubr.f32.mxu1 %v6242_v3 }
  0x3f   :  { %3310 = vmatmul.mubr.msk.f32.gmra.mrb[26].mxu0 %vm159_vm0, %v5046_v5  ;;  %3324 = vmatmul.mubr.msk.f32.gmra.mrb[26].mxu1 %vm159_vm0, %v5018_v0 }
  0x40   :  { %505 = vmatprep.mubr.f32.mxu1 %v6242_v3  ;;  %594 = vmatprep.mubr.f32.mxu0 %v6242_v3 }
  0x43   :  { %3325 = vmatmul.mubr.msk.f32.gmra.mrb[28].mxu1 %vm159_vm0, %v5035_v4  ;;  %3329 = vmatmul.mubr.msk.f32.vlgmr.msra.gmra.mrb[28].mxu0 %vm159_vm0, %v4794_v14 }
  0x44   :  { %511 = vmatprep.mubr.f32.mxu1 %v6242_v3  ;;  %600 = vmatprep.mubr.f32.mxu0 %v6242_v3 }
  0x47   :  { %3326 = vmatmul.mubr.msk.f32.gmra.mrb[30].mxu1 %vm159_vm0, %v5046_v5  ;;  %3330 = vmatmul.mubr.msk.f32.gmra.mrb[30].mxu0 %vm159_vm0, %v4821_v22 }
  0x48   :  { %517 = vmatprep.mubr.f32.mxu1 %v6242_v3  ;;  %606 = vmatprep.mubr.f32.mxu0 %v6242_v3 }
  0x4b   :  { %3327 = vmatmul.mubr.msk.f32.gmra.mrb[32].mxu1 %vm159_vm0, %v4799_v15  ;;  %3331 = vmatmul.mubr.msk.f32.gmra.mrb[32].mxu0 %vm159_vm0, %v4859_v34 }
  0x4c   :  { %523 = vmatprep.mubr.f32.mxu1 %v6242_v3  ;;  %612 = vmatprep.mubr.f32.mxu0 %v6242_v3 }
  0x4f   :  { %3328 = vmatmul.mubr.msk.f32.gmra.mrb[34].mxu1 %vm159_vm0, %v4826_v23  ;;  %3332 = vmatmul.mubr.msk.f32.gmra.mrb[34].mxu0 %vm159_vm0, %v4879_v39 }
  0x50   :  { %618 = vmatprep.mubr.f32.mxu0 %v6242_v3  ;;  %755 = vmatprep.mubr.f32.mxu1 %v6242_v3 }
  0x53   :  { %3333 = vmatmul.mubr.msk.f32.gmra.mrb[36].mxu0 %vm159_vm0, %v4899_v43  ;;  %3345 = vmatmul.mubr.msk.f32.vlgmr.msra.gmra.mrb[36].mxu1 %vm159_vm0, %v4794_v14 }
  0x54   :  { %624 = vmatprep.mubr.f32.mxu0 %v6242_v3  ;;  %761 = vmatprep.mubr.f32.mxu1 %v6242_v3 }
  0x57   :  { %3334 = vmatmul.mubr.msk.f32.gmra.mrb[38].mxu0 %vm159_vm0, %v4916_v46  ;;  %3346 = vmatmul.mubr.msk.f32.gmra.mrb[38].mxu1 %vm159_vm0, %v4821_v22 }
  0x58   :  { %630 = vmatprep.mubr.f32.mxu0 %v6242_v3  ;;  %767 = vmatprep.mubr.f32.mxu1 %v6242_v3 }
  0x5b   :  { %3335 = vmatmul.mubr.msk.f32.gmra.mrb[40].mxu0 %vm159_vm0, %v4933_v49  ;;  %3347 = vmatmul.mubr.msk.f32.gmra.mrb[40].mxu1 %vm159_vm0, %v4859_v34 }
  0x5c   :  { %636 = vmatprep.mubr.f32.mxu0 %v6242_v3  ;;  %773 = vmatprep.mubr.f32.mxu1 %v6242_v3 }
  0x5f   :  { %3336 = vmatmul.mubr.msk.f32.gmra.mrb[42].mxu0 %vm159_vm0, %v4950_v52  ;;  %3348 = vmatmul.mubr.msk.f32.gmra.mrb[42].mxu1 %vm159_vm0, %v4879_v39 }
  0x60   :  { %642 = vmatprep.mubr.f32.mxu0 %v6242_v3  ;;  %779 = vmatprep.mubr.f32.mxu1 %v6242_v3 }
  0x63   :  { %3337 = vmatmul.mubr.msk.f32.gmra.mrb[44].mxu0 %vm159_vm0, %v4967_v55  ;;  %3349 = vmatmul.mubr.msk.f32.gmra.mrb[44].mxu1 %vm159_vm0, %v4899_v43 }
  0x64   :  { %648 = vmatprep.mubr.f32.mxu0 %v6242_v3  ;;  %785 = vmatprep.mubr.f32.mxu1 %v6242_v3 }
  0x67   :  { %3338 = vmatmul.mubr.msk.f32.gmra.mrb[46].mxu0 %vm159_vm0, %v4984_v58  ;;  %3350 = vmatmul.mubr.msk.f32.gmra.mrb[46].mxu1 %vm159_vm0, %v4916_v46 }
  0x68   :  { %654 = vmatprep.mubr.f32.mxu0 %v6242_v3  ;;  %791 = vmatprep.mubr.f32.mxu1 %v6242_v3 }
  0x6b   :  { %3339 = vmatmul.mubr.msk.f32.gmra.mrb[48].mxu0 %vm159_vm0, %v5001_v61  ;;  %3351 = vmatmul.mubr.msk.f32.gmra.mrb[48].mxu1 %vm159_vm0, %v4933_v49 }
  0x6c   :  { %660 = vmatprep.mubr.f32.mxu0 %v6242_v3  ;;  %797 = vmatprep.mubr.f32.mxu1 %v6242_v3 }
  0x6f   :  { %3340 = vmatmul.mubr.msk.f32.gmra.mrb[50].mxu0 %vm159_vm0, %v5018_v0  ;;  %3352 = vmatmul.mubr.msk.f32.gmra.mrb[50].mxu1 %vm159_vm0, %v4950_v52 }
  0x70   :  { %666 = vmatprep.mubr.f32.mxu0 %v6242_v3  ;;  %803 = vmatprep.mubr.f32.mxu1 %v6242_v3 }
  0x73   :  { %3341 = vmatmul.mubr.msk.f32.gmra.mrb[52].mxu0 %vm159_vm0, %v5035_v4  ;;  %3353 = vmatmul.mubr.msk.f32.gmra.mrb[52].mxu1 %vm159_vm0, %v4967_v55 }
  0x74   :  { %672 = vmatprep.mubr.f32.mxu0 %v6242_v3  ;;  %809 = vmatprep.mubr.f32.mxu1 %v6242_v3 }
  0x77   :  { %3342 = vmatmul.mubr.msk.f32.gmra.mrb[54].mxu0 %vm159_vm0, %v5046_v5  ;;  %3354 = vmatmul.mubr.msk.f32.gmra.mrb[54].mxu1 %vm159_vm0, %v4984_v58 }
  0x78   :  { %678 = vmatprep.mubr.f32.mxu0 %v6242_v3  ;;  %815 = vmatprep.mubr.f32.mxu1 %v6242_v3 }
  0x7b   :  { %3343 = vmatmul.mubr.msk.f32.gmra.mrb[56].mxu0 %vm159_vm0, %v4799_v15  ;;  %3355 = vmatmul.mubr.msk.f32.gmra.mrb[56].mxu1 %vm159_vm0, %v5001_v61 }
  0x7c   :  { %684 = vmatprep.mubr.f32.mxu0 %v6242_v3  ;;  %821 = vmatprep.mubr.f32.mxu1 %v6242_v3 }
  0x7f   :  { %3344 = vmatmul.mubr.msk.f32.gmra.mrb[58].mxu0 %vm159_vm0, %v4826_v23  ;;  %3356 = vmatmul.mubr.msk.f32.gmra.mrb[58].mxu1 %vm159_vm0, %v5018_v0 }
  0x80   :  { %827 = vmatprep.mubr.f32.mxu1 %v6242_v3  ;;  %3791 = vmatprep.mubr.msk.f32.mxu0 %vm1152_vm1, %v5167_v8 }
  0x83   :  { %3357 = vmatmul.mubr.msk.f32.gmra.mrb[60].mxu1 %vm159_vm0, %v5035_v4 }
  0x84   :  { %833 = vmatprep.mubr.f32.mxu1 %v6242_v3 }
  0x87   :  { %3358 = vmatmul.mubr.msk.f32.gmra.mrb[62].mxu1 %vm159_vm0, %v5046_v5 }
  0x88   :  { %839 = vmatprep.mubr.f32.mxu1 %v6242_v3 }
  0x8b   :  { %3359 = vmatmul.mubr.msk.f32.gmra.mrb[64].mxu1 %vm159_vm0, %v4799_v15 }
  0x8c   :  { %845 = vmatprep.mubr.f32.mxu1 %v6242_v3 }
  0x8f   :  { %3360 = vmatmul.mubr.msk.f32.gmra.mrb[66].mxu1 %vm159_vm0, %v4826_v23 }
  0x90   :  { %3823 = vmatprep.mubr.msk.f32.mxu1 %vm1152_vm1, %v5167_v8 }
  0x95   :  { %v5160_v6 = vpop.permute.xlu0 %141 }
  0x98   :  { %v5162_v7 = vpop.permute.xlu1 %81 }
  0x99   :  { %6248 = vst [vmem:[#allocation3_spill] sm:$0xff] %v5162_v7  ;;  %v5173_v9 = vpop.permute.xlu0 %146 }
  0x9c   :  { %v5175_v10 = vpop.permute.xlu1 %86 }
  0x9d   :  { %v5177_v11 = vpop.permute.xlu0 %101 }
  0x9e   :  { %6249 = vst [vmem:[#allocation4_spill] sm:$0xff] %v5177_v11 }
  0xa0   :  { %v5179_v12 = vpop.permute.xlu1 %106 }
  0xa1   :  { %v5181_v13 = vpop.permute.xlu0 %151 }
  0xa4   :  { %v5190_v19 = vpop.permute.xlu1 %156 }
  0xa5   :  { %v5199_v26 = vpop.permute.xlu0 %91 }
  0xa8   :  { %v5208_v33 = vpop.permute.xlu1 %96 }
  0xa9   :  { %v5233_v53 = vpop.permute.xlu0 %111 }
  0xac   :  { %v5242_v61 = vpop.permute.xlu1 %116 }
  0xde   :  { %v5183_v14 = vpop.f32.mrb[0].mxu0  ;;  %v358_v15 = vpop.f32.mrb[0].mxu1 }
  0xdf   :  { %v5185_v16 = vpop.f32.mrb[1].mxu0  ;;  %v359_v17 = vadd.f32 %v358_v15, %v5181_v13  ;;  %v5188_v18 = vpop.f32.mrb[1].mxu1 }
  0xe1   :  { %v3375_v20 = vmul.f32 -1.442695, %v359_v17 }
  0xe2   :  { %v5192_v21 = vpop.f32.mrb[2].mxu0  ;;  %v364_v22 = vpop.f32.mrb[2].mxu1 }
  0xe3   :  { %v5194_v23 = vpop.f32.mrb[3].mxu0  ;;  %v365_v24 = vadd.f32 %v364_v22, %v5190_v19  ;;  %v5197_v25 = vpop.f32.mrb[3].mxu1  ;;  %4112 = vpow2.f32 %v3375_v20 }
  0xe4   :  { %v5251_v22 = vpop.permute.xlu0 %121 }
  0xe5   :  { %v3376_v27 = vmul.f32 -1.442695, %v365_v24 }
  0xe6   :  { %v286_v28 = vpop.f32.mrb[4].mxu0  ;;  %v5201_v29 = vpop.f32.mrb[4].mxu1 }
  0xe7   :  { %6250 = vst [vmem:[#allocation5_spill] sm:$0xff] %v5201_v29  ;;  %v287_v30 = vadd.f32 %v286_v28, %v5199_v26  ;;  %v5204_v31 = vpop.f32.mrb[5].mxu0  ;;  %v5206_v32 = vpop.f32.mrb[5].mxu1  ;;  %4114 = vpow2.f32 %v3376_v27 }
  0xe8   :  { %6251 = vst [vmem:[#allocation6_spill] sm:$0xff] %v5206_v32 }
  0xe9   :  { %v3363_v34 = vmul.f32 -1.442695, %v287_v30 }
  0xea   :  { %v292_v35 = vpop.f32.mrb[6].mxu0  ;;  %v5210_v36 = vpop.f32.mrb[6].mxu1 }
  0xeb   :  { %4116 = vpow2.f32 %v3363_v34  ;;  %v293_v37 = vadd.f32 %v292_v35, %v5208_v33  ;;  %v5213_v38 = vpop.f32.mrb[7].mxu0  ;;  %v5215_v39 = vpop.f32.mrb[7].mxu1 }
  0xec   :  { %6252 = vst [vmem:[#allocation7_spill] sm:$0xff] %v5215_v39 }
  0xed   :  { %v3364_v40 = vmul.f32 -1.442695, %v293_v37  ;;  %v4113_v41 = vpop.eup %4112 }
  0xee   :  { %v5217_v42 = vpop.f32.mrb[8].mxu0  ;;  %v5219_v43 = vpop.f32.mrb[8].mxu1  ;;  %v1074_v44 = vadd.f32 1.0, %v4113_v41 }
  0xef   :  { %6253 = vst [vmem:[#allocation8_spill] sm:$0xff] %v5219_v43  ;;  %4118 = vpow2.f32 %v3364_v40  ;;  %v5221_v45 = vpop.f32.mrb[9].mxu0  ;;  %v5223_v46 = vpop.f32.mrb[9].mxu1 }
  0xf0   :  { %6254 = vst [vmem:[#allocation9_spill] sm:$0xff] %v5223_v46  ;;  %4120 = vrcp.f32 %v1074_v44  ;;  %v5261_v41 = vpop.permute.xlu1 %126 }
  0xf1   :  { %v4115_v47 = vpop.eup %4114 }
  0xf2   :  { %v5225_v48 = vpop.f32.mrb[10].mxu0  ;;  %v5227_v49 = vpop.f32.mrb[10].mxu1  ;;  %v1075_v50 = vadd.f32 1.0, %v4115_v47 }
  0xf3   :  { %6255 = vst [vmem:[#allocation10_spill] sm:$0xff] %v5227_v49  ;;  %v5229_v51 = vpop.f32.mrb[11].mxu0  ;;  %v5231_v52 = vpop.f32.mrb[11].mxu1 }
  0xf4   :  { %6256 = vst [vmem:[#allocation11_spill] sm:$0xff] %v5231_v52  ;;  %4122 = vrcp.f32 %v1075_v50 }
  0xf5   :  { %v4117_v54 = vpop.eup %4116 }
  0xf6   :  { %v1062_v55 = vadd.f32 1.0, %v4117_v54  ;;  %v310_v56 = vpop.f32.mrb[12].mxu0  ;;  %v5235_v57 = vpop.f32.mrb[12].mxu1 }
  0xf7   :  { %6257 = vst [vmem:[#allocation12_spill] sm:$0xff] %v5235_v57  ;;  %v311_v58 = vadd.f32 %v310_v56, %v5233_v53  ;;  %v5238_v59 = vpop.f32.mrb[13].mxu0  ;;  %v5240_v60 = vpop.f32.mrb[13].mxu1  ;;  %v295_v57 = vadd.f32 %v5213_v38, %v5208_v33 }
  0xf8   :  { %6258 = vst [vmem:[#allocation13_spill] sm:$0xff] %v5240_v60  ;;  %4124 = vrcp.f32 %v1062_v55 }
  0xf9   :  { %v4119_v62 = vpop.eup %4118  ;;  %v3367_v63 = vmul.f32 -1.442695, %v311_v58 }
  0xfa   :  { %v1063_v0 = vadd.f32 1.0, %v4119_v62  ;;  %v316_v1 = vpop.f32.mrb[14].mxu0  ;;  %v5244_v2 = vpop.f32.mrb[14].mxu1 }
  0xfb   :  { %6259 = vst [vmem:[#allocation14_spill] sm:$0xff] %v5244_v2  ;;  %v4121_v4 = vpop.eup %4120  ;;  %4126 = vpow2.f32 %v3367_v63  ;;  %v317_v5 = vadd.f32 %v316_v1, %v5242_v61  ;;  %v5247_v15 = vpop.f32.mrb[15].mxu0  ;;  %v289_v2 = vadd.f32 %v5204_v31, %v5199_v26  ;;  %v313_v31 = vadd.f32 %v5238_v59, %v5233_v53 }
  0xfc   :  { %v5249_v17 = vpop.f32.mrb[15].mxu1  ;;  %v1110_v20 = vmul.f32 2.0, %v4121_v4  ;;  %4128 = vrcp.f32 %v1063_v0  ;;  %v5271_v63 = vpop.permute.xlu0 %131  ;;  %v319_v38 = vadd.f32 %v5247_v15, %v5242_v61 }
  0xfd   :  { %6260 = vst [vmem:[#allocation15_spill] sm:$0xff] %v5249_v17  ;;  %v3368_v24 = vmul.f32 -1.442695, %v317_v5 }
  0xfe   :  { %v5253_v27 = vpop.f32.mrb[16].mxu0  ;;  %v5255_v28 = vpop.f32.mrb[16].mxu1  ;;  %v3379_v34 = vadd.f32 -1.0, %v1110_v20 }
  0xff   :  { %6261 = vst [vmem:[#allocation16_spill] sm:$0xff] %v5255_v28  ;;  %v4123_v30 = vpop.eup %4122  ;;  %4130 = vpow2.f32 %v3368_v24  ;;  %v5257_v35 = vpop.f32.mrb[17].mxu0 }
 0x100   :  { %v5259_v37 = vpop.f32.mrb[17].mxu1  ;;  %v1111_v40 = vmul.f32 2.0, %v4123_v30 }
 0x101   :  { %6262 = vst [vmem:[#allocation17_spill] sm:$0xff] %v5259_v37 }
 0x102   :  { %v4125_v44 = vpop.eup %4124  ;;  %v5263_v47 = vpop.f32.mrb[18].mxu0  ;;  %v3380_v54 = vadd.f32 -1.0, %v1111_v40  ;;  %v299_v40 = vadd.f32 %v5217_v42, %v5177_v11 }
 0x103   :  { %v5265_v50 = vpop.f32.mrb[18].mxu1  ;;  %v1122_v55 = vmul.f32 %v4125_v44, %v3379_v34  ;;  %v5267_v56 = vpop.f32.mrb[19].mxu0 }
 0x104   :  { %6263 = vst [vmem:[#allocation18_spill] sm:$0xff] %v5265_v50  ;;  %v5269_v58 = vpop.f32.mrb[19].mxu1  ;;  %v5282_v44 = vpop.permute.xlu1 %136 }
 0x105   :  { %6264 = vst [vmem:[#allocation19_spill] sm:$0xff] %v5269_v58  ;;  %v4127_v62 = vpop.eup %4126 }
 0x106   :  { %v4129_v0 = vpop.eup %4128  ;;  %v1066_v1 = vadd.f32 1.0, %v4127_v62  ;;  %v334_v4 = vpop.f32.mrb[20].mxu0  ;;  %v275_v62 = vadd.f32 %v5183_v14, %v5162_v7 }
 0x107   :  { %v5273_v5 = vpop.f32.mrb[20].mxu1  ;;  %v1123_v20 = vmul.f32 %v4129_v0, %v3380_v54  ;;  %v335_v24 = vadd.f32 %v334_v4, %v5271_v63  ;;  %v5276_v30 = vpop.f32.mrb[21].mxu0 }
 0x108   :  { %6265 = vst [vmem:[#allocation20_spill] sm:$0xff] %v5273_v5  ;;  %v5278_v3 = vpop.f32.mrb[21].mxu1  ;;  %4132 = vrcp.f32 %v1066_v1  ;;  %v3361_v17 = vmul.f32 -1.442695, %v275_v62  ;;  %v337_v59 = vadd.f32 %v5276_v30, %v5271_v63 }
 0x109   :  { %6266 = vst [vmem:[#allocation21_spill] sm:$0xff] %v5278_v3  ;;  %v4131_v34 = vpop.eup %4130  ;;  %v3371_v37 = vmul.f32 -1.442695, %v335_v24  ;;  %v3365_v3 = vmul.f32 -1.442695, %v299_v40  ;;  %v281_v24 = vadd.f32 %v5192_v21, %v5175_v10 }
 0x10a   :  { %v1067_v58 = vadd.f32 1.0, %v4131_v34  ;;  %v340_v60 = vpop.f32.mrb[22].mxu0  ;;  %v5286_v54 = vpop.f32.mrb[22].mxu1  ;;  %v305_v34 = vadd.f32 %v5225_v48, %v5179_v12 }
 0x10b   :  { %6267 = vst [vmem:[#allocation22_spill] sm:$0xff] %v5286_v54  ;;  %4134 = vpow2.f32 %v3371_v37  ;;  %v341_v0 = vadd.f32 %v340_v60, %v5282_v44  ;;  %v5289_v4 = vpop.f32.mrb[23].mxu0  ;;  %v5291_v1 = vpop.f32.mrb[23].mxu1  ;;  %v3362_v62 = vmul.f32 -1.442695, %v281_v24 }
 0x10c   :  { %6268 = vst [vmem:[#allocation23_spill] sm:$0xff] %v5291_v1  ;;  %4136 = vrcp.f32 %v1067_v58  ;;  %v3366_v1 = vmul.f32 -1.442695, %v305_v34  ;;  %v343_v15 = vadd.f32 %v5289_v4, %v5282_v44 }
 0x10d   :  { %v3372_v42 = vmul.f32 -1.442695, %v341_v0 }
 0x10e   :  { %v346_v46 = vpop.f32.mrb[24].mxu0  ;;  %v5295_v14 = vpop.f32.mrb[24].mxu1 }
 0x10f   :  { %6269 = vst [vmem:[#allocation24_spill] sm:$0xff] %v5295_v14  ;;  %4138 = vpow2.f32 %v3372_v42  ;;  %v347_v60 = vadd.f32 %v346_v46, %v5160_v6  ;;  %v5300_v37 = vpop.f32.mrb[25].mxu0  ;;  %v5302_v52 = vpop.f32.mrb[25].mxu1 }
 0x110   :  { %6270 = vst [vmem:[#allocation25_spill] sm:$0xff] %v5302_v52  ;;  %4140 = vpow2.f32 %v3365_v3 }
 0x111   :  { %v3373_v58 = vmul.f32 -1.442695, %v347_v60  ;;  %4142 = vpow2.f32 %v3361_v17 }
 0x112   :  { %v4133_v40 = vpop.eup %4132  ;;  %v352_v0 = vpop.f32.mrb[26].mxu0 }
 0x113   :  { %v5304_v21 = vpop.f32.mrb[26].mxu1  ;;  %v1118_v32 = vmul.f32 0.0, %v4133_v40  ;;  %4144 = vpow2.f32 %v3373_v58  ;;  %v353_v48 = vadd.f32 %v352_v0, %v5173_v9  ;;  %v5307_v42 = vpop.f32.mrb[27].mxu0 }
 0x114   :  { %6271 = vst [vmem:[#allocation26_spill] sm:$0xff] %v5304_v21  ;;  %v5309_v46 = vpop.f32.mrb[27].mxu1  ;;  %4146 = vpow2.f32 %v3362_v62 }
 0x115   :  { %6272 = vst [vmem:[#allocation27_spill] sm:$0xff] %v5309_v46  ;;  %v4135_v39 = vpop.eup %4134  ;;  %v5311_v14 = vadd.f32 %v1122_v55, %v1118_v32  ;;  %v3374_v3 = vmul.f32 -1.442695, %v353_v48  ;;  %4148 = vpow2.f32 %v3366_v1 }
 0x116   :  { %v4137_v60 = vpop.eup %4136  ;;  %v1070_v17 = vadd.f32 1.0, %v4135_v39  ;;  %v5313_v24 = vpop.f32.mrb[28].mxu1 }
 0x117   :  { %6273 = vst [vmem:[#allocation28_spill] sm:$0xff] %v5313_v24  ;;  %v5315_v52 = vpop.f32.mrb[28].mxu0  ;;  %v1119_v34 = vmul.f32 0.0, %v4137_v60  ;;  %v5317_v58 = vpop.f32.mrb[29].mxu1  ;;  %4150 = vtanh.f32 %v5311_v14 }
 0x118   :  { %6274 = vst [vmem:[#allocation29_spill] sm:$0xff] %v5315_v52  ;;  %6275 = vst [vmem:[#allocation30_spill] sm:$0xff] %v5317_v58  ;;  %v5319_v40 = vpop.f32.mrb[29].mxu0  ;;  %4152 = vpow2.f32 %v3374_v3  ;;  %v329_v52 = vadd.f32 %v5263_v47, %v5261_v41 }
 0x119   :  { %6276 = vst [vmem:[#allocation31_spill] sm:$0xff] %v5319_v40  ;;  %v4139_v0 = vpop.eup %4138  ;;  %v5322_v46 = vadd.f32 %v1123_v20, %v1119_v34  ;;  %4154 = vrcp.f32 %v1070_v17  ;;  %v323_v20 = vadd.f32 %v5253_v27, %v5251_v22 }
 0x11a   :  { %v1071_v32 = vadd.f32 1.0, %v4139_v0  ;;  %v5324_v55 = vpop.f32.mrb[30].mxu1  ;;  %v5326_v39 = vpop.f32.mrb[30].mxu0 }
 0x11b   :  { %6277 = vst [vmem:[#allocation32_spill] sm:$0xff] %v5324_v55  ;;  %6278 = vst [vmem:[#allocation33_spill] sm:$0xff] %v5326_v39  ;;  %v4141_v62 = vpop.eup %4140  ;;  %4156 = vtanh.f32 %v5322_v46  ;;  %v5329_v1 = vpop.f32.mrb[31].mxu1  ;;  %v3369_v24 = vmul.f32 -1.442695, %v323_v20 }
 0x11c   :  { %6279 = vst [vmem:[#allocation34_spill] sm:$0xff] %v5329_v1  ;;  %v5331_v48 = vpop.f32.mrb[31].mxu0  ;;  %v4143_v60 = vpop.eup %4142  ;;  %4158 = vrcp.f32 %v1071_v32  ;;  %v1064_v3 = vadd.f32 1.0, %v4141_v62 }
 0x11d   :  { %6280 = vst [vmem:[#allocation35_spill] sm:$0xff] %v5331_v48  ;;  %v4145_v40 = vpop.eup %4144  ;;  %v1060_v1 = vadd.f32 1.0, %v4143_v60 }
 0x11e   :  { %v1072_v17 = vadd.f32 1.0, %v4145_v40  ;;  %v5335_v34 = vpop.f32.mrb[32].mxu1  ;;  %v5337_v0 = vpop.f32.mrb[32].mxu0 }
 0x11f   :  { %6281 = vst [vmem:[#allocation36_spill] sm:$0xff] %v5335_v34  ;;  %6282 = vst [vmem:[#allocation37_spill] sm:$0xff] %v5337_v0  ;;  %v5341_v39 = vpop.f32.mrb[33].mxu1  ;;  %v5343_v58 = vpop.f32.mrb[33].mxu0  ;;  %v3370_v0 = vmul.f32 -1.442695, %v329_v52 }
 0x120   :  { %6283 = vst [vmem:[#allocation38_spill] sm:$0xff] %v5341_v39  ;;  %6284 = vst [vmem:[#allocation39_spill] sm:$0xff] %v5343_v58  ;;  %v4147_v48 = vpop.eup %4146  ;;  %4160 = vrcp.f32 %v1072_v17 }
 0x121   :  { %v4149_v32 = vpop.eup %4148  ;;  %4162 = vrcp.f32 %v1064_v3  ;;  %v1061_v20 = vadd.f32 1.0, %v4147_v48 }
 0x122   :  { %v4151_v55 = vpop.eup %4150  ;;  %v5345_v27 = vpop.f32.mrb[34].mxu1  ;;  %4164 = vrcp.f32 %v1060_v1  ;;  %v1065_v58 = vadd.f32 1.0, %v4149_v32 }
 0x123   :  { %6285 = vst [vmem:[#allocation40_spill] sm:$0xff] %v5345_v27  ;;  %v5347_v40 = vpop.f32.mrb[34].mxu0  ;;  %v4153_v62 = vpop.eup %4152  ;;  %4166 = vpow2.f32 %v3369_v24 }
 0x124   :  { %6286 = vst [vmem:[#allocation41_spill] sm:$0xff] %v5347_v40  ;;  %v5349_v34 = vpop.f32.mrb[35].mxu1  ;;  %v5351_v47 = vpop.f32.mrb[35].mxu0  ;;  %v1073_v21 = vadd.f32 1.0, %v4153_v62 }
 0x125   :  { %6287 = vst [vmem:[#allocation42_spill] sm:$0xff] %v5349_v34  ;;  %6288 = vst [vmem:[#allocation43_spill] sm:$0xff] %v5351_v47  ;;  %v4155_v39 = vpop.eup %4154 }
 0x126   :  { %v4157_v60 = vpop.eup %4156  ;;  %4168 = vrcp.f32 %v1073_v21  ;;  %v5353_v3 = vpop.f32.mrb[36].mxu0  ;;  %v1134_v34 = vmul.f32 %v4155_v39, %v4151_v55 }
 0x127   :  { %v4159_v17 = vpop.eup %4158  ;;  %6289 = vst [vmem:[#allocation44_spill] sm:$0xff] %v5353_v3  ;;  %v5355_v27 = vpop.f32.mrb[36].mxu1  ;;  %4170 = vpow2.f32 %v3370_v0 }
 0x128   :  { %6290 = vst [vmem:[#allocation45_spill] sm:$0xff] %v5355_v27  ;;  %v5357_v40 = vpop.f32.mrb[37].mxu0  ;;  %v5359_v52 = vpop.f32.mrb[37].mxu1  ;;  %v1135_v47 = vmul.f32 %v4159_v17, %v4157_v60  ;;  %4172 = vrcp.f32 %v1065_v58 }
 0x129   :  { %6291 = vst [vmem:[#allocation46_spill] sm:$0xff] %v5357_v40  ;;  %6292 = vst [vmem:[#allocation47_spill] sm:$0xff] %v5359_v52  ;;  %4174 = vrcp.f32 %v1061_v20 }
 0x12a   :  { %v5361_v1 = vpack.c.bf16 %v1135_v47, %v1134_v34  ;;  %v4161_v32 = vpop.eup %4160  ;;  %v5363_v24 = vpop.f32.mrb[38].mxu0 }
 0x12b   :  { %6293 = vst [vmem:[#allocation48_spill] sm:$0xff] %v5363_v24  ;;  %v5365_v48 = vpop.f32.mrb[38].mxu1  ;;  %v1108_v21 = vmul.f32 2.0, %v4161_v32  ;;  %v5367_v62 = vpop.f32.mrb[39].mxu0 }
 0x12c   :  { %6294 = vst [vmem:[#allocation49_spill] sm:$0xff] %v5365_v48  ;;  %6295 = vst [vmem:[#allocation50_spill] sm:$0xff] %v5367_v62  ;;  %v5369_v27 = vpop.f32.mrb[39].mxu1  ;;  %v4163_v0 = vpop.eup %4162 }
 0x12d   :  { %6296 = vst [vmem:[#allocation51_spill] sm:$0xff] %v5369_v27  ;;  %v3377_v40 = vadd.f32 -1.0, %v1108_v21  ;;  %v4165_v3 = vpop.eup %4164  ;;  %v1116_v39 = vmul.f32 0.0, %v4163_v0 }
 0x12e   :  { %v5371_v52 = vpop.f32.mrb[40].mxu0  ;;  %v5373_v55 = vpop.f32.mrb[40].mxu1 }
 0x12f   :  { %6297 = vst [vmem:[#allocation52_spill] sm:$0xff] %v5371_v52  ;;  %6298 = vst [vmem:[#allocation53_spill] sm:$0xff] %v5373_v55  ;;  %v4167_v58 = vpop.eup %4166  ;;  %v1120_v34 = vmul.f32 %v4165_v3, %v3377_v40  ;;  %v5375_v47 = vpop.f32.mrb[41].mxu0 }
 0x130   :  { %6299 = vst [vmem:[#allocation54_spill] sm:$0xff] %v5375_v47  ;;  %v5377_v60 = vpop.f32.mrb[41].mxu1  ;;  %v4169_v17 = vpop.eup %4168  ;;  %v1068_v62 = vadd.f32 1.0, %v4167_v58 }
 0x131   :  { %6300 = vst [vmem:[#allocation55_spill] sm:$0xff] %v5377_v60  ;;  %v4171_v20 = vpop.eup %4170  ;;  %v5379_v32 = vadd.f32 %v1120_v34, %v1116_v39  ;;  %v1109_v48 = vmul.f32 2.0, %v4169_v17 }
 0x132   :  { %v4173_v27 = vpop.eup %4172  ;;  %v5381_v21 = vpop.f32.mrb[42].mxu0  ;;  %v1069_v3 = vadd.f32 1.0, %v4171_v20  ;;  %4176 = vrcp.f32 %v1068_v62 }
 0x133   :  { %6301 = vst [vmem:[#allocation56_spill] sm:$0xff] %v5381_v21  ;;  %v5383_v24 = vpop.f32.mrb[42].mxu1  ;;  %v3378_v52 = vadd.f32 -1.0, %v1109_v48  ;;  %v5385_v55 = vpop.f32.mrb[43].mxu0  ;;  %v1117_v47 = vmul.f32 0.0, %v4173_v27  ;;  %4178 = vtanh.f32 %v5379_v32 }
 0x134   :  { %6302 = vst [vmem:[#allocation57_spill] sm:$0xff] %v5383_v24  ;;  %6303 = vst [vmem:[#allocation58_spill] sm:$0xff] %v5385_v55  ;;  %v5387_v0 = vpop.f32.mrb[43].mxu1  ;;  %v4175_v40 = vpop.eup %4174  ;;  %4180 = vrcp.f32 %v1069_v3 }
 0x135   :  { %6304 = vst [vmem:[#allocation59_spill] sm:$0xff] %v5387_v0  ;;  %v1121_v60 = vmul.f32 %v4175_v40, %v3378_v52 }
 0x136   :  { %v5389_v5 = vpop.f32.mrb[44].mxu0  ;;  %v5391_v39 = vpop.f32.mrb[44].mxu1 }
 0x137   :  { %6305 = vst [vmem:[#allocation60_spill] sm:$0xff] %v5389_v5  ;;  %6306 = vst [vmem:[#allocation61_spill] sm:$0xff] %v5391_v39  ;;  %v5394_v58 = vadd.f32 %v1121_v60, %v1117_v47  ;;  %v5396_v34 = vpop.f32.mrb[45].mxu0  ;;  %v5398_v48 = vpop.f32.mrb[45].mxu1 }
 0x138   :  { %6307 = vst [vmem:[#allocation62_spill] sm:$0xff] %v5396_v34  ;;  %6308 = vst [vmem:[#allocation63_spill] sm:$0xff] %v5398_v48 }
 0x139   :  { %4182 = vtanh.f32 %v5394_v58 }
 0x13a   :  { %v5401_v17 = vpop.f32.mrb[46].mxu0  ;;  %v5403_v27 = vpop.f32.mrb[46].mxu1 }
 0x13b   :  { %6309 = vst [vmem:[#allocation64_spill] sm:$0xff] %v5401_v17  ;;  %6310 = vst [vmem:[#allocation65_spill] sm:$0xff] %v5403_v27  ;;  %v5405_v52 = vpop.f32.mrb[47].mxu0  ;;  %v5407_v62 = vpop.f32.mrb[47].mxu1  ;;  %v277_v17 = vadd.f32 %v5185_v16, %v5162_v7  ;;  %v301_v16 = vadd.f32 %v5221_v45, %v5177_v11  ;;  %v325_v45 = vadd.f32 %v5257_v35, %v5251_v22 }
 0x13c   :  { %6311 = vst [vmem:[#allocation66_spill] sm:$0xff] %v5405_v52  ;;  %6312 = vst [vmem:[#allocation67_spill] sm:$0xff] %v5407_v62  ;;  %v4177_v48 = vpop.eup %4176  ;;  %v355_v35 = vadd.f32 %v5307_v42, %v5173_v9 }
 0x13d   :  { %v4179_v3 = vpop.eup %4178 }
 0x13e   :  { %v5409_v20 = vpop.f32.mrb[48].mxu0  ;;  %v5411_v40 = vpop.f32.mrb[48].mxu1  ;;  %v1132_v62 = vmul.f32 %v4179_v3, %v4177_v48 }
 0x13f   :  { %6313 = vst [vmem:[#allocation68_spill] sm:$0xff] %v5409_v20  ;;  %6314 = vst [vmem:[#allocation69_spill] sm:$0xff] %v5411_v40  ;;  %v5413_v47 = vpop.f32.mrb[49].mxu0  ;;  %v5415_v60 = vpop.f32.mrb[49].mxu1 }
 0x140   :  { %6315 = vst [vmem:[#allocation70_spill] sm:$0xff] %v5413_v47  ;;  %6316 = vst [vmem:[#allocation71_spill] sm:$0xff] %v5415_v60  ;;  %v4181_v0 = vpop.eup %4180 }
 0x142   :  { %v5417_v39 = vpop.f32.mrb[50].mxu0  ;;  %v5419_v24 = vpop.f32.mrb[50].mxu1 }
 0x143   :  { %6317 = vst [vmem:[#allocation72_spill] sm:$0xff] %v5417_v39  ;;  %6318 = vst [vmem:[#allocation73_spill] sm:$0xff] %v5419_v24  ;;  %v4183_v27 = vpop.eup %4182  ;;  %v5421_v34 = vpop.f32.mrb[51].mxu0  ;;  %v283_v39 = vadd.f32 %v5194_v23, %v5175_v10  ;;  %v307_v23 = vadd.f32 %v5229_v51, %v5179_v12  ;;  %v331_v51 = vadd.f32 %v5267_v56, %v5261_v41 }
 0x144   :  { %6319 = vst [vmem:[#allocation74_spill] sm:$0xff] %v5421_v34  ;;  %v5423_v52 = vpop.f32.mrb[51].mxu1  ;;  %v1133_v55 = vmul.f32 %v4183_v27, %v4181_v0 }
 0x145   :  { %6320 = vst [vmem:[#allocation75_spill] sm:$0xff] %v5423_v52 }
 0x146   :  { %v5425_v20 = vpop.f32.mrb[52].mxu0  ;;  %v5427_v40 = vpop.f32.mrb[52].mxu1  ;;  %v4040_v47 = vpack.c.bf16 %v1133_v55, %v1132_v62  ;;  %v5446_v55 = vld [vmem:[%s6239_s2 + $0x8] sm:$0xff]  ;;  %v5455_v62 = vld [vmem:[%s6239_s2 + $0x10] sm:$0xff] }
 0x147   :  { %6321 = vst [vmem:[#allocation76_spill] sm:$0xff] %v5425_v20  ;;  %6322 = vst [vmem:[#allocation77_spill] sm:$0xff] %v5427_v40  ;;  %v5429_v60 = vpop.f32.mrb[53].mxu0  ;;  %v5431_v5 = vpop.f32.mrb[53].mxu1 }
 0x148   :  { %6323 = vst [vmem:[#allocation78_spill] sm:$0xff] %v5429_v60  ;;  %6324 = vst [vmem:[#allocation79_spill] sm:$0xff] %v5431_v5  ;;  %4041 = vmatprep.subr.bf16.mxu0 %v4040_v47 }
 0x149   :  { %4043 = vmatpush3.bf16.msra.mxu0 %v4040_v47 }
 0x14a   :  { %4045 = vmatprep.subr.bf16.mxu0 %v5361_v1  ;;  %v5434_v24 = vpop.f32.mrb[54].mxu0  ;;  %v5436_v34 = vpop.f32.mrb[54].mxu1 }
 0x14b   :  { %6325 = vst [vmem:[#allocation80_spill] sm:$0xff] %v5434_v24  ;;  %6326 = vst [vmem:[#allocation81_spill] sm:$0xff] %v5436_v34  ;;  %v5438_v52 = vpop.f32.mrb[55].mxu0  ;;  %v5440_v0 = vpop.f32.mrb[55].mxu1  ;;  %v5490_v34 = vld [vmem:[%s6239_s2 + $0x28] sm:$0xff] }
 0x14c   :  { %6327 = vst [vmem:[#allocation82_spill] sm:$0xff] %v5438_v52  ;;  %6328 = vst [vmem:[#allocation83_spill] sm:$0xff] %v5440_v0 }
 0x14d   :  { %4047 = vmatpush3.bf16.msra.mxu0 %v5361_v1  ;;  %v5468_v1 = vld [vmem:[%s6239_s2 + $0x18] sm:$0xff] }
 0x14e   :  { %v5448_v48 = vpop.f32.mrb[56].mxu0  ;;  %v5450_v27 = vpop.f32.mrb[56].mxu1 }
 0x14f   :  { %6329 = vst [vmem:[#allocation84_spill] sm:$0xff] %v5448_v48  ;;  %6330 = vst [vmem:[#allocation85_spill] sm:$0xff] %v5450_v27  ;;  %v5457_v47 = vpop.f32.mrb[57].mxu0  ;;  %v5459_v3 = vpop.f32.mrb[57].mxu1  ;;  %v5477_v27 = vld [vmem:[%s6239_s2 + $0x20] sm:$0xff] }
 0x150   :  { %6331 = vst [vmem:[#allocation86_spill] sm:$0xff] %v5457_v47  ;;  %6332 = vst [vmem:[#allocation87_spill] sm:$0xff] %v5459_v3  ;;  %3792 = vmatmul.mubr.msk.f32.vlgmr.msra.gmra.mrb[60].mxu0 %vm1152_vm1, %v5446_v55  ;;  %v5497_v47 = vld [vmem:[%s6239_s2 + $0x30] sm:$0xff] }
 0x151   :  { %3794 = vmatprep.mubr.msk.f32.mxu0 %vm1152_vm1, %v5455_v62 }
 0x152   :  { %v5470_v5 = vpop.f32.mrb[58].mxu0  ;;  %v5472_v0 = vpop.f32.mrb[58].mxu1 }
 0x153   :  { %6333 = vst [vmem:[#allocation88_spill] sm:$0xff] %v5470_v5  ;;  %6334 = vst [vmem:[#allocation89_spill] sm:$0xff] %v5472_v0  ;;  %v5479_v3 = vpop.f32.mrb[59].mxu0  ;;  %v5481_v40 = vpop.f32.mrb[59].mxu1 }
 0x154   :  { %6335 = vst [vmem:[#allocation90_spill] sm:$0xff] %v5479_v3  ;;  %6336 = vst [vmem:[#allocation91_spill] sm:$0xff] %v5481_v40  ;;  %3795 = vmatmul.mubr.msk.f32.gmra.mrb[62].mxu0 %vm1152_vm1, %v5468_v1  ;;  %v5508_v40 = vld [vmem:[%s6239_s2 + $0x38] sm:$0xff] }
 0x155   :  { %3797 = vmatprep.mubr.msk.f32.mxu0 %vm1152_vm1, %v5477_v27 }
 0x156   :  { %v5492_v0 = vpop.f32.mrb[60].mxu1 }
 0x157   :  { %6337 = vst [vmem:[#allocation92_spill] sm:$0xff] %v5492_v0  ;;  %v5499_v3 = vpop.f32.mrb[61].mxu1  ;;  %v5515_v0 = vld [vmem:[%s6239_s2 + $0x40] sm:$0xff] }
 0x158   :  { %6338 = vst [vmem:[#allocation93_spill] sm:$0xff] %v5499_v3  ;;  %3798 = vmatmul.mubr.msk.f32.gmra.mrb[64].mxu0 %vm1152_vm1, %v5490_v34  ;;  %v5526_v3 = vld [vmem:[%s6239_s2 + $0x48] sm:$0xff] }
 0x159   :  { %3800 = vmatprep.mubr.msk.f32.mxu0 %vm1152_vm1, %v5497_v47 }
 0x15a   :  { %v5510_v60 = vpop.f32.mrb[62].mxu1 }
 0x15b   :  { %6339 = vst [vmem:[#allocation94_spill] sm:$0xff] %v5510_v60  ;;  %v5517_v52 = vpop.f32.mrb[63].mxu1  ;;  %v5533_v60 = vld [vmem:[%s6239_s2 + $0x50] sm:$0xff] }
 0x15c   :  { %6340 = vst [vmem:[#allocation95_spill] sm:$0xff] %v5517_v52  ;;  %3801 = vmatmul.mubr.msk.f32.gmra.mrb[66].mxu0 %vm1152_vm1, %v5508_v40  ;;  %v5544_v52 = vld [vmem:[%s6239_s2 + $0x58] sm:$0xff] }
 0x15d   :  { %3803 = vmatprep.mubr.msk.f32.mxu0 %vm1152_vm1, %v5515_v0 }
 0x15e   :  { %v5528_v48 = vpop.f32.mrb[64].mxu1 }
 0x15f   :  { %6341 = vst [vmem:[#allocation96_spill] sm:$0xff] %v5528_v48  ;;  %v5535_v5 = vpop.f32.mrb[65].mxu1  ;;  %v5551_v48 = vld [vmem:[%s6239_s2 + $0x60] sm:$0xff] }
 0x160   :  { %6342 = vst [vmem:[#allocation97_spill] sm:$0xff] %v5535_v5  ;;  %3804 = vmatmul.mubr.msk.f32.gmra.mrb[68].mxu0 %vm1152_vm1, %v5526_v3  ;;  %v5562_v5 = vld [vmem:[%s6239_s2 + $0x68] sm:$0xff] }
 0x161   :  { %3806 = vmatprep.mubr.msk.f32.mxu0 %vm1152_vm1, %v5533_v60 }
 0x162   :  { %v5546_v20 = vpop.f32.mrb[66].mxu1 }
 0x163   :  { %6343 = vst [vmem:[#allocation98_spill] sm:$0xff] %v5546_v20  ;;  %v5553_v24 = vpop.f32.mrb[67].mxu1  ;;  %v5567_v20 = vld [vmem:[%s6239_s2 + $0x70] sm:$0xff] }
 0x164   :  { %6344 = vst [vmem:[#allocation99_spill] sm:$0xff] %v5553_v24  ;;  %3807 = vmatmul.mubr.msk.f32.gmra.mrb[70].mxu0 %vm1152_vm1, %v5544_v52  ;;  %v5576_v24 = vld [vmem:[%s6239_s2 + $0x78] sm:$0xff] }
 0x165   :  { %3809 = vmatprep.mubr.msk.f32.mxu0 %vm1152_vm1, %v5551_v48 }
 0x168   :  { %3810 = vmatmul.mubr.msk.f32.gmra.mrb[72].mxu0 %vm1152_vm1, %v5562_v5 }
 0x169   :  { %3812 = vmatprep.mubr.msk.f32.mxu0 %vm1152_vm1, %v5567_v20 }
 0x16c   :  { %3813 = vmatmul.mubr.msk.f32.gmra.mrb[74].mxu0 %vm1152_vm1, %v5576_v24 }
 0x16d   :  { %3855 = vmatprep.mubr.msk.f32.mxu0 %vm1152_vm1, %v5167_v8 }
 0x223   :  { %v3793_v21 = vpop.f32.mrb[60].mxu0 }
 0x224   :  { %v1273_v54 = vadd.f32 %v3793_v21, %v283_v39  ;;  %v1267_v28 = vpop.f32.mrb[61].mxu0 }
 0x225   :  { %v1268_v50 = vadd.f32 %v1267_v28, %v277_v17 }
 0x227   :  { %v3796_v43 = vpop.f32.mrb[62].mxu0 }
 0x228   :  { %v1283_v49 = vadd.f32 %v3796_v43, %v295_v57  ;;  %v1277_v29 = vpop.f32.mrb[63].mxu0 }
 0x229   :  { %v1278_v8 = vadd.f32 %v1277_v29, %v289_v2 }
 0x22b   :  { %v3799_v7 = vpop.f32.mrb[64].mxu0 }
 0x22c   :  { %v1293_v21 = vadd.f32 %v3799_v7, %v307_v23  ;;  %v1287_v39 = vpop.f32.mrb[65].mxu0  ;;  %v3398_v7 = vmul.f32 -1.442695, %v1273_v54 }
 0x22d   :  { %v1288_v28 = vadd.f32 %v1287_v39, %v301_v16  ;;  %v3397_v39 = vmul.f32 -1.442695, %v1268_v50  ;;  %v349_v50 = vadd.f32 %v5300_v37, %v5160_v6 }
 0x22e   :  { %4184 = vpow2.f32 %v3398_v7  ;;  %v3402_v56 = vmul.f32 -1.442695, %v1293_v21  ;;  %v367_v7 = vadd.f32 %v5197_v25, %v5190_v19  ;;  %v361_v21 = vadd.f32 %v5188_v18, %v5181_v13 }
 0x22f   :  { %v3802_v17 = vpop.f32.mrb[66].mxu0  ;;  %4186 = vpow2.f32 %v3397_v39  ;;  %v3401_v54 = vmul.f32 -1.442695, %v1288_v28  ;;  %v3399_v39 = vmul.f32 -1.442695, %v1278_v8 }
 0x230   :  { %v1303_v43 = vadd.f32 %v3802_v17, %v319_v38  ;;  %v1297_v57 = vpop.f32.mrb[67].mxu0  ;;  %4188 = vpow2.f32 %v3402_v56 }
 0x231   :  { %v1298_v29 = vadd.f32 %v1297_v57, %v313_v31  ;;  %4190 = vpow2.f32 %v3401_v54 }
 0x233   :  { %v3805_v2 = vpop.f32.mrb[68].mxu0 }
 0x234   :  { %v1313_v23 = vadd.f32 %v3805_v2, %v331_v51  ;;  %v1307_v16 = vpop.f32.mrb[69].mxu0  ;;  %v3400_v2 = vmul.f32 -1.442695, %v1283_v49 }
 0x235   :  { %v1308_v11 = vadd.f32 %v1307_v16, %v325_v45 }
 0x236   :  { %v3406_v54 = vmul.f32 -1.442695, %v1313_v23 }
 0x237   :  { %v3808_v38 = vpop.f32.mrb[70].mxu0 }
 0x238   :  { %v1323_v31 = vadd.f32 %v3808_v38, %v343_v15  ;;  %v1317_v17 = vpop.f32.mrb[71].mxu0  ;;  %v3403_v38 = vmul.f32 -1.442695, %v1298_v29 }
 0x239   :  { %v1318_v57 = vadd.f32 %v1317_v17, %v337_v59  ;;  %v3404_v59 = vmul.f32 -1.442695, %v1303_v43  ;;  %v4185_v17 = vpop.eup %4184  ;;  %v3405_v43 = vmul.f32 -1.442695, %v1308_v11 }
 0x23b   :  { %v3811_v51 = vpop.f32.mrb[72].mxu0  ;;  %v3407_v23 = vmul.f32 -1.442695, %v1318_v57 }
 0x23c   :  { %v1333_v45 = vadd.f32 %v3811_v51, %v355_v35  ;;  %v1327_v4 = vpop.f32.mrb[73].mxu0  ;;  %v4187_v35 = vpop.eup %4186 }
 0x23d   :  { %v1328_v30 = vadd.f32 %v1327_v4, %v349_v50  ;;  %v1395_v50 = vadd.f32 1.0, %v4185_v17  ;;  %v1394_v18 = vadd.f32 1.0, %v4187_v35  ;;  %v4189_v8 = vpop.eup %4188 }
 0x23e   :  { %v3410_v16 = vmul.f32 -1.442695, %v1333_v45  ;;  %v4191_v51 = vpop.eup %4190  ;;  %v1399_v29 = vadd.f32 1.0, %v4189_v8 }
 0x23f   :  { %v3409_v42 = vmul.f32 -1.442695, %v1328_v30  ;;  %v3814_v15 = vpop.f32.mrb[74].mxu0 }
 0x240   :  { %4192 = vpow2.f32 %v3410_v16  ;;  %v1343_v37 = vadd.f32 %v3814_v15, %v367_v7  ;;  %v1337_v28 = vpop.f32.mrb[75].mxu0  ;;  %v3408_v7 = vmul.f32 -1.442695, %v1323_v31 }
 0x241   :  { %4194 = vpow2.f32 %v3400_v2  ;;  %v1338_v49 = vadd.f32 %v1337_v28, %v361_v21  ;;  %v1398_v21 = vadd.f32 1.0, %v4191_v51 }
 0x242   :  { %4196 = vpow2.f32 %v3409_v42  ;;  %v3412_v56 = vmul.f32 -1.442695, %v1343_v37 }
 0x243   :  { %4198 = vpow2.f32 %v3399_v39  ;;  %v3411_v25 = vmul.f32 -1.442695, %v1338_v49 }
 0x244   :  { %4200 = vpow2.f32 %v3404_v59 }
 0x245   :  { %4202 = vpow2.f32 %v3403_v38 }
 0x246   :  { %4204 = vpow2.f32 %v3412_v56 }
 0x247   :  { %4206 = vpow2.f32 %v3411_v25 }
 0x248   :  { %4208 = vrcp.f32 %v1395_v50 }
 0x249   :  { %4210 = vrcp.f32 %v1394_v18 }
 0x24a   :  { %v4193_v45 = vpop.eup %4192  ;;  %4212 = vpow2.f32 %v3406_v54 }
 0x24b   :  { %v4195_v4 = vpop.eup %4194  ;;  %v1407_v2 = vadd.f32 1.0, %v4193_v45  ;;  %4214 = vpow2.f32 %v3405_v43 }
 0x24c   :  { %v4197_v30 = vpop.eup %4196  ;;  %v1397_v31 = vadd.f32 1.0, %v4195_v4 }
 0x24d   :  { %v4199_v16 = vpop.eup %4198  ;;  %4216 = vrcp.f32 %v1407_v2  ;;  %v1406_v39 = vadd.f32 1.0, %v4197_v30 }
 0x24e   :  { %v4201_v42 = vpop.eup %4200  ;;  %4218 = vrcp.f32 %v1399_v29  ;;  %v1396_v35 = vadd.f32 1.0, %v4199_v16 }
 0x24f   :  { %v4203_v15 = vpop.eup %4202  ;;  %4220 = vrcp.f32 %v1406_v39  ;;  %v1401_v37 = vadd.f32 1.0, %v4201_v42 }
 0x250   :  { %v4205_v11 = vpop.eup %4204  ;;  %4222 = vpow2.f32 %v3408_v7  ;;  %v1400_v38 = vadd.f32 1.0, %v4203_v15 }
 0x251   :  { %v4207_v59 = vpop.eup %4206  ;;  %4224 = vrcp.f32 %v1398_v21  ;;  %v1409_v28 = vadd.f32 1.0, %v4205_v11 }
 0x252   :  { %4226 = vpow2.f32 %v3407_v23  ;;  %v1408_v49 = vadd.f32 1.0, %v4207_v59  ;;  %v4209_v17 = vpop.eup %4208 }
 0x253   :  { %4228 = vrcp.f32 %v1409_v28  ;;  %v4211_v56 = vpop.eup %4210 }
 0x254   :  { %4230 = vrcp.f32 %v1408_v49  ;;  %v4213_v25 = vpop.eup %4212 }
 0x255   :  { %4232 = vrcp.f32 %v1401_v37  ;;  %v4215_v57 = vpop.eup %4214  ;;  %v1403_v2 = vadd.f32 1.0, %v4213_v25 }
 0x256   :  { %4234 = vrcp.f32 %v1400_v38  ;;  %v1402_v39 = vadd.f32 1.0, %v4215_v57 }
 0x257   :  { %v4217_v50 = vpop.eup %4216  ;;  %4236 = vrcp.f32 %v1397_v31 }
 0x258   :  { %v4219_v18 = vpop.eup %4218  ;;  %4238 = vrcp.f32 %v1396_v35  ;;  %v1443_v8 = vmul.f32 2.0, %v4217_v50 }
 0x259   :  { %v4221_v54 = vpop.eup %4220  ;;  %v1451_v30 = vmul.f32 %v4219_v18, %v5394_v58  ;;  %4240 = vrcp.f32 %v1403_v2 }
 0x25a   :  { %v4223_v43 = vpop.eup %4222  ;;  %v3414_v51 = vadd.f32 -1.0, %v1443_v8  ;;  %v1442_v45 = vmul.f32 2.0, %v4221_v54 }
 0x25b   :  { %v4225_v29 = vpop.eup %4224  ;;  %v1405_v49 = vadd.f32 1.0, %v4223_v43 }
 0x25c   :  { %v4227_v4 = vpop.eup %4226  ;;  %v1455_v7 = vmul.f32 %v4209_v17, %v3414_v51  ;;  %v3413_v16 = vadd.f32 -1.0, %v1442_v45  ;;  %v1450_v15 = vmul.f32 %v4225_v29, %v5379_v32 }
 0x25d   :  { %v4229_v21 = vpop.eup %4228  ;;  %v1404_v35 = vadd.f32 1.0, %v4227_v4 }
 0x25e   :  { %v4231_v42 = vpop.eup %4230  ;;  %v5615_v23 = vadd.f32 %v1455_v7, %v1451_v30  ;;  %v1454_v11 = vmul.f32 %v4211_v56, %v3413_v16  ;;  %v1445_v59 = vmul.f32 2.0, %v4229_v21 }
 0x25f   :  { %v4233_v37 = vpop.eup %4232  ;;  %v1444_v28 = vmul.f32 2.0, %v4231_v42 }
 0x260   :  { %v4235_v38 = vpop.eup %4234  ;;  %4242 = vtanh.f32 %v5615_v23  ;;  %v5619_v31 = vadd.f32 %v1454_v11, %v1450_v15  ;;  %v3416_v58 = vadd.f32 -1.0, %v1445_v59  ;;  %v1453_v32 = vmul.f32 %v4233_v37, %v5322_v46  ;;  %v5663_v15 = vld [vmem:[%s6239_s2] sm:$0xff]  ;;  %v6346_v37 = vld [vmem:[#allocation5_spill] sm:$0xff] }
 0x261   :  { %v4237_v17 = vpop.eup %4236  ;;  %4244 = vrcp.f32 %v1402_v39  ;;  %v3415_v25 = vadd.f32 -1.0, %v1444_v28  ;;  %v1452_v50 = vmul.f32 %v4235_v38, %v5311_v14  ;;  %v442_v11 = vadd.f32 %v5210_v36, %v5175_v10  ;;  %v6345_v59 = vld [vmem:[#allocation3_spill] sm:$0xff] }
 0x262   :  { %v4239_v57 = vpop.eup %4238  ;;  %4246 = vtanh.f32 %v5619_v31  ;;  %v1457_v56 = vmul.f32 %v4237_v17, %v3416_v58  ;;  %v436_v28 = vadd.f32 %v6346_v37, %v6345_v59 }
 0x263   :  { %v1456_v18 = vmul.f32 %v4239_v57, %v3415_v25  ;;  %4248 = vrcp.f32 %v1405_v49  ;;  %v4241_v43 = vpop.eup %4240  ;;  %v6348_v57 = vld [vmem:[#allocation8_spill] sm:$0xff] }
 0x264   :  { %v5624_v8 = vadd.f32 %v1457_v56, %v1453_v32  ;;  %4250 = vrcp.f32 %v1404_v35  ;;  %v6347_v35 = vld [vmem:[#allocation10_spill] sm:$0xff]  ;;  %v448_v32 = vadd.f32 %v6348_v57, %v5199_v26 }
 0x265   :  { %v5626_v54 = vadd.f32 %v1456_v18, %v1452_v50  ;;  %v454_v25 = vadd.f32 %v6347_v35, %v5208_v33  ;;  %v6355_v35 = vld [vmem:[#allocation20_spill] sm:$0xff] }
 0x266   :  { %4252 = vtanh.f32 %v5624_v8 }
 0x267   :  { %4254 = vtanh.f32 %v5626_v54 }
 0x26a   :  { %v4243_v51 = vpop.eup %4242 }
 0x26b   :  { %v4245_v45 = vpop.eup %4244  ;;  %v1467_v29 = vmul.f32 %v4243_v51, %v4241_v43  ;;  %v6349_v51 = vld [vmem:[#allocation14_spill] sm:$0xff] }
 0x26c   :  { %v4247_v2 = vpop.eup %4246  ;;  %v466_v36 = vadd.f32 %v6349_v51, %v5179_v12 }
 0x26d   :  { %v1466_v46 = vmul.f32 %v4247_v2, %v4245_v45  ;;  %v4249_v4 = vpop.eup %4248  ;;  %v6350_v45 = vld [vmem:[#allocation4_spill] sm:$0xff] }
 0x26e   :  { %v4251_v30 = vpop.eup %4250 }
 0x26f   :  { %v4048_v14 = vpack.c.bf16 %v1467_v29, %v1466_v46  ;;  %v6351_v29 = vld [vmem:[#allocation12_spill] sm:$0xff] }
 0x270   :  { %v4253_v7 = vpop.eup %4252  ;;  %v460_v2 = vadd.f32 %v6351_v29, %v6350_v45  ;;  %v6356_v29 = vld [vmem:[#allocation26_spill] sm:$0xff] }
 0x271   :  { %v4255_v16 = vpop.eup %4254  ;;  %4049 = vmatprep.subr.bf16.mxu1 %v4048_v14  ;;  %v1469_v21 = vmul.f32 %v4253_v7, %v4249_v4  ;;  %v6352_v7 = vld [vmem:[#allocation18_spill] sm:$0xff] }
 0x272   :  { %4051 = vmatpush3.bf16.msra.mxu1 %v4048_v14  ;;  %v1468_v39 = vmul.f32 %v4255_v16, %v4251_v30  ;;  %v478_v16 = vadd.f32 %v6352_v7, %v5242_v61 }
 0x274   :  { %v4052_v42 = vpack.c.bf16 %v1469_v21, %v1468_v39  ;;  %v6353_v21 = vld [vmem:[#allocation16_spill] sm:$0xff] }
 0x275   :  { %v472_v39 = vadd.f32 %v6353_v21, %v5233_v53 }
 0x276   :  { %4053 = vmatprep.subr.bf16.mxu1 %v4052_v42 }
 0x277   :  { %4055 = vmatpush3.bf16.msra.mxu1 %v4052_v42 }
 0x27a   :  { %3824 = vmatmul.mubr.msk.f32.vlgmr.msra.gmra.mrb[68].mxu1 %vm1152_vm1, %v5446_v55 }
 0x27b   :  { %3826 = vmatprep.mubr.msk.f32.mxu1 %vm1152_vm1, %v5455_v62 }
 0x27e   :  { %3827 = vmatmul.mubr.msk.f32.gmra.mrb[70].mxu1 %vm1152_vm1, %v5468_v1 }
 0x27f   :  { %3829 = vmatprep.mubr.msk.f32.mxu1 %vm1152_vm1, %v5477_v27 }
 0x282   :  { %3830 = vmatmul.mubr.msk.f32.gmra.mrb[72].mxu1 %vm1152_vm1, %v5490_v34 }
 0x283   :  { %3832 = vmatprep.mubr.msk.f32.mxu1 %vm1152_vm1, %v5497_v47 }
 0x286   :  { %3833 = vmatmul.mubr.msk.f32.gmra.mrb[74].mxu1 %vm1152_vm1, %v5508_v40 }
 0x287   :  { %3835 = vmatprep.mubr.msk.f32.mxu1 %vm1152_vm1, %v5515_v0 }
 0x28a   :  { %3836 = vmatmul.mubr.msk.f32.gmra.mrb[76].mxu1 %vm1152_vm1, %v5526_v3 }
 0x28b   :  { %3838 = vmatprep.mubr.msk.f32.mxu1 %vm1152_vm1, %v5533_v60 }
 0x28e   :  { %3839 = vmatmul.mubr.msk.f32.gmra.mrb[78].mxu1 %vm1152_vm1, %v5544_v52 }
 0x28f   :  { %3841 = vmatprep.mubr.msk.f32.mxu1 %vm1152_vm1, %v5551_v48 }
 0x292   :  { %3842 = vmatmul.mubr.msk.f32.gmra.mrb[80].mxu1 %vm1152_vm1, %v5562_v5 }
 0x293   :  { %3844 = vmatprep.mubr.msk.f32.mxu1 %vm1152_vm1, %v5567_v20 }
 0x296   :  { %3845 = vmatmul.mubr.msk.f32.gmra.mrb[82].mxu1 %vm1152_vm1, %v5576_v24 }
 0x297   :  { %3887 = vmatprep.mubr.msk.f32.mxu1 %vm1152_vm1, %v5663_v15 }
 0x34d   :  { %v3825_v38 = vpop.f32.mrb[68].mxu1 }
 0x34e   :  { %v1558_v49 = vadd.f32 %v3825_v38, %v442_v11  ;;  %v1552_v58 = vpop.f32.mrb[69].mxu1  ;;  %v6354_v38 = vld [vmem:[#allocation22_spill] sm:$0xff] }
 0x34f   :  { %v1553_v17 = vadd.f32 %v1552_v58, %v436_v28  ;;  %v490_v58 = vadd.f32 %v6354_v38, %v5261_v41  ;;  %v6359_v38 = vld [vmem:[#allocation28_spill] sm:$0xff] }
 0x351   :  { %v3828_v56 = vpop.f32.mrb[70].mxu1  ;;  %v3433_v51 = vmul.f32 -1.442695, %v1553_v17  ;;  %v508_v17 = vadd.f32 %v6359_v38, %v5160_v6 }
 0x352   :  { %v1568_v50 = vadd.f32 %v3828_v56, %v454_v25  ;;  %v1562_v18 = vpop.f32.mrb[71].mxu1  ;;  %v484_v25 = vadd.f32 %v6355_v35, %v5251_v22 }
 0x353   :  { %v1563_v43 = vadd.f32 %v1562_v18, %v448_v32  ;;  %v3434_v32 = vmul.f32 -1.442695, %v1558_v49 }
 0x355   :  { %v3831_v46 = vpop.f32.mrb[72].mxu1  ;;  %4256 = vpow2.f32 %v3434_v32  ;;  %v6360_v32 = vld [vmem:[#allocation40_spill] sm:$0xff] }
 0x356   :  { %v1578_v4 = vadd.f32 %v3831_v46, %v466_v36  ;;  %v1572_v30 = vpop.f32.mrb[73].mxu1  ;;  %v6357_v46 = vld [vmem:[#allocation24_spill] sm:$0xff]  ;;  %4258 = vpow2.f32 %v3433_v51 }
 0x357   :  { %v1573_v14 = vadd.f32 %v1572_v30, %v460_v2  ;;  %v502_v2 = vadd.f32 %v6356_v29, %v5282_v44  ;;  %v496_v30 = vadd.f32 %v6357_v46, %v5271_v63 }
 0x359   :  { %v3834_v42 = vpop.f32.mrb[74].mxu1 }
 0x35a   :  { %v1588_v11 = vadd.f32 %v3834_v42, %v478_v16  ;;  %v1582_v37 = vpop.f32.mrb[75].mxu1 }
 0x35b   :  { %v1583_v28 = vadd.f32 %v1582_v37, %v472_v39  ;;  %v3438_v39 = vmul.f32 -1.442695, %v1578_v4  ;;  %v6358_v37 = vld [vmem:[#allocation32_spill] sm:$0xff] }
 0x35c   :  { %v514_v49 = vadd.f32 %v6358_v37, %v5173_v9  ;;  %v6361_v4 = vld [vmem:[#allocation36_spill] sm:$0xff]  ;;  %v3440_v37 = vmul.f32 -1.442695, %v1588_v11 }
 0x35d   :  { %v3837_v57 = vpop.f32.mrb[76].mxu1  ;;  %4260 = vpow2.f32 %v3438_v39  ;;  %v520_v51 = vadd.f32 %v6361_v4, %v5181_v13 }
 0x35e   :  { %v1598_v56 = vadd.f32 %v3837_v57, %v490_v58  ;;  %v1592_v18 = vpop.f32.mrb[77].mxu1  ;;  %v3437_v58 = vmul.f32 -1.442695, %v1573_v14 }
 0x35f   :  { %v1593_v36 = vadd.f32 %v1592_v18, %v484_v25  ;;  %v3436_v18 = vmul.f32 -1.442695, %v1568_v50  ;;  %v4257_v39 = vpop.eup %4256 }
 0x360   :  { %4262 = vpow2.f32 %v3437_v58 }
 0x361   :  { %v3840_v7 = vpop.f32.mrb[78].mxu1  ;;  %v3441_v11 = vmul.f32 -1.442695, %v1593_v36 }
 0x362   :  { %v1608_v16 = vadd.f32 %v3840_v7, %v502_v2  ;;  %v1602_v21 = vpop.f32.mrb[79].mxu1  ;;  %v526_v2 = vadd.f32 %v6360_v32, %v5190_v19 }
 0x363   :  { %v1603_v42 = vadd.f32 %v1602_v21, %v496_v30  ;;  %v3435_v30 = vmul.f32 -1.442695, %v1563_v43 }
 0x365   :  { %v3843_v35 = vpop.f32.mrb[80].mxu1 }
 0x366   :  { %v1618_v25 = vadd.f32 %v3843_v35, %v514_v49  ;;  %v1612_v57 = vpop.f32.mrb[81].mxu1  ;;  %v3439_v49 = vmul.f32 -1.442695, %v1583_v28  ;;  %v4259_v35 = vpop.eup %4258 }
 0x367   :  { %v1613_v29 = vadd.f32 %v1612_v57, %v508_v17  ;;  %v1680_v57 = vadd.f32 1.0, %v4257_v39  ;;  %v1679_v43 = vadd.f32 1.0, %v4259_v35  ;;  %v4261_v58 = vpop.eup %4260 }
 0x368   :  { %v3446_v46 = vmul.f32 -1.442695, %v1618_v25  ;;  %v1684_v28 = vadd.f32 1.0, %v4261_v58 }
 0x369   :  { %v3445_v7 = vmul.f32 -1.442695, %v1613_v29  ;;  %v3846_v21 = vpop.f32.mrb[82].mxu1  ;;  %v3442_v29 = vmul.f32 -1.442695, %v1598_v56 }
 0x36a   :  { %4264 = vpow2.f32 %v3446_v46  ;;  %v1628_v14 = vadd.f32 %v3846_v21, %v526_v2  ;;  %v1622_v38 = vpop.f32.mrb[83].mxu1  ;;  %v4263_v32 = vpop.eup %4262  ;;  %v3443_v56 = vmul.f32 -1.442695, %v1603_v42 }
 0x36b   :  { %4266 = vpow2.f32 %v3436_v18  ;;  %v1623_v50 = vadd.f32 %v1622_v38, %v520_v51  ;;  %v3444_v51 = vmul.f32 -1.442695, %v1608_v16 }
 0x36c   :  { %4268 = vpow2.f32 %v3445_v7  ;;  %v3448_v17 = vmul.f32 -1.442695, %v1628_v14  ;;  %v1683_v7 = vadd.f32 1.0, %v4263_v32 }
 0x36d   :  { %4270 = vpow2.f32 %v3435_v30  ;;  %v3447_v25 = vmul.f32 -1.442695, %v1623_v50 }
 0x36e   :  { %4272 = vpow2.f32 %v3440_v37 }
 0x36f   :  { %4274 = vpow2.f32 %v3439_v49 }
 0x370   :  { %4276 = vpow2.f32 %v3448_v17 }
 0x371   :  { %4278 = vpow2.f32 %v3447_v25 }
 0x372   :  { %4280 = vrcp.f32 %v1680_v57 }
 0x373   :  { %4282 = vrcp.f32 %v1679_v43 }
 0x374   :  { %v4265_v18 = vpop.eup %4264  ;;  %4284 = vpow2.f32 %v3442_v29 }
 0x375   :  { %v4267_v2 = vpop.eup %4266  ;;  %v1692_v46 = vadd.f32 1.0, %v4265_v18  ;;  %4286 = vpow2.f32 %v3441_v11 }
 0x376   :  { %v4269_v4 = vpop.eup %4268  ;;  %v1682_v16 = vadd.f32 1.0, %v4267_v2 }
 0x377   :  { %v4271_v30 = vpop.eup %4270  ;;  %4288 = vrcp.f32 %v1692_v46  ;;  %v1691_v21 = vadd.f32 1.0, %v4269_v4 }
 0x378   :  { %v4273_v37 = vpop.eup %4272  ;;  %4290 = vrcp.f32 %v1684_v28  ;;  %v1681_v57 = vadd.f32 1.0, %v4271_v30 }
 0x379   :  { %v4275_v14 = vpop.eup %4274  ;;  %4292 = vrcp.f32 %v1691_v21  ;;  %v1686_v49 = vadd.f32 1.0, %v4273_v37 }
 0x37a   :  { %v4277_v36 = vpop.eup %4276  ;;  %4294 = vpow2.f32 %v3444_v51  ;;  %v1685_v39 = vadd.f32 1.0, %v4275_v14 }
 0x37b   :  { %v4279_v38 = vpop.eup %4278  ;;  %4296 = vrcp.f32 %v1683_v7  ;;  %v1694_v50 = vadd.f32 1.0, %v4277_v36 }
 0x37c   :  { %4298 = vpow2.f32 %v3443_v56  ;;  %v1693_v17 = vadd.f32 1.0, %v4279_v38  ;;  %v4281_v35 = vpop.eup %4280 }
 0x37d   :  { %4300 = vrcp.f32 %v1694_v50  ;;  %v4283_v25 = vpop.eup %4282 }
 0x37e   :  { %4302 = vrcp.f32 %v1693_v17  ;;  %v4285_v43 = vpop.eup %4284 }
 0x37f   :  { %4304 = vrcp.f32 %v1686_v49  ;;  %v4287_v42 = vpop.eup %4286  ;;  %v1688_v51 = vadd.f32 1.0, %v4285_v43 }
 0x380   :  { %4306 = vrcp.f32 %v1685_v39  ;;  %v1687_v56 = vadd.f32 1.0, %v4287_v42 }
 0x381   :  { %v4289_v58 = vpop.eup %4288  ;;  %4308 = vrcp.f32 %v1682_v16 }
 0x382   :  { %v4291_v29 = vpop.eup %4290  ;;  %4310 = vrcp.f32 %v1681_v57  ;;  %v1728_v11 = vmul.f32 2.0, %v4289_v58 }
 0x383   :  { %v4293_v32 = vpop.eup %4292  ;;  %v1736_v7 = vmul.f32 %v4291_v29, %v5615_v23  ;;  %4312 = vrcp.f32 %v1688_v51 }
 0x384   :  { %v4295_v18 = vpop.eup %4294  ;;  %v3450_v28 = vadd.f32 -1.0, %v1728_v11  ;;  %v1727_v46 = vmul.f32 2.0, %v4293_v32 }
 0x385   :  { %v4297_v4 = vpop.eup %4296  ;;  %v1690_v57 = vadd.f32 1.0, %v4295_v18 }
 0x386   :  { %v4299_v2 = vpop.eup %4298  ;;  %v1740_v30 = vmul.f32 %v4281_v35, %v3450_v28  ;;  %v3449_v21 = vadd.f32 -1.0, %v1727_v46  ;;  %v1735_v38 = vmul.f32 %v4297_v4, %v5619_v31 }
 0x387   :  { %v4301_v37 = vpop.eup %4300  ;;  %v1689_v42 = vadd.f32 1.0, %v4299_v2 }
 0x388   :  { %v4303_v14 = vpop.eup %4302  ;;  %v5700_v36 = vadd.f32 %v1740_v30, %v1736_v7  ;;  %v1739_v49 = vmul.f32 %v4283_v25, %v3449_v21  ;;  %v1730_v50 = vmul.f32 2.0, %v4301_v37 }
 0x389   :  { %v4305_v39 = vpop.eup %4304  ;;  %v1729_v17 = vmul.f32 2.0, %v4303_v14 }
 0x38a   :  { %v4307_v16 = vpop.eup %4306  ;;  %4314 = vtanh.f32 %v5700_v36  ;;  %v5704_v43 = vadd.f32 %v1739_v49, %v1735_v38  ;;  %v3452_v23 = vadd.f32 -1.0, %v1730_v50  ;;  %v1738_v31 = vmul.f32 %v4305_v39, %v5624_v8  ;;  %v6366_v39 = vld [vmem:[#allocation15_spill] sm:$0xff] }
 0x38b   :  { %v4309_v35 = vpop.eup %4308  ;;  %4316 = vrcp.f32 %v1687_v56  ;;  %v3451_v58 = vadd.f32 -1.0, %v1729_v17  ;;  %v1737_v11 = vmul.f32 %v4307_v16, %v5626_v54  ;;  %v468_v17 = vadd.f32 %v6366_v39, %v5179_v12  ;;  %v6367_v16 = vld [vmem:[#allocation13_spill] sm:$0xff] }
 0x38c   :  { %v4311_v29 = vpop.eup %4310  ;;  %4318 = vtanh.f32 %v5704_v43  ;;  %v1742_v25 = vmul.f32 %v4309_v35, %v3452_v23 }
 0x38d   :  { %v1741_v32 = vmul.f32 %v4311_v29, %v3451_v58  ;;  %4320 = vrcp.f32 %v1690_v57  ;;  %v4313_v46 = vpop.eup %4312  ;;  %v462_v57 = vadd.f32 %v6367_v16, %v6350_v45  ;;  %v6368_v29 = vld [vmem:[#allocation19_spill] sm:$0xff] }
 0x38e   :  { %v5709_v18 = vadd.f32 %v1742_v25, %v1738_v31  ;;  %4322 = vrcp.f32 %v1689_v42  ;;  %v480_v31 = vadd.f32 %v6368_v29, %v5242_v61  ;;  %v6369_v25 = vld [vmem:[#allocation17_spill] sm:$0xff] }
 0x38f   :  { %v5711_v28 = vadd.f32 %v1741_v32, %v1737_v11  ;;  %v474_v11 = vadd.f32 %v6369_v25, %v5233_v53 }
 0x390   :  { %4324 = vtanh.f32 %v5709_v18 }
 0x391   :  { %4326 = vtanh.f32 %v5711_v28 }
 0x394   :  { %v4315_v4 = vpop.eup %4314 }
 0x395   :  { %v4317_v51 = vpop.eup %4316  ;;  %v1752_v2 = vmul.f32 %v4315_v4, %v4313_v46 }
 0x396   :  { %v4319_v7 = vpop.eup %4318 }
 0x397   :  { %v1751_v8 = vmul.f32 %v4319_v7, %v4317_v51  ;;  %v4321_v30 = vpop.eup %4320 }
 0x398   :  { %v4323_v21 = vpop.eup %4322 }
 0x399   :  { %v4056_v54 = vpack.c.bf16 %v1752_v2, %v1751_v8  ;;  %v6370_v2 = vld [vmem:[#allocation23_spill] sm:$0xff]  ;;  %v6371_v8 = vld [vmem:[#allocation21_spill] sm:$0xff] }
 0x39a   :  { %v4325_v37 = vpop.eup %4324  ;;  %v492_v7 = vadd.f32 %v6370_v2, %v5261_v41 }
 0x39b   :  { %v4327_v56 = vpop.eup %4326  ;;  %4057 = vmatprep.subr.bf16.mxu0 %v4056_v54  ;;  %v1754_v14 = vmul.f32 %v4325_v37, %v4321_v30  ;;  %v486_v30 = vadd.f32 %v6371_v8, %v5251_v22 }
 0x39c   :  { %4059 = vmatpush3.bf16.msra.mxu0 %v4056_v54  ;;  %v1753_v38 = vmul.f32 %v4327_v56, %v4323_v21 }
 0x39e   :  { %v4060_v49 = vpack.c.bf16 %v1754_v14, %v1753_v38 }
 0x3a0   :  { %4061 = vmatprep.subr.bf16.mxu0 %v4060_v49 }
 0x3a1   :  { %4063 = vmatpush3.bf16.msra.mxu0 %v4060_v49  ;;  %v6372_v49 = vld [vmem:[#allocation27_spill] sm:$0xff] }
 0x3a4   :  { %3856 = vmatmul.mubr.msk.f32.vlgmr.msra.gmra.mrb[76].mxu0 %vm1152_vm1, %v5446_v55 }
 0x3a5   :  { %3858 = vmatprep.mubr.msk.f32.mxu0 %vm1152_vm1, %v5455_v62 }
 0x3a8   :  { %3859 = vmatmul.mubr.msk.f32.gmra.mrb[78].mxu0 %vm1152_vm1, %v5468_v1 }
 0x3a9   :  { %3861 = vmatprep.mubr.msk.f32.mxu0 %vm1152_vm1, %v5477_v27 }
 0x3ac   :  { %3862 = vmatmul.mubr.msk.f32.gmra.mrb[80].mxu0 %vm1152_vm1, %v5490_v34  ;;  %v6362_v34 = vld [vmem:[#allocation7_spill] sm:$0xff] }
 0x3ad   :  { %3864 = vmatprep.mubr.msk.f32.mxu0 %vm1152_vm1, %v5497_v47 }
 0x3b0   :  { %3865 = vmatmul.mubr.msk.f32.gmra.mrb[82].mxu0 %vm1152_vm1, %v5508_v40  ;;  %v444_v40 = vadd.f32 %v6362_v34, %v5175_v10  ;;  %v504_v34 = vadd.f32 %v6372_v49, %v5282_v44 }
 0x3b1   :  { %3867 = vmatprep.mubr.msk.f32.mxu0 %vm1152_vm1, %v5515_v0 }
 0x3b4   :  { %3868 = vmatmul.mubr.msk.f32.gmra.mrb[84].mxu0 %vm1152_vm1, %v5526_v3 }
 0x3b5   :  { %3870 = vmatprep.mubr.msk.f32.mxu0 %vm1152_vm1, %v5533_v60 }
 0x3b8   :  { %3871 = vmatmul.mubr.msk.f32.gmra.mrb[86].mxu0 %vm1152_vm1, %v5544_v52  ;;  %v6363_v52 = vld [vmem:[#allocation6_spill] sm:$0xff] }
 0x3b9   :  { %3873 = vmatprep.mubr.msk.f32.mxu0 %vm1152_vm1, %v5551_v48  ;;  %v438_v60 = vadd.f32 %v6363_v52, %v6345_v59 }
 0x3bc   :  { %3874 = vmatmul.mubr.msk.f32.gmra.mrb[88].mxu0 %vm1152_vm1, %v5562_v5  ;;  %v6364_v5 = vld [vmem:[#allocation11_spill] sm:$0xff] }
 0x3bd   :  { %3876 = vmatprep.mubr.msk.f32.mxu0 %vm1152_vm1, %v5567_v20  ;;  %v456_v62 = vadd.f32 %v6364_v5, %v5208_v33  ;;  %v6365_v20 = vld [vmem:[#allocation9_spill] sm:$0xff] }
 0x3be   :  { %v450_v47 = vadd.f32 %v6365_v20, %v5199_v26  ;;  %v6374_v20 = vld [vmem:[#allocation34_spill] sm:$0xff] }
 0x3c0   :  { %3877 = vmatmul.mubr.msk.f32.gmra.mrb[90].mxu0 %vm1152_vm1, %v5576_v24 }
 0x3c1   :  { %3919 = vmatprep.mubr.msk.f32.mxu0 %vm1152_vm1, %v5663_v15 }
 0x477   :  { %v3857_v0 = vpop.f32.mrb[76].mxu0 }
 0x478   :  { %v1843_v55 = vadd.f32 %v3857_v0, %v444_v40  ;;  %v1837_v48 = vpop.f32.mrb[77].mxu0  ;;  %v6373_v40 = vld [vmem:[#allocation25_spill] sm:$0xff] }
 0x479   :  { %v1838_v27 = vadd.f32 %v1837_v48, %v438_v60  ;;  %v498_v52 = vadd.f32 %v6373_v40, %v5271_v63 }
 0x47a   :  { %v3470_v54 = vmul.f32 -1.442695, %v1843_v55  ;;  %v516_v55 = vadd.f32 %v6374_v20, %v5173_v9 }
 0x47b   :  { %v3860_v24 = vpop.f32.mrb[78].mxu0  ;;  %v3469_v14 = vmul.f32 -1.442695, %v1838_v27 }
 0x47c   :  { %v1853_v3 = vadd.f32 %v3860_v24, %v456_v62  ;;  %v1847_v1 = vpop.f32.mrb[79].mxu0  ;;  %4328 = vpow2.f32 %v3470_v54 }
 0x47d   :  { %v1848_v50 = vadd.f32 %v1847_v1, %v450_v47  ;;  %4330 = vpow2.f32 %v3469_v14  ;;  %v6375_v47 = vld [vmem:[#allocation30_spill] sm:$0xff] }
 0x47e   :  { %v510_v27 = vadd.f32 %v6375_v47, %v5160_v6  ;;  %v3472_v16 = vmul.f32 -1.442695, %v1853_v3 }
 0x47f   :  { %v3863_v23 = vpop.f32.mrb[80].mxu0  ;;  %v3471_v25 = vmul.f32 -1.442695, %v1848_v50 }
 0x480   :  { %v1863_v35 = vadd.f32 %v3863_v23, %v468_v17  ;;  %v1857_v42 = vpop.f32.mrb[81].mxu0  ;;  %v6376_v23 = vld [vmem:[#allocation42_spill] sm:$0xff] }
 0x481   :  { %v1858_v58 = vadd.f32 %v1857_v42, %v462_v57  ;;  %v528_v42 = vadd.f32 %v6376_v23, %v5190_v19 }
 0x482   :  { %v3474_v5 = vmul.f32 -1.442695, %v1863_v35  ;;  %v6377_v35 = vld [vmem:[#allocation38_spill] sm:$0xff] }
 0x483   :  { %v3866_v32 = vpop.f32.mrb[82].mxu0  ;;  %v3473_v24 = vmul.f32 -1.442695, %v1858_v58 }
 0x484   :  { %v1873_v46 = vadd.f32 %v3866_v32, %v480_v31  ;;  %v1867_v4 = vpop.f32.mrb[83].mxu0  ;;  %4332 = vpow2.f32 %v3474_v5  ;;  %v522_v31 = vadd.f32 %v6377_v35, %v5181_v13 }
 0x485   :  { %v1868_v51 = vadd.f32 %v1867_v4, %v474_v11  ;;  %4334 = vpow2.f32 %v3473_v24 }
 0x486   :  { %v3476_v4 = vmul.f32 -1.442695, %v1873_v46  ;;  %v4329_v8 = vpop.eup %4328 }
 0x487   :  { %v3869_v21 = vpop.f32.mrb[84].mxu0 }
 0x488   :  { %v1883_v37 = vadd.f32 %v3869_v21, %v492_v7  ;;  %v1877_v56 = vpop.f32.mrb[85].mxu0  ;;  %v3475_v7 = vmul.f32 -1.442695, %v1868_v51  ;;  %v4331_v21 = vpop.eup %4330 }
 0x489   :  { %v1878_v38 = vadd.f32 %v1877_v56, %v486_v30  ;;  %v1965_v56 = vadd.f32 1.0, %v4329_v8  ;;  %v1964_v50 = vadd.f32 1.0, %v4331_v21 }
 0x48a   :  { %v3478_v49 = vmul.f32 -1.442695, %v1883_v37 }
 0x48b   :  { %v3872_v60 = vpop.f32.mrb[86].mxu0  ;;  %v3477_v46 = vmul.f32 -1.442695, %v1878_v38 }
 0x48c   :  { %v1893_v0 = vadd.f32 %v3872_v60, %v504_v34  ;;  %v1887_v48 = vpop.f32.mrb[87].mxu0 }
 0x48d   :  { %v1888_v62 = vadd.f32 %v1887_v48, %v498_v52 }
 0x48e   :  { %v4333_v14 = vpop.eup %4332  ;;  %v3480_v5 = vmul.f32 -1.442695, %v1893_v0 }
 0x48f   :  { %v3875_v1 = vpop.f32.mrb[88].mxu0  ;;  %v4335_v34 = vpop.eup %4334  ;;  %v1969_v51 = vadd.f32 1.0, %v4333_v14  ;;  %v3479_v37 = vmul.f32 -1.442695, %v1888_v62 }
 0x490   :  { %v1903_v39 = vadd.f32 %v3875_v1, %v516_v55  ;;  %v1897_v17 = vpop.f32.mrb[89].mxu0  ;;  %v1968_v55 = vadd.f32 1.0, %v4335_v34 }
 0x491   :  { %v1898_v57 = vadd.f32 %v1897_v17, %v510_v27 }
 0x492   :  { %v3482_v29 = vmul.f32 -1.442695, %v1903_v39 }
 0x493   :  { %v3481_v11 = vmul.f32 -1.442695, %v1898_v57  ;;  %v3878_v32 = vpop.f32.mrb[90].mxu0 }
 0x494   :  { %4336 = vpow2.f32 %v3482_v29  ;;  %v1913_v58 = vadd.f32 %v3878_v32, %v528_v42  ;;  %v1907_v2 = vpop.f32.mrb[91].mxu0 }
 0x495   :  { %4338 = vpow2.f32 %v3472_v16  ;;  %v1908_v3 = vadd.f32 %v1907_v2, %v522_v31 }
 0x496   :  { %4340 = vpow2.f32 %v3481_v11  ;;  %v3484_v30 = vmul.f32 -1.442695, %v1913_v58 }
 0x497   :  { %4342 = vpow2.f32 %v3471_v25  ;;  %v3483_v54 = vmul.f32 -1.442695, %v1908_v3 }
 0x498   :  { %4344 = vpow2.f32 %v3476_v4 }
 0x499   :  { %4346 = vpow2.f32 %v3475_v7 }
 0x49a   :  { %4348 = vpow2.f32 %v3484_v30 }
 0x49b   :  { %4350 = vpow2.f32 %v3483_v54 }
 0x49c   :  { %4352 = vrcp.f32 %v1965_v56 }
 0x49d   :  { %4354 = vrcp.f32 %v1964_v50 }
 0x49e   :  { %v4337_v40 = vpop.eup %4336  ;;  %4356 = vpow2.f32 %v3478_v49 }
 0x49f   :  { %v4339_v52 = vpop.eup %4338  ;;  %v1977_v60 = vadd.f32 1.0, %v4337_v40  ;;  %4358 = vpow2.f32 %v3477_v46 }
 0x4a0   :  { %v4341_v48 = vpop.eup %4340  ;;  %v1967_v0 = vadd.f32 1.0, %v4339_v52 }
 0x4a1   :  { %v4343_v20 = vpop.eup %4342  ;;  %4360 = vrcp.f32 %v1977_v60  ;;  %v1976_v47 = vadd.f32 1.0, %v4341_v48 }
 0x4a2   :  { %v4345_v27 = vpop.eup %4344  ;;  %4362 = vrcp.f32 %v1969_v51  ;;  %v1966_v29 = vadd.f32 1.0, %v4343_v20 }
 0x4a3   :  { %v4347_v24 = vpop.eup %4346  ;;  %4364 = vrcp.f32 %v1976_v47  ;;  %v1971_v39 = vadd.f32 1.0, %v4345_v27 }
 0x4a4   :  { %v4349_v38 = vpop.eup %4348  ;;  %4366 = vpow2.f32 %v3480_v5  ;;  %v1970_v16 = vadd.f32 1.0, %v4347_v24 }
 0x4a5   :  { %v4351_v1 = vpop.eup %4350  ;;  %4368 = vrcp.f32 %v1968_v55  ;;  %v1979_v17 = vadd.f32 1.0, %v4349_v38 }
 0x4a6   :  { %4370 = vpow2.f32 %v3479_v37  ;;  %v1978_v57 = vadd.f32 1.0, %v4351_v1  ;;  %v4353_v23 = vpop.eup %4352 }
 0x4a7   :  { %4372 = vrcp.f32 %v1979_v17  ;;  %v4355_v42 = vpop.eup %4354 }
 0x4a8   :  { %4374 = vrcp.f32 %v1978_v57  ;;  %v4357_v35 = vpop.eup %4356 }
 0x4a9   :  { %4376 = vrcp.f32 %v1971_v39  ;;  %v4359_v62 = vpop.eup %4358  ;;  %v1973_v3 = vadd.f32 1.0, %v4357_v35 }
 0x4aa   :  { %4378 = vrcp.f32 %v1970_v16  ;;  %v1972_v50 = vadd.f32 1.0, %v4359_v62 }
 0x4ab   :  { %v4361_v31 = vpop.eup %4360  ;;  %4380 = vrcp.f32 %v1967_v0 }
 0x4ac   :  { %v4363_v25 = vpop.eup %4362  ;;  %4382 = vrcp.f32 %v1966_v29  ;;  %v2013_v11 = vmul.f32 2.0, %v4361_v31 }
 0x4ad   :  { %v4365_v32 = vpop.eup %4364  ;;  %v2021_v30 = vmul.f32 %v4363_v25, %v5700_v36  ;;  %4384 = vrcp.f32 %v1973_v3  ;;  %v5833_v3 = vld [vmem:[%s6239_s2 + $0x30] sm:$0xff] }
 0x4ae   :  { %v4367_v4 = vpop.eup %4366  ;;  %v3486_v58 = vadd.f32 -1.0, %v2013_v11  ;;  %v2012_v2 = vmul.f32 2.0, %v4365_v32  ;;  %v5798_v32 = vld [vmem:[%s6239_s2 + $0x8] sm:$0xff] }
 0x4af   :  { %v4369_v7 = vpop.eup %4368  ;;  %v1975_v48 = vadd.f32 1.0, %v4367_v4  ;;  %v5805_v4 = vld [vmem:[%s6239_s2 + $0x10] sm:$0xff] }
 0x4b0   :  { %v4371_v8 = vpop.eup %4370  ;;  %v2025_v21 = vmul.f32 %v4353_v23, %v3486_v58  ;;  %v3485_v54 = vadd.f32 -1.0, %v2012_v2  ;;  %v2020_v46 = vmul.f32 %v4369_v7, %v5704_v43  ;;  %v5812_v58 = vld [vmem:[%s6239_s2 + $0x18] sm:$0xff]  ;;  %v5819_v2 = vld [vmem:[%s6239_s2 + $0x20] sm:$0xff]  ;;  %v5826_v7 = vld [vmem:[%s6239_s2 + $0x28] sm:$0xff] }
 0x4b1   :  { %v4373_v56 = vpop.eup %4372  ;;  %v1974_v55 = vadd.f32 1.0, %v4371_v8  ;;  %v5840_v8 = vld [vmem:[%s6239_s2 + $0x38] sm:$0xff] }
 0x4b2   :  { %v4375_v14 = vpop.eup %4374  ;;  %v5780_v49 = vadd.f32 %v2025_v21, %v2021_v30  ;;  %v2024_v34 = vmul.f32 %v4355_v42, %v3485_v54  ;;  %v2015_v40 = vmul.f32 2.0, %v4373_v56  ;;  %v5847_v30 = vld [vmem:[%s6239_s2 + $0x40] sm:$0xff]  ;;  %v5854_v21 = vld [vmem:[%s6239_s2 + $0x48] sm:$0xff]  ;;  %v5861_v54 = vld [vmem:[%s6239_s2 + $0x50] sm:$0xff] }
 0x4b3   :  { %v4377_v51 = vpop.eup %4376  ;;  %v2014_v52 = vmul.f32 2.0, %v4375_v14  ;;  %v5868_v56 = vld [vmem:[%s6239_s2 + $0x58] sm:$0xff]  ;;  %v5882_v14 = vld [vmem:[%s6239_s2 + $0x68] sm:$0xff] }
 0x4b4   :  { %v4379_v60 = vpop.eup %4378  ;;  %4386 = vtanh.f32 %v5780_v49  ;;  %v5784_v5 = vadd.f32 %v2024_v34, %v2020_v46  ;;  %v3488_v36 = vadd.f32 -1.0, %v2015_v40  ;;  %v2023_v43 = vmul.f32 %v4377_v51, %v5709_v18  ;;  %v5889_v46 = vld [vmem:[%s6239_s2 + $0x70] sm:$0xff]  ;;  %v5896_v34 = vld [vmem:[%s6239_s2 + $0x78] sm:$0xff] }
 0x4b5   :  { %v4381_v20 = vpop.eup %4380  ;;  %4388 = vrcp.f32 %v1972_v50  ;;  %v3487_v47 = vadd.f32 -1.0, %v2014_v52  ;;  %v2022_v24 = vmul.f32 %v4379_v60, %v5711_v28  ;;  %v5875_v50 = vld [vmem:[%s6239_s2 + $0x60] sm:$0xff]  ;;  %v6378_v40 = vld [vmem:[#allocation33_spill] sm:$0xff] }
 0x4b6   :  { %v4383_v27 = vpop.eup %4382  ;;  %4390 = vtanh.f32 %v5784_v5  ;;  %v2027_v37 = vmul.f32 %v4381_v20, %v3488_v36  ;;  %v603_v51 = vadd.f32 %v6378_v40, %v5175_v10  ;;  %v6379_v52 = vld [vmem:[#allocation29_spill] sm:$0xff] }
 0x4b7   :  { %v2026_v38 = vmul.f32 %v4383_v27, %v3487_v47  ;;  %4392 = vrcp.f32 %v1975_v48  ;;  %v4385_v17 = vpop.eup %4384  ;;  %v597_v60 = vadd.f32 %v6379_v52, %v6345_v59  ;;  %v6380_v47 = vld [vmem:[#allocation41_spill] sm:$0xff] }
 0x4b8   :  { %v5789_v1 = vadd.f32 %v2027_v37, %v2023_v43  ;;  %4394 = vrcp.f32 %v1974_v55  ;;  %v615_v27 = vadd.f32 %v6380_v47, %v5208_v33  ;;  %v6381_v43 = vld [vmem:[#allocation37_spill] sm:$0xff] }
 0x4b9   :  { %v5791_v39 = vadd.f32 %v2026_v38, %v2022_v24  ;;  %v609_v37 = vadd.f32 %v6381_v43, %v5199_v26 }
 0x4ba   :  { %4396 = vtanh.f32 %v5789_v1 }
 0x4bb   :  { %4398 = vtanh.f32 %v5791_v39 }
 0x4be   :  { %v4387_v16 = vpop.eup %4386 }
 0x4bf   :  { %v4389_v57 = vpop.eup %4388  ;;  %v2037_v23 = vmul.f32 %v4387_v16, %v4385_v17  ;;  %v6382_v16 = vld [vmem:[#allocation48_spill] sm:$0xff] }
 0x4c0   :  { %v4391_v0 = vpop.eup %4390 }
 0x4c1   :  { %v2036_v18 = vmul.f32 %v4391_v0, %v4389_v57  ;;  %v4393_v42 = vpop.eup %4392  ;;  %v627_v57 = vadd.f32 %v6382_v16, %v5179_v12 }
 0x4c2   :  { %v4395_v29 = vpop.eup %4394 }
 0x4c3   :  { %v4064_v28 = vpack.c.bf16 %v2037_v23, %v2036_v18  ;;  %v6383_v23 = vld [vmem:[#allocation44_spill] sm:$0xff] }
 0x4c4   :  { %v4397_v35 = vpop.eup %4396  ;;  %v621_v0 = vadd.f32 %v6383_v23, %v6350_v45 }
 0x4c5   :  { %v4399_v62 = vpop.eup %4398  ;;  %4065 = vmatprep.subr.bf16.mxu1 %v4064_v28  ;;  %v2039_v31 = vmul.f32 %v4397_v35, %v4393_v42  ;;  %v6384_v35 = vld [vmem:[#allocation56_spill] sm:$0xff] }
 0x4c6   :  { %4067 = vmatpush3.bf16.msra.mxu1 %v4064_v28  ;;  %v2038_v25 = vmul.f32 %v4399_v62, %v4395_v29  ;;  %v639_v62 = vadd.f32 %v6384_v35, %v5242_v61 }
 0x4c8   :  { %v4068_v11 = vpack.c.bf16 %v2039_v31, %v2038_v25  ;;  %v6385_v31 = vld [vmem:[#allocation52_spill] sm:$0xff] }
 0x4c9   :  { %v633_v25 = vadd.f32 %v6385_v31, %v5233_v53 }
 0x4ca   :  { %4069 = vmatprep.subr.bf16.mxu1 %v4068_v11 }
 0x4cb   :  { %4071 = vmatpush3.bf16.msra.mxu1 %v4068_v11 }
 0x4ce   :  { %3888 = vmatmul.mubr.msk.f32.vlgmr.msra.gmra.mrb[84].mxu1 %vm1152_vm1, %v5798_v32 }
 0x4cf   :  { %3890 = vmatprep.mubr.msk.f32.mxu1 %vm1152_vm1, %v5805_v4 }
 0x4d2   :  { %3891 = vmatmul.mubr.msk.f32.gmra.mrb[86].mxu1 %vm1152_vm1, %v5812_v58 }
 0x4d3   :  { %3893 = vmatprep.mubr.msk.f32.mxu1 %vm1152_vm1, %v5819_v2 }
 0x4d6   :  { %3894 = vmatmul.mubr.msk.f32.gmra.mrb[88].mxu1 %vm1152_vm1, %v5826_v7 }
 0x4d7   :  { %3896 = vmatprep.mubr.msk.f32.mxu1 %vm1152_vm1, %v5833_v3 }
 0x4da   :  { %3897 = vmatmul.mubr.msk.f32.gmra.mrb[90].mxu1 %vm1152_vm1, %v5840_v8 }
 0x4db   :  { %3899 = vmatprep.mubr.msk.f32.mxu1 %vm1152_vm1, %v5847_v30 }
 0x4de   :  { %3900 = vmatmul.mubr.msk.f32.gmra.mrb[92].mxu1 %vm1152_vm1, %v5854_v21 }
 0x4df   :  { %3902 = vmatprep.mubr.msk.f32.mxu1 %vm1152_vm1, %v5861_v54 }
 0x4e2   :  { %3903 = vmatmul.mubr.msk.f32.gmra.mrb[94].mxu1 %vm1152_vm1, %v5868_v56 }
 0x4e3   :  { %3905 = vmatprep.mubr.msk.f32.mxu1 %vm1152_vm1, %v5875_v50 }
 0x4e6   :  { %3906 = vmatmul.mubr.msk.f32.gmra.mrb[96].mxu1 %vm1152_vm1, %v5882_v14 }
 0x4e7   :  { %3908 = vmatprep.mubr.msk.f32.mxu1 %vm1152_vm1, %v5889_v46 }
 0x4ea   :  { %3909 = vmatmul.mubr.msk.f32.gmra.mrb[98].mxu1 %vm1152_vm1, %v5896_v34 }
 0x4eb   :  { %3951 = vmatprep.mubr.msk.f32.mxu1 %vm1152_vm1, %v5663_v15 }
 0x5a1   :  { %v3889_v48 = vpop.f32.mrb[84].mxu1 }
 0x5a2   :  { %v2128_v36 = vadd.f32 %v3889_v48, %v603_v51  ;;  %v2122_v20 = vpop.f32.mrb[85].mxu1 }
 0x5a3   :  { %v2123_v55 = vadd.f32 %v2122_v20, %v597_v60  ;;  %v6386_v60 = vld [vmem:[#allocation64_spill] sm:$0xff] }
 0x5a4   :  { %v651_v48 = vadd.f32 %v6386_v60, %v5261_v41  ;;  %v6387_v20 = vld [vmem:[#allocation60_spill] sm:$0xff]  ;;  %v3506_v43 = vmul.f32 -1.442695, %v2128_v36 }
 0x5a5   :  { %v3892_v24 = vpop.f32.mrb[86].mxu1  ;;  %v645_v47 = vadd.f32 %v6387_v20, %v5251_v22 }
 0x5a6   :  { %v2138_v38 = vadd.f32 %v3892_v24, %v615_v27  ;;  %v2132_v17 = vpop.f32.mrb[87].mxu1  ;;  %4400 = vpow2.f32 %v3506_v43  ;;  %v6392_v43 = vld [vmem:[#allocation88_spill] sm:$0xff] }
 0x5a7   :  { %v2133_v15 = vadd.f32 %v2132_v17, %v609_v37  ;;  %v3505_v17 = vmul.f32 -1.442695, %v2123_v55 }
 0x5a9   :  { %v3895_v18 = vpop.f32.mrb[88].mxu1  ;;  %4402 = vpow2.f32 %v3505_v17 }
 0x5aa   :  { %v2148_v42 = vadd.f32 %v3895_v18, %v627_v57  ;;  %v2142_v29 = vpop.f32.mrb[89].mxu1  ;;  %v6388_v57 = vld [vmem:[#allocation72_spill] sm:$0xff] }
 0x5ab   :  { %v2143_v28 = vadd.f32 %v2142_v29, %v621_v0  ;;  %v663_v23 = vadd.f32 %v6388_v57, %v5282_v44  ;;  %v6389_v0 = vld [vmem:[#allocation68_spill] sm:$0xff]  ;;  %v687_v57 = vadd.f32 %v6392_v43, %v5190_v19 }
 0x5ac   :  { %v657_v18 = vadd.f32 %v6389_v0, %v5271_v63  ;;  %v3510_v31 = vmul.f32 -1.442695, %v2148_v42  ;;  %v6393_v42 = vld [vmem:[#allocation84_spill] sm:$0xff]  ;;  %v3507_v0 = vmul.f32 -1.442695, %v2133_v15 }
 0x5ad   :  { %v3898_v11 = vpop.f32.mrb[90].mxu1  ;;  %v3509_v60 = vmul.f32 -1.442695, %v2143_v28  ;;  %v681_v17 = vadd.f32 %v6393_v42, %v5181_v13 }
 0x5ae   :  { %v2158_v40 = vadd.f32 %v3898_v11, %v639_v62  ;;  %v2152_v51 = vpop.f32.mrb[91].mxu1  ;;  %v6390_v11 = vld [vmem:[#allocation80_spill] sm:$0xff]  ;;  %4404 = vpow2.f32 %v3510_v31 }
 0x5af   :  { %v2153_v52 = vadd.f32 %v2152_v51, %v633_v25  ;;  %v675_v36 = vadd.f32 %v6390_v11, %v5173_v9  ;;  %v6391_v51 = vld [vmem:[#allocation76_spill] sm:$0xff]  ;;  %4406 = vpow2.f32 %v3509_v60 }
 0x5b0   :  { %v669_v55 = vadd.f32 %v6391_v51, %v5160_v6  ;;  %v4401_v31 = vpop.eup %4400 }
 0x5b1   :  { %v3901_v27 = vpop.f32.mrb[92].mxu1 }
 0x5b2   :  { %v2168_v37 = vadd.f32 %v3901_v27, %v651_v48  ;;  %v2162_v24 = vpop.f32.mrb[93].mxu1  ;;  %v3508_v27 = vmul.f32 -1.442695, %v2138_v38 }
 0x5b3   :  { %v2163_v16 = vadd.f32 %v2162_v24, %v645_v47 }
 0x5b5   :  { %v3904_v29 = vpop.f32.mrb[94].mxu1 }
 0x5b6   :  { %v2178_v35 = vadd.f32 %v3904_v29, %v663_v23  ;;  %v2172_v62 = vpop.f32.mrb[95].mxu1 }
 0x5b7   :  { %v2173_v25 = vadd.f32 %v2172_v62, %v657_v18  ;;  %v3512_v62 = vmul.f32 -1.442695, %v2158_v40  ;;  %v3513_v40 = vmul.f32 -1.442695, %v2163_v16 }
 0x5b8   :  { %v3516_v42 = vmul.f32 -1.442695, %v2178_v35 }
 0x5b9   :  { %v3907_v48 = vpop.f32.mrb[96].mxu1 }
 0x5ba   :  { %v2188_v20 = vadd.f32 %v3907_v48, %v675_v36  ;;  %v2182_v47 = vpop.f32.mrb[97].mxu1  ;;  %v3511_v36 = vmul.f32 -1.442695, %v2153_v52 }
 0x5bb   :  { %v2183_v24 = vadd.f32 %v2182_v47, %v669_v55  ;;  %v4403_v55 = vpop.eup %4402  ;;  %v3514_v47 = vmul.f32 -1.442695, %v2168_v37  ;;  %v3515_v37 = vmul.f32 -1.442695, %v2173_v25 }
 0x5bc   :  { %v3518_v23 = vmul.f32 -1.442695, %v2188_v20  ;;  %v2250_v20 = vadd.f32 1.0, %v4401_v31  ;;  %v2249_v15 = vadd.f32 1.0, %v4403_v55  ;;  %v4405_v60 = vpop.eup %4404 }
 0x5bd   :  { %v3517_v18 = vmul.f32 -1.442695, %v2183_v24  ;;  %v3910_v29 = vpop.f32.mrb[98].mxu1  ;;  %v4407_v24 = vpop.eup %4406  ;;  %v2254_v52 = vadd.f32 1.0, %v4405_v60 }
 0x5be   :  { %4408 = vpow2.f32 %v3518_v23  ;;  %v2198_v28 = vadd.f32 %v3910_v29, %v687_v57  ;;  %v2192_v11 = vpop.f32.mrb[99].mxu1 }
 0x5bf   :  { %4410 = vpow2.f32 %v3508_v27  ;;  %v2193_v38 = vadd.f32 %v2192_v11, %v681_v17 }
 0x5c0   :  { %4412 = vpow2.f32 %v3517_v18  ;;  %v3520_v51 = vmul.f32 -1.442695, %v2198_v28 }
 0x5c1   :  { %4414 = vpow2.f32 %v3507_v0  ;;  %v3519_v48 = vmul.f32 -1.442695, %v2193_v38  ;;  %v2253_v0 = vadd.f32 1.0, %v4407_v24 }
 0x5c2   :  { %4416 = vpow2.f32 %v3512_v62 }
 0x5c3   :  { %4418 = vpow2.f32 %v3511_v36 }
 0x5c4   :  { %4420 = vpow2.f32 %v3520_v51 }
 0x5c5   :  { %4422 = vpow2.f32 %v3519_v48 }
 0x5c6   :  { %4424 = vrcp.f32 %v2250_v20 }
 0x5c7   :  { %4426 = vrcp.f32 %v2249_v15 }
 0x5c8   :  { %v4409_v27 = vpop.eup %4408  ;;  %4428 = vpow2.f32 %v3514_v47 }
 0x5c9   :  { %v4411_v43 = vpop.eup %4410  ;;  %v2262_v57 = vadd.f32 1.0, %v4409_v27  ;;  %4430 = vpow2.f32 %v3513_v40 }
 0x5ca   :  { %v4413_v23 = vpop.eup %4412  ;;  %v2252_v35 = vadd.f32 1.0, %v4411_v43 }
 0x5cb   :  { %v4415_v17 = vpop.eup %4414  ;;  %4432 = vrcp.f32 %v2262_v57  ;;  %v2261_v18 = vadd.f32 1.0, %v4413_v23 }
 0x5cc   :  { %v4417_v29 = vpop.eup %4416  ;;  %4434 = vrcp.f32 %v2254_v52  ;;  %v2251_v48 = vadd.f32 1.0, %v4415_v17 }
 0x5cd   :  { %v4419_v62 = vpop.eup %4418  ;;  %4436 = vrcp.f32 %v2261_v18  ;;  %v2256_v11 = vadd.f32 1.0, %v4417_v29 }
 0x5ce   :  { %v4421_v16 = vpop.eup %4420  ;;  %4438 = vpow2.f32 %v3516_v42  ;;  %v2255_v38 = vadd.f32 1.0, %v4419_v62 }
 0x5cf   :  { %v4423_v28 = vpop.eup %4422  ;;  %4440 = vrcp.f32 %v2253_v0  ;;  %v2264_v36 = vadd.f32 1.0, %v4421_v16 }
 0x5d0   :  { %4442 = vpow2.f32 %v3515_v37  ;;  %v2263_v31 = vadd.f32 1.0, %v4423_v28  ;;  %v4425_v51 = vpop.eup %4424 }
 0x5d1   :  { %4444 = vrcp.f32 %v2264_v36  ;;  %v4427_v55 = vpop.eup %4426 }
 0x5d2   :  { %4446 = vrcp.f32 %v2263_v31  ;;  %v4429_v20 = vpop.eup %4428 }
 0x5d3   :  { %4448 = vrcp.f32 %v2256_v11  ;;  %v4431_v25 = vpop.eup %4430  ;;  %v2258_v23 = vadd.f32 1.0, %v4429_v20 }
 0x5d4   :  { %4450 = vrcp.f32 %v2255_v38  ;;  %v2257_v29 = vadd.f32 1.0, %v4431_v25 }
 0x5d5   :  { %v4433_v15 = vpop.eup %4432  ;;  %4452 = vrcp.f32 %v2252_v35 }
 0x5d6   :  { %v4435_v60 = vpop.eup %4434  ;;  %4454 = vrcp.f32 %v2251_v48  ;;  %v2298_v47 = vmul.f32 2.0, %v4433_v15 }
 0x5d7   :  { %v4437_v40 = vpop.eup %4436  ;;  %v2306_v42 = vmul.f32 %v4435_v60, %v5780_v49  ;;  %4456 = vrcp.f32 %v2258_v23 }
 0x5d8   :  { %v4439_v24 = vpop.eup %4438  ;;  %v3522_v27 = vadd.f32 -1.0, %v2298_v47  ;;  %v2297_v52 = vmul.f32 2.0, %v4437_v40 }
 0x5d9   :  { %v4441_v57 = vpop.eup %4440  ;;  %v2260_v35 = vadd.f32 1.0, %v4439_v24 }
 0x5da   :  { %v4443_v43 = vpop.eup %4442  ;;  %v2310_v17 = vmul.f32 %v4425_v51, %v3522_v27  ;;  %v3521_v0 = vadd.f32 -1.0, %v2297_v52  ;;  %v2305_v16 = vmul.f32 %v4441_v57, %v5784_v5 }
 0x5db   :  { %v4445_v18 = vpop.eup %4444  ;;  %v2259_v20 = vadd.f32 1.0, %v4443_v43 }
 0x5dc   :  { %v4447_v37 = vpop.eup %4446  ;;  %v5935_v62 = vadd.f32 %v2310_v17, %v2306_v42  ;;  %v2309_v28 = vmul.f32 %v4427_v55, %v3521_v0  ;;  %v2300_v11 = vmul.f32 2.0, %v4445_v18 }
 0x5dd   :  { %v4449_v36 = vpop.eup %4448  ;;  %v2299_v38 = vmul.f32 2.0, %v4447_v37 }
 0x5de   :  { %v4451_v31 = vpop.eup %4450  ;;  %4458 = vtanh.f32 %v5935_v62  ;;  %v5939_v48 = vadd.f32 %v2309_v28, %v2305_v16  ;;  %v3524_v49 = vadd.f32 -1.0, %v2300_v11  ;;  %v2308_v5 = vmul.f32 %v4449_v36, %v5789_v1  ;;  %v4704_v28 = vld [vmem:[%s6239_s2] sm:$0xff] }
 0x5df   :  { %v4453_v51 = vpop.eup %4452  ;;  %4460 = vrcp.f32 %v2257_v29  ;;  %v3523_v25 = vadd.f32 -1.0, %v2299_v38  ;;  %v2307_v60 = vmul.f32 %v4451_v31, %v5791_v39  ;;  %v6394_v11 = vld [vmem:[#allocation35_spill] sm:$0xff] }
 0x5e0   :  { %v4455_v15 = vpop.eup %4454  ;;  %4462 = vtanh.f32 %v5939_v48  ;;  %v2312_v55 = vmul.f32 %v4453_v51, %v3524_v49  ;;  %v605_v36 = vadd.f32 %v6394_v11, %v5175_v10  ;;  %v6395_v38 = vld [vmem:[#allocation31_spill] sm:$0xff] }
 0x5e1   :  { %v2311_v47 = vmul.f32 %v4455_v15, %v3523_v25  ;;  %4464 = vrcp.f32 %v2260_v35  ;;  %v4457_v27 = vpop.eup %4456  ;;  %v599_v31 = vadd.f32 %v6395_v38, %v6345_v59  ;;  %v6396_v25 = vld [vmem:[#allocation43_spill] sm:$0xff] }
 0x5e2   :  { %v5944_v40 = vadd.f32 %v2312_v55, %v2308_v5  ;;  %4466 = vrcp.f32 %v2259_v20  ;;  %v617_v15 = vadd.f32 %v6396_v25, %v5208_v33  ;;  %v6397_v5 = vld [vmem:[#allocation39_spill] sm:$0xff] }
 0x5e3   :  { %v5946_v24 = vadd.f32 %v2311_v47, %v2307_v60  ;;  %v611_v55 = vadd.f32 %v6397_v5, %v5199_v26 }
 0x5e4   :  { %4468 = vtanh.f32 %v5944_v40 }
 0x5e5   :  { %4470 = vtanh.f32 %v5946_v24 }
 0x5e8   :  { %v4459_v52 = vpop.eup %4458 }
 0x5e9   :  { %v4461_v57 = vpop.eup %4460  ;;  %v2322_v23 = vmul.f32 %v4459_v52, %v4457_v27 }
 0x5ea   :  { %v4463_v43 = vpop.eup %4462 }
 0x5eb   :  { %v2321_v1 = vmul.f32 %v4463_v43, %v4461_v57  ;;  %v4465_v42 = vpop.eup %4464  ;;  %v6398_v57 = vld [vmem:[#allocation50_spill] sm:$0xff] }
 0x5ec   :  { %v4467_v17 = vpop.eup %4466  ;;  %v6399_v43 = vld [vmem:[#allocation46_spill] sm:$0xff] }
 0x5ed   :  { %v4072_v39 = vpack.c.bf16 %v2322_v23, %v2321_v1  ;;  %v629_v23 = vadd.f32 %v6398_v57, %v5179_v12  ;;  %v623_v1 = vadd.f32 %v6399_v43, %v6350_v45 }
 0x5ee   :  { %v4469_v0 = vpop.eup %4468 }
 0x5ef   :  { %v4471_v18 = vpop.eup %4470  ;;  %4073 = vmatprep.subr.bf16.mxu0 %v4072_v39  ;;  %v2324_v29 = vmul.f32 %v4469_v0, %v4465_v42 }
 0x5f0   :  { %4075 = vmatpush3.bf16.msra.mxu0 %v4072_v39  ;;  %v2323_v37 = vmul.f32 %v4471_v18, %v4467_v17  ;;  %v6400_v18 = vld [vmem:[#allocation58_spill] sm:$0xff] }
 0x5f2   :  { %v4076_v16 = vpack.c.bf16 %v2324_v29, %v2323_v37  ;;  %v641_v29 = vadd.f32 %v6400_v18, %v5242_v61  ;;  %v6401_v37 = vld [vmem:[#allocation54_spill] sm:$0xff] }
 0x5f4   :  { %4077 = vmatprep.subr.bf16.mxu0 %v4076_v16 }
 0x5f5   :  { %4079 = vmatpush3.bf16.msra.mxu0 %v4076_v16  ;;  %v635_v16 = vadd.f32 %v6401_v37, %v5233_v53 }
 0x5f8   :  { %3920 = vmatmul.mubr.msk.f32.vlgmr.msra.gmra.mrb[92].mxu0 %vm1152_vm1, %v5798_v32 }
 0x5f9   :  { %3922 = vmatprep.mubr.msk.f32.mxu0 %vm1152_vm1, %v5805_v4 }
 0x5fc   :  { %3923 = vmatmul.mubr.msk.f32.gmra.mrb[94].mxu0 %vm1152_vm1, %v5812_v58 }
 0x5fd   :  { %3925 = vmatprep.mubr.msk.f32.mxu0 %vm1152_vm1, %v5819_v2 }
 0x600   :  { %3926 = vmatmul.mubr.msk.f32.gmra.mrb[96].mxu0 %vm1152_vm1, %v5826_v7 }
 0x601   :  { %3928 = vmatprep.mubr.msk.f32.mxu0 %vm1152_vm1, %v5833_v3 }
 0x604   :  { %3929 = vmatmul.mubr.msk.f32.gmra.mrb[98].mxu0 %vm1152_vm1, %v5840_v8 }
 0x605   :  { %3931 = vmatprep.mubr.msk.f32.mxu0 %vm1152_vm1, %v5847_v30 }
 0x608   :  { %3932 = vmatmul.mubr.msk.f32.gmra.mrb[100].mxu0 %vm1152_vm1, %v5854_v21 }
 0x609   :  { %3934 = vmatprep.mubr.msk.f32.mxu0 %vm1152_vm1, %v5861_v54 }
 0x60c   :  { %3935 = vmatmul.mubr.msk.f32.gmra.mrb[102].mxu0 %vm1152_vm1, %v5868_v56 }
 0x60d   :  { %3937 = vmatprep.mubr.msk.f32.mxu0 %vm1152_vm1, %v5875_v50 }
 0x610   :  { %3938 = vmatmul.mubr.msk.f32.gmra.mrb[104].mxu0 %vm1152_vm1, %v5882_v14 }
 0x611   :  { %3940 = vmatprep.mubr.msk.f32.mxu0 %vm1152_vm1, %v5889_v46 }
 0x614   :  { %3941 = vmatmul.mubr.msk.f32.gmra.mrb[106].mxu0 %vm1152_vm1, %v5896_v34 }
 0x615   :  { %3983 = vmatprep.mubr.msk.f32.mxu0 %vm1152_vm1, %v4704_v28 }
 0x6cb   :  { %v3921_v35 = vpop.f32.mrb[92].mxu0 }
 0x6cc   :  { %v2413_v49 = vadd.f32 %v3921_v35, %v605_v36  ;;  %v2407_v51 = vpop.f32.mrb[93].mxu0 }
 0x6cd   :  { %v2408_v20 = vadd.f32 %v2407_v51, %v599_v31  ;;  %v6402_v31 = vld [vmem:[#allocation66_spill] sm:$0xff] }
 0x6ce   :  { %v653_v35 = vadd.f32 %v6402_v31, %v5261_v41  ;;  %v6403_v51 = vld [vmem:[#allocation62_spill] sm:$0xff]  ;;  %v3542_v5 = vmul.f32 -1.442695, %v2413_v49 }
 0x6cf   :  { %v3924_v60 = vpop.f32.mrb[94].mxu0  ;;  %v647_v25 = vadd.f32 %v6403_v51, %v5251_v22 }
 0x6d0   :  { %v2423_v47 = vadd.f32 %v3924_v60, %v617_v15  ;;  %v2417_v27 = vpop.f32.mrb[95].mxu0  ;;  %4472 = vpow2.f32 %v3542_v5  ;;  %v6408_v5 = vld [vmem:[#allocation90_spill] sm:$0xff] }
 0x6d1   :  { %v2418_v52 = vadd.f32 %v2417_v27, %v611_v55  ;;  %v3541_v27 = vmul.f32 -1.442695, %v2408_v20 }
 0x6d3   :  { %v3927_v42 = vpop.f32.mrb[96].mxu0  ;;  %4474 = vpow2.f32 %v3541_v27 }
 0x6d4   :  { %v2433_v17 = vadd.f32 %v3927_v42, %v629_v23  ;;  %v2427_v39 = vpop.f32.mrb[97].mxu0  ;;  %v6404_v23 = vld [vmem:[#allocation74_spill] sm:$0xff] }
 0x6d5   :  { %v2428_v0 = vadd.f32 %v2427_v39, %v623_v1  ;;  %v665_v43 = vadd.f32 %v6404_v23, %v5282_v44  ;;  %v6405_v1 = vld [vmem:[#allocation70_spill] sm:$0xff]  ;;  %v689_v23 = vadd.f32 %v6408_v5, %v5190_v19 }
 0x6d6   :  { %v659_v42 = vadd.f32 %v6405_v1, %v5271_v63  ;;  %v3546_v37 = vmul.f32 -1.442695, %v2433_v17  ;;  %v6409_v17 = vld [vmem:[#allocation86_spill] sm:$0xff]  ;;  %v3543_v1 = vmul.f32 -1.442695, %v2418_v52 }
 0x6d7   :  { %v3930_v28 = vpop.f32.mrb[98].mxu0  ;;  %v3545_v31 = vmul.f32 -1.442695, %v2428_v0  ;;  %v683_v27 = vadd.f32 %v6409_v17, %v5181_v13 }
 0x6d8   :  { %v2443_v11 = vadd.f32 %v3930_v28, %v641_v29  ;;  %v2437_v36 = vpop.f32.mrb[99].mxu0  ;;  %v6406_v28 = vld [vmem:[#allocation82_spill] sm:$0xff]  ;;  %4476 = vpow2.f32 %v3546_v37 }
 0x6d9   :  { %v2438_v38 = vadd.f32 %v2437_v36, %v635_v16  ;;  %v677_v49 = vadd.f32 %v6406_v28, %v5173_v9  ;;  %v6407_v36 = vld [vmem:[#allocation78_spill] sm:$0xff]  ;;  %4478 = vpow2.f32 %v3545_v31 }
 0x6da   :  { %v671_v20 = vadd.f32 %v6407_v36, %v5160_v6  ;;  %v4473_v37 = vpop.eup %4472 }
 0x6db   :  { %v3933_v15 = vpop.f32.mrb[100].mxu0 }
 0x6dc   :  { %v2453_v55 = vadd.f32 %v3933_v15, %v653_v35  ;;  %v2447_v60 = vpop.f32.mrb[101].mxu0  ;;  %v3544_v15 = vmul.f32 -1.442695, %v2423_v47 }
 0x6dd   :  { %v2448_v57 = vadd.f32 %v2447_v60, %v647_v25 }
 0x6df   :  { %v3936_v39 = vpop.f32.mrb[102].mxu0 }
 0x6e0   :  { %v2463_v18 = vadd.f32 %v3936_v39, %v665_v43  ;;  %v2457_v29 = vpop.f32.mrb[103].mxu0 }
 0x6e1   :  { %v2458_v16 = vadd.f32 %v2457_v29, %v659_v42  ;;  %v3548_v29 = vmul.f32 -1.442695, %v2443_v11  ;;  %v3549_v11 = vmul.f32 -1.442695, %v2448_v57 }
 0x6e2   :  { %v3552_v17 = vmul.f32 -1.442695, %v2463_v18 }
 0x6e3   :  { %v3939_v35 = vpop.f32.mrb[104].mxu0 }
 0x6e4   :  { %v2473_v51 = vadd.f32 %v3939_v35, %v677_v49  ;;  %v2467_v25 = vpop.f32.mrb[105].mxu0  ;;  %v3547_v49 = vmul.f32 -1.442695, %v2438_v38 }
 0x6e5   :  { %v2468_v60 = vadd.f32 %v2467_v25, %v671_v20  ;;  %v4475_v20 = vpop.eup %4474  ;;  %v3550_v25 = vmul.f32 -1.442695, %v2453_v55  ;;  %v3551_v55 = vmul.f32 -1.442695, %v2458_v16 }
 0x6e6   :  { %v3554_v43 = vmul.f32 -1.442695, %v2473_v51  ;;  %v2535_v51 = vadd.f32 1.0, %v4473_v37  ;;  %v2534_v52 = vadd.f32 1.0, %v4475_v20  ;;  %v4477_v31 = vpop.eup %4476 }
 0x6e7   :  { %v3553_v42 = vmul.f32 -1.442695, %v2468_v60  ;;  %v3942_v39 = vpop.f32.mrb[106].mxu0  ;;  %v4479_v60 = vpop.eup %4478  ;;  %v2539_v38 = vadd.f32 1.0, %v4477_v31 }
 0x6e8   :  { %4480 = vpow2.f32 %v3554_v43  ;;  %v2483_v0 = vadd.f32 %v3942_v39, %v689_v23  ;;  %v2477_v28 = vpop.f32.mrb[107].mxu0 }
 0x6e9   :  { %4482 = vpow2.f32 %v3544_v15  ;;  %v2478_v47 = vadd.f32 %v2477_v28, %v683_v27 }
 0x6ea   :  { %4484 = vpow2.f32 %v3553_v42  ;;  %v3556_v36 = vmul.f32 -1.442695, %v2483_v0 }
 0x6eb   :  { %4486 = vpow2.f32 %v3543_v1  ;;  %v3555_v35 = vmul.f32 -1.442695, %v2478_v47  ;;  %v2538_v1 = vadd.f32 1.0, %v4479_v60 }
 0x6ec   :  { %4488 = vpow2.f32 %v3548_v29 }
 0x6ed   :  { %4490 = vpow2.f32 %v3547_v49 }
 0x6ee   :  { %4492 = vpow2.f32 %v3556_v36 }
 0x6ef   :  { %4494 = vpow2.f32 %v3555_v35 }
 0x6f0   :  { %4496 = vrcp.f32 %v2535_v51 }
 0x6f1   :  { %4498 = vrcp.f32 %v2534_v52 }
 0x6f2   :  { %v4481_v15 = vpop.eup %4480  ;;  %4500 = vpow2.f32 %v3550_v25 }
 0x6f3   :  { %v4483_v5 = vpop.eup %4482  ;;  %v2547_v23 = vadd.f32 1.0, %v4481_v15  ;;  %4502 = vpow2.f32 %v3549_v11 }
 0x6f4   :  { %v4485_v43 = vpop.eup %4484  ;;  %v2537_v18 = vadd.f32 1.0, %v4483_v5 }
 0x6f5   :  { %v4487_v27 = vpop.eup %4486  ;;  %4504 = vrcp.f32 %v2547_v23  ;;  %v2546_v42 = vadd.f32 1.0, %v4485_v43 }
 0x6f6   :  { %v4489_v39 = vpop.eup %4488  ;;  %4506 = vrcp.f32 %v2539_v38  ;;  %v2536_v35 = vadd.f32 1.0, %v4487_v27 }
 0x6f7   :  { %v4491_v29 = vpop.eup %4490  ;;  %4508 = vrcp.f32 %v2546_v42  ;;  %v2541_v28 = vadd.f32 1.0, %v4489_v39 }
 0x6f8   :  { %v4493_v57 = vpop.eup %4492  ;;  %4510 = vpow2.f32 %v3552_v17  ;;  %v2540_v47 = vadd.f32 1.0, %v4491_v29 }
 0x6f9   :  { %v4495_v0 = vpop.eup %4494  ;;  %4512 = vrcp.f32 %v2538_v1  ;;  %v2549_v49 = vadd.f32 1.0, %v4493_v57 }
 0x6fa   :  { %4514 = vpow2.f32 %v3551_v55  ;;  %v2548_v37 = vadd.f32 1.0, %v4495_v0  ;;  %v4497_v36 = vpop.eup %4496 }
 0x6fb   :  { %4516 = vrcp.f32 %v2549_v49  ;;  %v4499_v20 = vpop.eup %4498 }
 0x6fc   :  { %4518 = vrcp.f32 %v2548_v37  ;;  %v4501_v51 = vpop.eup %4500 }
 0x6fd   :  { %4520 = vrcp.f32 %v2541_v28  ;;  %v4503_v16 = vpop.eup %4502  ;;  %v2543_v43 = vadd.f32 1.0, %v4501_v51 }
 0x6fe   :  { %4522 = vrcp.f32 %v2540_v47  ;;  %v2542_v39 = vadd.f32 1.0, %v4503_v16 }
 0x6ff   :  { %v4505_v52 = vpop.eup %4504  ;;  %4524 = vrcp.f32 %v2537_v18 }
 0x700   :  { %v4507_v31 = vpop.eup %4506  ;;  %4526 = vrcp.f32 %v2536_v35  ;;  %v2583_v25 = vmul.f32 2.0, %v4505_v52 }
 0x701   :  { %v4509_v11 = vpop.eup %4508  ;;  %v2591_v17 = vmul.f32 %v4507_v31, %v5935_v62  ;;  %4528 = vrcp.f32 %v2543_v43 }
 0x702   :  { %v4511_v60 = vpop.eup %4510  ;;  %v3558_v15 = vadd.f32 -1.0, %v2583_v25  ;;  %v2582_v38 = vmul.f32 2.0, %v4509_v11 }
 0x703   :  { %v4513_v23 = vpop.eup %4512  ;;  %v2545_v18 = vadd.f32 1.0, %v4511_v60 }
 0x704   :  { %v4515_v5 = vpop.eup %4514  ;;  %v2595_v27 = vmul.f32 %v4497_v36, %v3558_v15  ;;  %v3557_v1 = vadd.f32 -1.0, %v2582_v38  ;;  %v2590_v57 = vmul.f32 %v4513_v23, %v5939_v48 }
 0x705   :  { %v4517_v42 = vpop.eup %4516  ;;  %v2544_v51 = vadd.f32 1.0, %v4515_v5 }
 0x706   :  { %v4519_v55 = vpop.eup %4518  ;;  %v6017_v29 = vadd.f32 %v2595_v27, %v2591_v17  ;;  %v2594_v0 = vmul.f32 %v4499_v20, %v3557_v1  ;;  %v2585_v28 = vmul.f32 2.0, %v4517_v42 }
 0x707   :  { %v4521_v49 = vpop.eup %4520  ;;  %v2584_v47 = vmul.f32 2.0, %v4519_v55 }
 0x708   :  { %v4523_v37 = vpop.eup %4522  ;;  %4530 = vtanh.f32 %v6017_v29  ;;  %v6021_v35 = vadd.f32 %v2594_v0, %v2590_v57  ;;  %v3560_v62 = vadd.f32 -1.0, %v2585_v28  ;;  %v2593_v48 = vmul.f32 %v4521_v49, %v5944_v40  ;;  %v6414_v28 = vld [vmem:[#allocation65_spill] sm:$0xff] }
 0x709   :  { %v4525_v36 = vpop.eup %4524  ;;  %4532 = vrcp.f32 %v2542_v39  ;;  %v3559_v16 = vadd.f32 -1.0, %v2584_v47  ;;  %v2592_v31 = vmul.f32 %v4523_v37, %v5946_v24  ;;  %v788_v49 = vadd.f32 %v6414_v28, %v5179_v12  ;;  %v6415_v47 = vld [vmem:[#allocation61_spill] sm:$0xff] }
 0x70a   :  { %v4527_v52 = vpop.eup %4526  ;;  %4534 = vtanh.f32 %v6021_v35  ;;  %v2597_v20 = vmul.f32 %v4525_v36, %v3560_v62  ;;  %v782_v37 = vadd.f32 %v6415_v47, %v6350_v45 }
 0x70b   :  { %v2596_v25 = vmul.f32 %v4527_v52, %v3559_v16  ;;  %4536 = vrcp.f32 %v2545_v18  ;;  %v4529_v15 = vpop.eup %4528  ;;  %v6416_v16 = vld [vmem:[#allocation73_spill] sm:$0xff] }
 0x70c   :  { %v6026_v11 = vadd.f32 %v2597_v20, %v2593_v48  ;;  %4538 = vrcp.f32 %v2544_v51  ;;  %v800_v52 = vadd.f32 %v6416_v16, %v5242_v61  ;;  %v6417_v48 = vld [vmem:[#allocation69_spill] sm:$0xff] }
 0x70d   :  { %v6028_v60 = vadd.f32 %v2596_v25, %v2592_v31  ;;  %v794_v20 = vadd.f32 %v6417_v48, %v5233_v53 }
 0x70e   :  { %4540 = vtanh.f32 %v6026_v11 }
 0x70f   :  { %4542 = vtanh.f32 %v6028_v60 }
 0x712   :  { %v4531_v38 = vpop.eup %4530 }
 0x713   :  { %v4533_v23 = vpop.eup %4532  ;;  %v2607_v43 = vmul.f32 %v4531_v38, %v4529_v15 }
 0x714   :  { %v4535_v5 = vpop.eup %4534 }
 0x715   :  { %v2606_v40 = vmul.f32 %v4535_v5, %v4533_v23  ;;  %v4537_v17 = vpop.eup %4536  ;;  %v6418_v23 = vld [vmem:[#allocation81_spill] sm:$0xff] }
 0x716   :  { %v4539_v27 = vpop.eup %4538  ;;  %v6419_v5 = vld [vmem:[#allocation77_spill] sm:$0xff] }
 0x717   :  { %v4080_v24 = vpack.c.bf16 %v2607_v43, %v2606_v40  ;;  %v812_v43 = vadd.f32 %v6418_v23, %v5261_v41  ;;  %v806_v40 = vadd.f32 %v6419_v5, %v5251_v22 }
 0x718   :  { %v4541_v1 = vpop.eup %4540 }
 0x719   :  { %v4543_v42 = vpop.eup %4542  ;;  %4081 = vmatprep.subr.bf16.mxu1 %v4080_v24  ;;  %v2609_v39 = vmul.f32 %v4541_v1, %v4537_v17 }
 0x71a   :  { %4083 = vmatpush3.bf16.msra.mxu1 %v4080_v24  ;;  %v2608_v55 = vmul.f32 %v4543_v42, %v4539_v27 }
 0x71c   :  { %v4084_v57 = vpack.c.bf16 %v2609_v39, %v2608_v55  ;;  %v6420_v55 = vld [vmem:[#allocation89_spill] sm:$0xff] }
 0x71e   :  { %4085 = vmatprep.subr.bf16.mxu1 %v4084_v57 }
 0x71f   :  { %4087 = vmatpush3.bf16.msra.mxu1 %v4084_v57  ;;  %v824_v57 = vadd.f32 %v6420_v55, %v5282_v44 }
 0x722   :  { %3952 = vmatmul.mubr.msk.f32.vlgmr.msra.gmra.mrb[100].mxu1 %vm1152_vm1, %v5798_v32  ;;  %v6410_v32 = vld [vmem:[#allocation49_spill] sm:$0xff] }
 0x723   :  { %3954 = vmatprep.mubr.msk.f32.mxu1 %vm1152_vm1, %v5805_v4  ;;  %v764_v4 = vadd.f32 %v6410_v32, %v5175_v10  ;;  %v6421_v32 = vld [vmem:[#allocation85_spill] sm:$0xff] }
 0x726   :  { %3955 = vmatmul.mubr.msk.f32.gmra.mrb[102].mxu1 %vm1152_vm1, %v5812_v58  ;;  %v6411_v58 = vld [vmem:[#allocation45_spill] sm:$0xff] }
 0x727   :  { %3957 = vmatprep.mubr.msk.f32.mxu1 %vm1152_vm1, %v5819_v2  ;;  %v758_v2 = vadd.f32 %v6411_v58, %v6345_v59 }
 0x72a   :  { %3958 = vmatmul.mubr.msk.f32.gmra.mrb[104].mxu1 %vm1152_vm1, %v5826_v7 }
 0x72b   :  { %3960 = vmatprep.mubr.msk.f32.mxu1 %vm1152_vm1, %v5833_v3 }
 0x72e   :  { %3961 = vmatmul.mubr.msk.f32.gmra.mrb[106].mxu1 %vm1152_vm1, %v5840_v8 }
 0x72f   :  { %3963 = vmatprep.mubr.msk.f32.mxu1 %vm1152_vm1, %v5847_v30 }
 0x732   :  { %3964 = vmatmul.mubr.msk.f32.gmra.mrb[108].mxu1 %vm1152_vm1, %v5854_v21  ;;  %v6412_v21 = vld [vmem:[#allocation57_spill] sm:$0xff] }
 0x733   :  { %3966 = vmatprep.mubr.msk.f32.mxu1 %vm1152_vm1, %v5861_v54  ;;  %v776_v54 = vadd.f32 %v6412_v21, %v5208_v33 }
 0x736   :  { %3967 = vmatmul.mubr.msk.f32.gmra.mrb[110].mxu1 %vm1152_vm1, %v5868_v56  ;;  %v6413_v56 = vld [vmem:[#allocation53_spill] sm:$0xff] }
 0x737   :  { %3969 = vmatprep.mubr.msk.f32.mxu1 %vm1152_vm1, %v5875_v50  ;;  %v770_v50 = vadd.f32 %v6413_v56, %v5199_v26  ;;  %v6423_v56 = vld [vmem:[#allocation92_spill] sm:$0xff] }
 0x73a   :  { %3970 = vmatmul.mubr.msk.f32.gmra.mrb[112].mxu1 %vm1152_vm1, %v5882_v14 }
 0x73b   :  { %3972 = vmatprep.mubr.msk.f32.mxu1 %vm1152_vm1, %v5889_v46 }
 0x73e   :  { %3973 = vmatmul.mubr.msk.f32.gmra.mrb[114].mxu1 %vm1152_vm1, %v5896_v34 }
 0x7f5   :  { %v3953_v7 = vpop.f32.mrb[100].mxu1 }
 0x7f6   :  { %v2698_v3 = vadd.f32 %v3953_v7, %v764_v4  ;;  %v2692_v8 = vpop.f32.mrb[101].mxu1  ;;  %v818_v4 = vadd.f32 %v6421_v32, %v5271_v63 }
 0x7f7   :  { %v2693_v30 = vadd.f32 %v2692_v8, %v758_v2 }
 0x7f8   :  { %v3578_v27 = vmul.f32 -1.442695, %v2698_v3 }
 0x7f9   :  { %v3956_v14 = vpop.f32.mrb[102].mxu1  ;;  %v3577_v42 = vmul.f32 -1.442695, %v2693_v30  ;;  %v830_v30 = vadd.f32 %v6423_v56, %v5160_v6 }
 0x7fa   :  { %v2708_v46 = vadd.f32 %v3956_v14, %v776_v54  ;;  %v2702_v0 = vpop.f32.mrb[103].mxu1  ;;  %4544 = vpow2.f32 %v3578_v27  ;;  %v6422_v54 = vld [vmem:[#allocation94_spill] sm:$0xff] }
 0x7fb   :  { %v2703_v34 = vadd.f32 %v2702_v0, %v770_v50  ;;  %4546 = vpow2.f32 %v3577_v42  ;;  %v836_v3 = vadd.f32 %v6422_v54, %v5173_v9 }
 0x7fd   :  { %v3959_v18 = vpop.f32.mrb[104].mxu1 }
 0x7fe   :  { %v2718_v62 = vadd.f32 %v3959_v18, %v788_v49  ;;  %v2712_v36 = vpop.f32.mrb[105].mxu1  ;;  %v3580_v49 = vmul.f32 -1.442695, %v2708_v46 }
 0x7ff   :  { %v2713_v51 = vadd.f32 %v2712_v36, %v782_v37  ;;  %v6424_v37 = vld [vmem:[#allocation98_spill] sm:$0xff] }
 0x800   :  { %v3582_v8 = vmul.f32 -1.442695, %v2718_v62  ;;  %v848_v18 = vadd.f32 %v6424_v37, %v5190_v19  ;;  %v6425_v62 = vld [vmem:[#allocation96_spill] sm:$0xff] }
 0x801   :  { %v3962_v31 = vpop.f32.mrb[106].mxu1  ;;  %v3581_v50 = vmul.f32 -1.442695, %v2713_v51  ;;  %v842_v16 = vadd.f32 %v6425_v62, %v5181_v13 }
 0x802   :  { %v2728_v25 = vadd.f32 %v3962_v31, %v800_v52  ;;  %v2722_v15 = vpop.f32.mrb[107].mxu1  ;;  %4548 = vpow2.f32 %v3582_v8  ;;  %v3579_v52 = vmul.f32 -1.442695, %v2703_v34 }
 0x803   :  { %v2723_v38 = vadd.f32 %v2722_v15, %v794_v20  ;;  %4550 = vpow2.f32 %v3581_v50 }
 0x804   :  { %v3584_v31 = vmul.f32 -1.442695, %v2728_v25 }
 0x805   :  { %v3965_v17 = vpop.f32.mrb[108].mxu1  ;;  %v3583_v23 = vmul.f32 -1.442695, %v2723_v38 }
 0x806   :  { %v2738_v24 = vadd.f32 %v3965_v17, %v812_v43  ;;  %v2732_v1 = vpop.f32.mrb[109].mxu1  ;;  %v4545_v43 = vpop.eup %4544 }
 0x807   :  { %v2733_v39 = vadd.f32 %v2732_v1, %v806_v40  ;;  %v4547_v40 = vpop.eup %4546  ;;  %v2820_v27 = vadd.f32 1.0, %v4545_v43 }
 0x808   :  { %v2819_v34 = vadd.f32 1.0, %v4547_v40  ;;  %v3586_v42 = vmul.f32 -1.442695, %v2738_v24 }
 0x809   :  { %v3968_v58 = vpop.f32.mrb[110].mxu1  ;;  %v3585_v25 = vmul.f32 -1.442695, %v2733_v39 }
 0x80a   :  { %v2748_v2 = vadd.f32 %v3968_v58, %v824_v57  ;;  %v2742_v7 = vpop.f32.mrb[111].mxu1 }
 0x80b   :  { %v2743_v21 = vadd.f32 %v2742_v7, %v818_v4 }
 0x80c   :  { %v4549_v1 = vpop.eup %4548  ;;  %v3588_v7 = vmul.f32 -1.442695, %v2748_v2 }
 0x80d   :  { %v3971_v14 = vpop.f32.mrb[112].mxu1  ;;  %v4551_v55 = vpop.eup %4550  ;;  %v2824_v38 = vadd.f32 1.0, %v4549_v1  ;;  %v3587_v24 = vmul.f32 -1.442695, %v2743_v21 }
 0x80e   :  { %v2758_v0 = vadd.f32 %v3971_v14, %v836_v3  ;;  %v2752_v28 = vpop.f32.mrb[113].mxu1  ;;  %v2823_v54 = vadd.f32 1.0, %v4551_v55 }
 0x80f   :  { %v2753_v47 = vadd.f32 %v2752_v28, %v830_v30 }
 0x810   :  { %v3590_v36 = vmul.f32 -1.442695, %v2758_v0 }
 0x811   :  { %v3589_v48 = vmul.f32 -1.442695, %v2753_v47  ;;  %v3974_v20 = vpop.f32.mrb[114].mxu1 }
 0x812   :  { %4552 = vpow2.f32 %v3590_v36  ;;  %v2768_v51 = vadd.f32 %v3974_v20, %v848_v18  ;;  %v2762_v15 = vpop.f32.mrb[115].mxu1 }
 0x813   :  { %4554 = vpow2.f32 %v3580_v49  ;;  %v2763_v46 = vadd.f32 %v2762_v15, %v842_v16 }
 0x814   :  { %4556 = vpow2.f32 %v3589_v48  ;;  %v3592_v5 = vmul.f32 -1.442695, %v2768_v51 }
 0x815   :  { %4558 = vpow2.f32 %v3579_v52  ;;  %v3591_v17 = vmul.f32 -1.442695, %v2763_v46 }
 0x816   :  { %4560 = vpow2.f32 %v3584_v31 }
 0x817   :  { %4562 = vpow2.f32 %v3583_v23 }
 0x818   :  { %4564 = vpow2.f32 %v3592_v5 }
 0x819   :  { %4566 = vpow2.f32 %v3591_v17 }
 0x81a   :  { %4568 = vrcp.f32 %v2820_v27 }
 0x81b   :  { %4570 = vrcp.f32 %v2819_v34 }
 0x81c   :  { %v4553_v57 = vpop.eup %4552  ;;  %4572 = vpow2.f32 %v3586_v42 }
 0x81d   :  { %v4555_v32 = vpop.eup %4554  ;;  %v2832_v4 = vadd.f32 1.0, %v4553_v57  ;;  %4574 = vpow2.f32 %v3585_v25 }
 0x81e   :  { %v4557_v58 = vpop.eup %4556  ;;  %v2822_v2 = vadd.f32 1.0, %v4555_v32 }
 0x81f   :  { %v4559_v8 = vpop.eup %4558  ;;  %4576 = vrcp.f32 %v2832_v4  ;;  %v2831_v3 = vadd.f32 1.0, %v4557_v58 }
 0x820   :  { %v4561_v56 = vpop.eup %4560  ;;  %4578 = vrcp.f32 %v2824_v38  ;;  %v2821_v18 = vadd.f32 1.0, %v4559_v8 }
 0x821   :  { %v4563_v30 = vpop.eup %4562  ;;  %4580 = vrcp.f32 %v2831_v3  ;;  %v2826_v14 = vadd.f32 1.0, %v4561_v56 }
 0x822   :  { %v4565_v39 = vpop.eup %4564  ;;  %4582 = vpow2.f32 %v3588_v7  ;;  %v2825_v28 = vadd.f32 1.0, %v4563_v30 }
 0x823   :  { %v4567_v50 = vpop.eup %4566  ;;  %4584 = vrcp.f32 %v2823_v54  ;;  %v2834_v0 = vadd.f32 1.0, %v4565_v39 }
 0x824   :  { %4586 = vpow2.f32 %v3587_v24  ;;  %v2833_v49 = vadd.f32 1.0, %v4567_v50  ;;  %v4569_v47 = vpop.eup %4568 }
 0x825   :  { %4588 = vrcp.f32 %v2834_v0  ;;  %v4571_v37 = vpop.eup %4570 }
 0x826   :  { %4590 = vrcp.f32 %v2833_v49  ;;  %v4573_v36 = vpop.eup %4572 }
 0x827   :  { %4592 = vrcp.f32 %v2826_v14  ;;  %v4575_v21 = vpop.eup %4574  ;;  %v2828_v23 = vadd.f32 1.0, %v4573_v36 }
 0x828   :  { %4594 = vrcp.f32 %v2825_v28  ;;  %v2827_v27 = vadd.f32 1.0, %v4575_v21 }
 0x829   :  { %v4577_v62 = vpop.eup %4576  ;;  %4596 = vrcp.f32 %v2822_v2 }
 0x82a   :  { %v4579_v16 = vpop.eup %4578  ;;  %4598 = vrcp.f32 %v2821_v18  ;;  %v2868_v52 = vmul.f32 2.0, %v4577_v62 }
 0x82b   :  { %v4581_v48 = vpop.eup %4580  ;;  %v2876_v43 = vmul.f32 %v4579_v16, %v6017_v29  ;;  %4600 = vrcp.f32 %v2828_v23  ;;  %v4711_v23 = vld [vmem:[%s6239_s2 + $0x38] sm:$0xff] }
 0x82c   :  { %v4583_v20 = vpop.eup %4582  ;;  %v3594_v31 = vadd.f32 -1.0, %v2868_v52  ;;  %v2867_v51 = vmul.f32 2.0, %v4581_v48  ;;  %v4705_v52 = vld [vmem:[%s6239_s2 + $0x8] sm:$0xff]  ;;  %v4706_v48 = vld [vmem:[%s6239_s2 + $0x10] sm:$0xff] }
 0x82d   :  { %v4585_v15 = vpop.eup %4584  ;;  %v2830_v4 = vadd.f32 1.0, %v4583_v20  ;;  %v4707_v20 = vld [vmem:[%s6239_s2 + $0x18] sm:$0xff] }
 0x82e   :  { %v4587_v46 = vpop.eup %4586  ;;  %v2880_v5 = vmul.f32 %v4569_v47, %v3594_v31  ;;  %v3593_v40 = vadd.f32 -1.0, %v2867_v51  ;;  %v2875_v42 = vmul.f32 %v4585_v15, %v6021_v35  ;;  %v4708_v31 = vld [vmem:[%s6239_s2 + $0x20] sm:$0xff]  ;;  %v4709_v51 = vld [vmem:[%s6239_s2 + $0x28] sm:$0xff]  ;;  %v4710_v15 = vld [vmem:[%s6239_s2 + $0x30] sm:$0xff] }
 0x82f   :  { %v4589_v17 = vpop.eup %4588  ;;  %v2829_v8 = vadd.f32 1.0, %v4587_v46  ;;  %v4712_v46 = vld [vmem:[%s6239_s2 + $0x40] sm:$0xff] }
 0x830   :  { %v4591_v34 = vpop.eup %4590  ;;  %v6095_v1 = vadd.f32 %v2880_v5, %v2876_v43  ;;  %v2879_v25 = vmul.f32 %v4571_v37, %v3593_v40  ;;  %v2870_v55 = vmul.f32 2.0, %v4589_v17  ;;  %v4713_v43 = vld [vmem:[%s6239_s2 + $0x48] sm:$0xff]  ;;  %v4714_v5 = vld [vmem:[%s6239_s2 + $0x50] sm:$0xff]  ;;  %v4715_v40 = vld [vmem:[%s6239_s2 + $0x58] sm:$0xff] }
 0x831   :  { %v4593_v57 = vpop.eup %4592  ;;  %v2869_v38 = vmul.f32 2.0, %v4591_v34  ;;  %v4716_v17 = vld [vmem:[%s6239_s2 + $0x60] sm:$0xff]  ;;  %v4718_v34 = vld [vmem:[%s6239_s2 + $0x70] sm:$0xff] }
 0x832   :  { %v4595_v32 = vpop.eup %4594  ;;  %4602 = vtanh.f32 %v6095_v1  ;;  %v6099_v58 = vadd.f32 %v2879_v25, %v2875_v42  ;;  %v3596_v29 = vadd.f32 -1.0, %v2870_v55  ;;  %v2878_v35 = vmul.f32 %v4593_v57, %v6026_v11  ;;  %v4719_v42 = vld [vmem:[%s6239_s2 + $0x78] sm:$0xff]  ;;  %v6427_v57 = vld [vmem:[#allocation51_spill] sm:$0xff] }
 0x833   :  { %v4597_v7 = vpop.eup %4596  ;;  %4604 = vrcp.f32 %v2827_v27  ;;  %v3595_v54 = vadd.f32 -1.0, %v2869_v38  ;;  %v2877_v24 = vmul.f32 %v4595_v32, %v6028_v60  ;;  %v4717_v27 = vld [vmem:[%s6239_s2 + $0x68] sm:$0xff]  ;;  %v4722_v25 = vmov 0.0|0.0   ;;  %v6428_v32 = vld [vmem:[#allocation47_spill] sm:$0xff] }
 0x834   :  { %v4599_v3 = vpop.eup %4598  ;;  %4606 = vtanh.f32 %v6099_v58  ;;  %v2882_v56 = vmul.f32 %v4597_v7, %v3596_v29  ;;  %4096 = vmatprep.subr.bf16.mxu1 %v4722_v25  ;;  %v6426_v55 = vmov 0.0   ;;  %v766_v38 = vadd.f32 %v6427_v57, %v5175_v10 }
 0x835   :  { %v2881_v30 = vmul.f32 %v4599_v3, %v3595_v54  ;;  %4608 = vrcp.f32 %v2830_v4  ;;  %v4601_v14 = vpop.eup %4600  ;;  %4015 = vmatprep.mubr.msk.f32.mxu1 %vm4723_vm2, %v6426_v55  ;;  %v760_v4 = vadd.f32 %v6428_v32, %v6345_v59  ;;  %v6429_v3 = vld [vmem:[#allocation59_spill] sm:$0xff] }
 0x836   :  { %v6104_v39 = vadd.f32 %v2882_v56, %v2878_v35  ;;  %4610 = vrcp.f32 %v2829_v8  ;;  %v778_v35 = vadd.f32 %v6429_v3, %v5208_v33  ;;  %v6430_v56 = vld [vmem:[#allocation55_spill] sm:$0xff] }
 0x837   :  { %v6106_v50 = vadd.f32 %v2881_v30, %v2877_v24  ;;  %v772_v24 = vadd.f32 %v6430_v56, %v5199_v26  ;;  %v6442_v56 = vld [vmem:[#allocation97_spill] sm:$0xff] }
 0x838   :  { %4612 = vtanh.f32 %v6104_v39 }
 0x839   :  { %4614 = vtanh.f32 %v6106_v50 }
 0x83c   :  { %v4603_v0 = vpop.eup %4602 }
 0x83d   :  { %v4605_v28 = vpop.eup %4604  ;;  %v2892_v49 = vmul.f32 %v4603_v0, %v4601_v14 }
 0x83e   :  { %v4607_v47 = vpop.eup %4606 }
 0x83f   :  { %v2891_v11 = vmul.f32 %v4607_v47, %v4605_v28  ;;  %v4609_v2 = vpop.eup %4608  ;;  %v6432_v47 = vld [vmem:[#allocation63_spill] sm:$0xff] }
 0x840   :  { %v4611_v37 = vpop.eup %4610  ;;  %v784_v59 = vadd.f32 %v6432_v47, %v6350_v45 }
 0x841   :  { %v4088_v60 = vpack.c.bf16 %v2892_v49, %v2891_v11  ;;  %v6431_v49 = vld [vmem:[#allocation67_spill] sm:$0xff] }
 0x842   :  { %v4613_v18 = vpop.eup %4612  ;;  %v790_v10 = vadd.f32 %v6431_v49, %v5179_v12 }
 0x843   :  { %v4615_v36 = vpop.eup %4614  ;;  %4089 = vmatprep.subr.bf16.mxu0 %v4088_v60  ;;  %v2894_v21 = vmul.f32 %v4613_v18, %v4609_v2  ;;  %v6433_v18 = vld [vmem:[#allocation75_spill] sm:$0xff] }
 0x844   :  { %4091 = vmatpush3.bf16.msra.mxu0 %v4088_v60  ;;  %v2893_v62 = vmul.f32 %v4615_v36, %v4611_v37  ;;  %v802_v33 = vadd.f32 %v6433_v18, %v5242_v61  ;;  %v6434_v36 = vld [vmem:[#allocation71_spill] sm:$0xff] }
 0x845   :  { %v796_v26 = vadd.f32 %v6434_v36, %v5233_v53  ;;  %v6437_v61 = vld [vmem:[#allocation91_spill] sm:$0xff] }
 0x846   :  { %v4092_v16 = vpack.c.bf16 %v2894_v21, %v2893_v62  ;;  %v6438_v53 = vld [vmem:[#allocation87_spill] sm:$0xff] }
 0x848   :  { %4093 = vmatprep.subr.bf16.mxu0 %v4092_v16 }
 0x849   :  { %4095 = vmatpush3.bf16.msra.mxu0 %v4092_v16 }
 0x84c   :  { %3984 = vmatmul.mubr.msk.f32.vlgmr.msra.gmra.mrb[108].mxu0 %vm1152_vm1, %v4705_v52 }
 0x84d   :  { %3986 = vmatprep.mubr.msk.f32.mxu0 %vm1152_vm1, %v4706_v48  ;;  %v6435_v48 = vld [vmem:[#allocation83_spill] sm:$0xff] }
 0x84e   :  { %v814_v12 = vadd.f32 %v6435_v48, %v5261_v41 }
 0x850   :  { %3987 = vmatmul.mubr.msk.f32.gmra.mrb[110].mxu0 %vm1152_vm1, %v4707_v20  ;;  %v6436_v20 = vld [vmem:[#allocation79_spill] sm:$0xff] }
 0x851   :  { %3989 = vmatprep.mubr.msk.f32.mxu0 %vm1152_vm1, %v4708_v31  ;;  %v808_v45 = vadd.f32 %v6436_v20, %v5251_v22  ;;  %v6439_v22 = vld [vmem:[#allocation95_spill] sm:$0xff] }
 0x852   :  { %v838_v57 = vadd.f32 %v6439_v22, %v5173_v9 }
 0x854   :  { %3990 = vmatmul.mubr.msk.f32.gmra.mrb[112].mxu0 %vm1152_vm1, %v4709_v51 }
 0x855   :  { %3992 = vmatprep.mubr.msk.f32.mxu0 %vm1152_vm1, %v4710_v15 }
 0x858   :  { %3993 = vmatmul.mubr.msk.f32.gmra.mrb[114].mxu0 %vm1152_vm1, %v4711_v23 }
 0x859   :  { %3995 = vmatprep.mubr.msk.f32.mxu0 %vm1152_vm1, %v4712_v46 }
 0x85c   :  { %3996 = vmatmul.mubr.msk.f32.gmra.mrb[116].mxu0 %vm1152_vm1, %v4713_v43 }
 0x85d   :  { %3998 = vmatprep.mubr.msk.f32.mxu0 %vm1152_vm1, %v4714_v5  ;;  %v826_v5 = vadd.f32 %v6437_v61, %v5282_v44 }
 0x860   :  { %3999 = vmatmul.mubr.msk.f32.gmra.mrb[118].mxu0 %vm1152_vm1, %v4715_v40  ;;  %v820_v40 = vadd.f32 %v6438_v53, %v5271_v63 }
 0x861   :  { %4001 = vmatprep.mubr.msk.f32.mxu0 %vm1152_vm1, %v4716_v17 }
 0x864   :  { %4002 = vmatmul.mubr.msk.f32.gmra.mrb[120].mxu0 %vm1152_vm1, %v4717_v27 }
 0x865   :  { %4004 = vmatprep.mubr.msk.f32.mxu0 %vm1152_vm1, %v4718_v34 }
 0x868   :  { %4005 = vmatmul.mubr.msk.f32.gmra.mrb[122].mxu0 %vm1152_vm1, %v4719_v42 }
 0x91f   :  { %v3985_v29 = vpop.f32.mrb[108].mxu0 }
 0x920   :  { %v2983_v7 = vadd.f32 %v3985_v29, %v766_v38  ;;  %v2977_v8 = vpop.f32.mrb[109].mxu0  ;;  %v6440_v38 = vld [vmem:[#allocation93_spill] sm:$0xff] }
 0x921   :  { %v2978_v54 = vadd.f32 %v2977_v8, %v760_v4  ;;  %v832_v32 = vadd.f32 %v6440_v38, %v5160_v6 }
 0x922   :  { %v3614_v51 = vmul.f32 -1.442695, %v2983_v7 }
 0x923   :  { %v3988_v30 = vpop.f32.mrb[110].mxu0  ;;  %v3613_v46 = vmul.f32 -1.442695, %v2978_v54  ;;  %v6441_v54 = vld [vmem:[#allocation99_spill] sm:$0xff] }
 0x924   :  { %v2993_v14 = vadd.f32 %v3988_v30, %v778_v35  ;;  %v2987_v0 = vpop.f32.mrb[111].mxu0  ;;  %4616 = vpow2.f32 %v3614_v51  ;;  %v850_v3 = vadd.f32 %v6441_v54, %v5190_v19 }
 0x925   :  { %v2988_v28 = vadd.f32 %v2987_v0, %v772_v24  ;;  %4618 = vpow2.f32 %v3613_v46  ;;  %v844_v24 = vadd.f32 %v6442_v56, %v5181_v13 }
 0x926   :  { %v3616_v8 = vmul.f32 -1.442695, %v2993_v14 }
 0x927   :  { %v3991_v11 = vpop.f32.mrb[112].mxu0  ;;  %v3615_v30 = vmul.f32 -1.442695, %v2988_v28 }
 0x928   :  { %v3003_v2 = vadd.f32 %v3991_v11, %v790_v10  ;;  %v2997_v37 = vpop.f32.mrb[113].mxu0 }
 0x929   :  { %v2998_v60 = vadd.f32 %v2997_v37, %v784_v59 }
 0x92a   :  { %v3618_v41 = vmul.f32 -1.442695, %v3003_v2 }
 0x92b   :  { %v3994_v21 = vpop.f32.mrb[114].mxu0  ;;  %v3617_v4 = vmul.f32 -1.442695, %v2998_v60 }
 0x92c   :  { %v3013_v62 = vadd.f32 %v3994_v21, %v802_v33  ;;  %v3007_v16 = vpop.f32.mrb[115].mxu0  ;;  %4620 = vpow2.f32 %v3618_v41 }
 0x92d   :  { %v3008_v52 = vadd.f32 %v3007_v16, %v796_v26  ;;  %4622 = vpow2.f32 %v3617_v4 }
 0x92e   :  { %v3620_v49 = vmul.f32 -1.442695, %v3013_v62  ;;  %v4617_v59 = vpop.eup %4616 }
 0x92f   :  { %v3997_v31 = vpop.f32.mrb[116].mxu0  ;;  %v3619_v47 = vmul.f32 -1.442695, %v3008_v52  ;;  %v4619_v2 = vpop.eup %4618  ;;  %v3105_v37 = vadd.f32 1.0, %v4617_v59 }
 0x930   :  { %v3023_v15 = vadd.f32 %v3997_v31, %v814_v12  ;;  %v3017_v23 = vpop.f32.mrb[117].mxu0  ;;  %v3104_v13 = vadd.f32 1.0, %v4619_v2 }
 0x931   :  { %v3018_v43 = vadd.f32 %v3017_v23, %v808_v45 }
 0x932   :  { %v3622_v60 = vmul.f32 -1.442695, %v3023_v15 }
 0x933   :  { %v4000_v17 = vpop.f32.mrb[118].mxu0  ;;  %v3621_v18 = vmul.f32 -1.442695, %v3018_v43 }
 0x934   :  { %v3033_v27 = vadd.f32 %v4000_v17, %v826_v5  ;;  %v3027_v34 = vpop.f32.mrb[119].mxu0 }
 0x935   :  { %v3028_v42 = vadd.f32 %v3027_v34, %v820_v40 }
 0x936   :  { %v4621_v28 = vpop.eup %4620  ;;  %v3624_v52 = vmul.f32 -1.442695, %v3033_v27 }
 0x937   :  { %v4003_v29 = vpop.f32.mrb[120].mxu0  ;;  %v4623_v33 = vpop.eup %4622  ;;  %v3109_v26 = vadd.f32 1.0, %v4621_v28  ;;  %v3623_v31 = vmul.f32 -1.442695, %v3028_v42 }
 0x938   :  { %v3043_v7 = vadd.f32 %v4003_v29, %v838_v57  ;;  %v3037_v44 = vpop.f32.mrb[121].mxu0  ;;  %v3108_v12 = vadd.f32 1.0, %v4623_v33 }
 0x939   :  { %v3038_v63 = vadd.f32 %v3037_v44, %v832_v32 }
 0x93a   :  { %v3626_v35 = vmul.f32 -1.442695, %v3043_v7 }
 0x93b   :  { %v3625_v9 = vmul.f32 -1.442695, %v3038_v63  ;;  %v4006_v0 = vpop.f32.mrb[122].mxu0 }
 0x93c   :  { %4624 = vpow2.f32 %v3626_v35  ;;  %v3053_v6 = vadd.f32 %v4006_v0, %v850_v3  ;;  %v3047_v10 = vpop.f32.mrb[123].mxu0 }
 0x93d   :  { %4626 = vpow2.f32 %v3616_v8  ;;  %v3048_v14 = vadd.f32 %v3047_v10, %v844_v24 }
 0x93e   :  { %4628 = vpow2.f32 %v3625_v9  ;;  %v3628_v11 = vmul.f32 -1.442695, %v3053_v6 }
 0x93f   :  { %4630 = vpow2.f32 %v3615_v30  ;;  %v3627_v19 = vmul.f32 -1.442695, %v3048_v14 }
 0x940   :  { %4632 = vpow2.f32 %v3620_v49 }
 0x941   :  { %4634 = vpow2.f32 %v3619_v47 }
 0x942   :  { %4636 = vpow2.f32 %v3628_v11 }
 0x943   :  { %4638 = vpow2.f32 %v3627_v19 }
 0x944   :  { %4640 = vrcp.f32 %v3105_v37 }
 0x945   :  { %4642 = vrcp.f32 %v3104_v13 }
 0x946   :  { %v4625_v36 = vpop.eup %4624  ;;  %4644 = vpow2.f32 %v3622_v60 }
 0x947   :  { %v4627_v21 = vpop.eup %4626  ;;  %v3117_v62 = vadd.f32 1.0, %v4625_v36  ;;  %4646 = vpow2.f32 %v3621_v18 }
 0x948   :  { %v4629_v16 = vpop.eup %4628  ;;  %v3107_v40 = vadd.f32 1.0, %v4627_v21 }
 0x949   :  { %v4631_v48 = vpop.eup %4630  ;;  %4648 = vrcp.f32 %v3117_v62  ;;  %v3116_v20 = vadd.f32 1.0, %v4629_v16 }
 0x94a   :  { %v4633_v45 = vpop.eup %4632  ;;  %4650 = vrcp.f32 %v3109_v26  ;;  %v3106_v27 = vadd.f32 1.0, %v4631_v48 }
 0x94b   :  { %v4635_v51 = vpop.eup %4634  ;;  %4652 = vrcp.f32 %v3116_v20  ;;  %v3111_v46 = vadd.f32 1.0, %v4633_v45 }
 0x94c   :  { %v4637_v15 = vpop.eup %4636  ;;  %4654 = vpow2.f32 %v3624_v52  ;;  %v3110_v61 = vadd.f32 1.0, %v4635_v51 }
 0x94d   :  { %v4639_v23 = vpop.eup %4638  ;;  %4656 = vrcp.f32 %v3108_v12  ;;  %v3119_v43 = vadd.f32 1.0, %v4637_v15  ;;  %v3180_v15 = vld [vmem:[%s6240_s4] sm:$0xff] }
 0x94e   :  { %4658 = vpow2.f32 %v3623_v31  ;;  %v3118_v5 = vadd.f32 1.0, %v4639_v23  ;;  %v4641_v53 = vpop.eup %4640  ;;  %v3181_v23 = vld [vmem:[%s6240_s4 + $0x8] sm:$0xff] }
 0x94f   :  { %4660 = vrcp.f32 %v3119_v43  ;;  %v4643_v17 = vpop.eup %4642 }
 0x950   :  { %4662 = vrcp.f32 %v3118_v5  ;;  %v4645_v34 = vpop.eup %4644 }
 0x951   :  { %4664 = vrcp.f32 %v3111_v46  ;;  %v4647_v41 = vpop.eup %4646  ;;  %v3113_v44 = vadd.f32 1.0, %v4645_v34  ;;  %v3189_v46 = vpop.permute.xlu0 %3188 }
 0x952   :  { %4666 = vrcp.f32 %v3110_v61  ;;  %v3112_v56 = vadd.f32 1.0, %v4647_v41 }
 0x953   :  { %v4649_v42 = vpop.eup %4648  ;;  %4668 = vrcp.f32 %v3107_v40 }
 0x954   :  { %v4651_v22 = vpop.eup %4650  ;;  %4670 = vrcp.f32 %v3106_v27  ;;  %v3153_v57 = vmul.f32 2.0, %v4649_v42 }
 0x955   :  { %v4653_v38 = vpop.eup %4652  ;;  %v3161_v63 = vmul.f32 %v4651_v22, %v6095_v1  ;;  %4672 = vrcp.f32 %v3113_v44 }
 0x956   :  { %v4655_v32 = vpop.eup %4654  ;;  %v3630_v4 = vadd.f32 -1.0, %v3153_v57  ;;  %v3152_v29 = vmul.f32 2.0, %v4653_v38 }
 0x957   :  { %v4657_v7 = vpop.eup %4656  ;;  %v3115_v14 = vadd.f32 1.0, %v4655_v32 }
 0x958   :  { %v4659_v8 = vpop.eup %4658  ;;  %v3165_v54 = vmul.f32 %v4641_v53, %v3630_v4  ;;  %v3629_v3 = vadd.f32 -1.0, %v3152_v29  ;;  %v3160_v9 = vmul.f32 %v4657_v7, %v6099_v58  ;;  %v3194_v53 = vpop.permute.xlu1 %3193 }
 0x959   :  { %v4661_v35 = vpop.eup %4660  ;;  %v3114_v1 = vadd.f32 1.0, %v4659_v8 }
 0x95a   :  { %v4663_v24 = vpop.eup %4662  ;;  %v3169_v30 = vadd.f32 %v3165_v54, %v3161_v63  ;;  %v3164_v0 = vmul.f32 %v4643_v17, %v3629_v3  ;;  %v3155_v49 = vmul.f32 2.0, %v4661_v35 }
 0x95b   :  { %v4665_v6 = vpop.eup %4664  ;;  %v3154_v10 = vmul.f32 2.0, %v4663_v24 }
 0x95c   :  { %v4667_v47 = vpop.eup %4666  ;;  %4674 = vtanh.f32 %v3169_v30  ;;  %v3168_v59 = vadd.f32 %v3164_v0, %v3160_v9  ;;  %v3632_v11 = vadd.f32 -1.0, %v3155_v49  ;;  %v3163_v13 = vmul.f32 %v4665_v6, %v6104_v39 }
 0x95d   :  { %v4669_v2 = vpop.eup %4668  ;;  %4676 = vrcp.f32 %v3112_v56  ;;  %v3631_v19 = vadd.f32 -1.0, %v3154_v10  ;;  %v3162_v58 = vmul.f32 %v4667_v47, %v6106_v50 }
 0x95e   :  { %v4671_v37 = vpop.eup %4670  ;;  %4678 = vtanh.f32 %v3168_v59  ;;  %v3167_v28 = vmul.f32 %v4669_v2, %v3632_v11 }
 0x95f   :  { %v3166_v60 = vmul.f32 %v4671_v37, %v3631_v19  ;;  %4680 = vrcp.f32 %v3115_v14  ;;  %v4673_v36 = vpop.eup %4672 }
 0x960   :  { %v3171_v18 = vadd.f32 %v3167_v28, %v3163_v13  ;;  %4682 = vrcp.f32 %v3114_v1 }
 0x961   :  { %v3170_v33 = vadd.f32 %v3166_v60, %v3162_v58 }
 0x962   :  { %4684 = vtanh.f32 %v3171_v18 }
 0x963   :  { %4686 = vtanh.f32 %v3170_v33 }
 0x966   :  { %v4675_v26 = vpop.eup %4674 }
 0x967   :  { %v4677_v21 = vpop.eup %4676  ;;  %v3177_v62 = vmul.f32 %v4675_v26, %v4673_v36 }
 0x968   :  { %v4679_v16 = vpop.eup %4678 }
 0x969   :  { %v3176_v52 = vmul.f32 %v4679_v16, %v4677_v21  ;;  %v4681_v48 = vpop.eup %4680 }
 0x96a   :  { %v4683_v12 = vpop.eup %4682 }
 0x96b   :  { %v4097_v20 = vpack.c.bf16 %v3177_v62, %v3176_v52 }
 0x96c   :  { %v4685_v39 = vpop.eup %4684 }
 0x96d   :  { %v4687_v45 = vpop.eup %4686  ;;  %4098 = vmatpush3.bf16.msra.mxu1 %v4097_v20  ;;  %v3179_v50 = vmul.f32 %v4685_v39, %v4681_v48 }
 0x96e   :  { %4099 = vmatprep.subr.bf16.mxu1 %v4722_v25  ;;  %v3178_v31 = vmul.f32 %v4687_v45, %v4683_v12  ;;  %v3182_v25 = vld [vmem:[%s6240_s4 + $0x10] sm:$0xff] }
 0x970   :  { %v4100_v51 = vpack.c.bf16 %v3179_v50, %v3178_v31 }
 0x972   :  { %4101 = vmatpush3.bf16.msra.mxu1 %v4100_v51 }
 0x975   :  { %4016 = vmatmul.mubr.msk.f32.vlgmr.msra.gmra.mrb[116].mxu1 %vm1152_vm1, %v3180_v15 }
 0x976   :  { %4018 = vmatprep.mubr.msk.f32.mxu1 %vm4723_vm2, %v6426_v55 }
 0x979   :  { %4019 = vmatmul.mubr.msk.f32.gmra.mrb[118].mxu1 %vm1152_vm1, %v3181_v23 }
 0x97a   :  { %4021 = vmatprep.mubr.msk.f32.mxu1 %vm4723_vm2, %v6426_v55  ;;  %v3199_v55 = vpop.permute.xlu0 %3198 }
 0x97d   :  { %4022 = vmatmul.mubr.msk.f32.gmra.mrb[120].mxu1 %vm1152_vm1, %v3182_v25 }
 0xa48   :  { %v3276_v43 = vpop.f32.mrb[116].mxu1 }
 0xa49   :  { %v3277_v61 = vadd.f32 %v3276_v43, %v3189_v46  ;;  %v4017_v5 = vpop.f32.mrb[117].mxu1 }
 0xa4b   :  { %3290 = vst [vmem:[%s6241_s6] sm:$0xff] %v3277_v61 }
 0xa4c   :  { %v3281_v40 = vpop.f32.mrb[118].mxu1 }
 0xa4d   :  { %v3282_v17 = vadd.f32 %v3281_v40, %v3194_v53  ;;  %v4020_v27 = vpop.f32.mrb[119].mxu1 }
 0xa4f   :  { %3291 = vst [vmem:[%s6241_s6 + $0x8] sm:$0xff] %v3282_v17 }
 0xa50   :  { %v3286_v34 = vpop.f32.mrb[120].mxu1 }
 0xa51   :  { %v3287_v41 = vadd.f32 %v3286_v34, %v3199_v55  ;;  %v4023_v42 = vpop.f32.mrb[121].mxu1 }
 0xa53   :  { %3292 = vst [vmem:[%s6241_s6 + $0x10] sm:$0xff] %v3287_v41 }

</bundles_post_ra>
